<compile_context>
chip_gen: v7x
topology: tpu7x:2x2x1
jax: 0.10.0
libtpu: 0.0.40
codegen_flags: <defaults>
</compile_context>

<pallas_src>
import functools
import math

import jax
import jax.numpy as jnp
from jax import lax
from jax.experimental import pallas as pl
from jax.experimental.pallas import tpu as pltpu

# ----------------------------- config ---------------------------------------
HIDDEN_SIZE = 32
NUM_HEADS = 4
MLP_DIM = 64
NUM_LAYERS = 2
IMG_SIZE = 128                       # must be divisible by 32
BACKBONE_CHANNELS = (8, 12, 16, 24)  # synthetic stand-in feature channels
LN_EPS = 1e-6
NEG_INF = -1e30
# dropout_rate / attention_dropout_rate = 0.0 -> Dropout is identity (eval)


def _log2(x):
    assert x > 0 and (x & (x - 1)) == 0, f"{x} must be a power of two"
    return x.bit_length() - 1


# --------------------------- in-kernel helpers -------------------------------
def _layernorm(x, g, b):
    # PyTorch LayerNorm over last dim, biased variance, eps=1e-6
    mu = jnp.mean(x, axis=-1, keepdims=True)
    var = jnp.mean((x - mu) ** 2, axis=-1, keepdims=True)
    return (x - mu) * lax.rsqrt(var + LN_EPS) * g + b


def _gelu_exact(x):
    # nn.GELU() default = exact erf-based GELU
    return 0.5 * x * (1.0 + lax.erf(x * (1.0 / math.sqrt(2.0))))


# ------------------------------ fused kernel ---------------------------------
def fused_transformer_kernel(tok_ref,   # (B*N, C)      backbone tokens (batch folded)
                             pw_ref,    # (C, D)        1x1 patch-embed conv weight
                             pos_ref,   # (B*N, D)      pos-emb tiled over batch
                             wts_ref,   # (L, 3D+M, 3D) stacked matrices
                             vec_ref,   # (8L+2, 3D)    stacked LN params + biases
                             out_ref,   # (R, 128)      lane-dense packed output
                             *, num_layers, num_heads, seq_len, batch):
    D = pw_ref.shape[1]
    M = wts_ref.shape[1] - 3 * D
    H = num_heads
    hd = D // H
    BN = batch * seq_len
    scale = 1.0 / math.sqrt(hd)

    # ---- patch embedding: 1x1 conv == matmul, then + pos-emb (all B*N rows) --
    x = jnp.dot(tok_ref[...], pw_ref[...],
                preferred_element_type=jnp.float32) + pos_ref[...]

    # ---- constant masks, built once from iota (all block sizes are pow2) ----
    hd_sh, bn_sh, sl_sh = _log2(hd), _log2(BN), _log2(seq_len)
    # head selection mask for the row-stacked K / V: row block h keeps only the
    # hd columns belonging to head h.
    r = lax.broadcasted_iota(jnp.int32, (H * BN, D), 0)
    c = lax.broadcasted_iota(jnp.int32, (H * BN, D), 1)
    head_mask = jnp.where((c >> hd_sh) == (r >> bn_sh), 1.0, 0.0).astype(jnp.float32)
    # additive bias keeping the two folded batch elements independent.
    qr = lax.broadcasted_iota(jnp.int32, (BN, H * BN), 0)
    kc = lax.broadcasted_iota(jnp.int32, (BN, H * BN), 1)
    same_batch = (qr >> sl_sh) == ((kc & (BN - 1)) >> sl_sh)
    attn_bias = jnp.where(same_batch, 0.0, NEG_INF).astype(jnp.float32)

    # ---- encoder blocks (static loop; all weights VMEM-resident) -----------
    for l in range(num_layers):
        base = 8 * l
        wqkv = wts_ref[l, 0:D, 0:3 * D]                  # (D, 3D)
        wo = wts_ref[l, D:2 * D, 0:D]                    # (D, D)
        w1 = wts_ref[l, 2 * D:3 * D, 0:M]                # (D, M)
        w2 = wts_ref[l, 3 * D:3 * D + M, 0:D]            # (M, D)
        ln1_g = vec_ref[base + 0:base + 1, 0:D]
        ln1_b = vec_ref[base + 1:base + 2, 0:D]
        bqkv = vec_ref[base + 2:base + 3, 0:3 * D]
        bo = vec_ref[base + 3:base + 4, 0:D]
        ln2_g = vec_ref[base + 4:base + 5, 0:D]
        ln2_b = vec_ref[base + 5:base + 6, 0:D]
        b1 = vec_ref[base + 6:base + 7, 0:M]
        b2 = vec_ref[base + 7:base + 8, 0:D]

        # -- attention branch (pre-LN), all heads + both batches at once --
        h_res = x
        xn = _layernorm(x, ln1_g, ln1_b)
        qkv = jnp.dot(xn, wqkv, preferred_element_type=jnp.float32) + bqkv
        q = qkv[:, 0:D] * scale                          # (BN, D)
        k = qkv[:, D:2 * D]
        v = qkv[:, 2 * D:3 * D]

        # head-masked row stacks: block h holds k/v restricted to head h's cols
        k_stack = jnp.concatenate([k] * H, axis=0) * head_mask   # (H*BN, D)
        v_stack = jnp.concatenate([v] * H, axis=0) * head_mask   # (H*BN, D)

        # one matmul gives every head's (BN x BN) score block side by side
        s_wide = lax.dot_general(q, k_stack, (((1,), (1,)), ((), ())),
                                 preferred_element_type=jnp.float32)  # (BN, H*BN)
        s_wide = s_wide + attn_bias

        # exact block-wise softmax (per head block; batch mask -> exp == 0)
        probs = []
        for h in range(H):
            sh = s_wide[:, h * BN:(h + 1) * BN]
            sh = sh - jnp.max(sh, axis=-1, keepdims=True)
            eh = jnp.exp(sh)
            probs.append(eh / jnp.sum(eh, axis=-1, keepdims=True))
        p_wide = jnp.concatenate(probs, axis=1)                       # (BN, H*BN)

        # one matmul yields the already-head-concatenated context ...
        ctx = jnp.dot(p_wide, v_stack, preferred_element_type=jnp.float32)  # (BN, D)
        # ... and ONE W_out matmul finishes the attention branch.
        x = jnp.dot(ctx, wo, preferred_element_type=jnp.float32) + bo + h_res

        # -- MLP branch (pre-LN) --
        h_res2 = x
        xn2 = _layernorm(x, ln2_g, ln2_b)
        y = jnp.dot(xn2, w1, preferred_element_type=jnp.float32) + b1
        y = _gelu_exact(y)
        y = jnp.dot(y, w2, preferred_element_type=jnp.float32) + b2
        x = y + h_res2

    # ---- final encoder LayerNorm ----
    fbase = 8 * num_layers
    x = _layernorm(x, vec_ref[fbase:fbase + 1, 0:D],
                   vec_ref[fbase + 1:fbase + 2, 0:D])

    # ---- lane-dense packed store: (BN, D) -> (BN//G, G*D) with G = 128 // D.
    # Only sublane-aligned row slices + one lane concat; wrapper un-packs.
    R = out_ref.shape[0]
    G = out_ref.shape[1] // D
    packed = jnp.concatenate([x[g * R:(g + 1) * R, :] for g in range(G)], axis=1)
    out_ref[...] = packed.astype(out_ref.dtype)


# --------------------------- pallas_call wrapper ------------------------------
def fused_transformer(tokens, p):
    """tokens: (B, N, C) backbone tokens -> (B, N, D) encoded tokens."""
    B, N, C = tokens.shape
    D, M, L, H = HIDDEN_SIZE, MLP_DIM, NUM_LAYERS, NUM_HEADS
    BN = B * N
    assert D % H == 0
    assert 128 % D == 0, "lane-dense packing assumes D divides 128"
    G = 128 // D
    assert BN % G == 0 and BN % 8 == 0
    R = BN // G
    for v in (D // H, BN, N):
        _log2(v)  # masks use shifts; require powers of two

    tok_flat = tokens.reshape(BN, C)
    pos_tiled = jnp.tile(p["pos_emb"], (B, 1))           # (BN, D)

    kernel = functools.partial(fused_transformer_kernel,
                               num_layers=L, num_heads=H,
                               seq_len=N, batch=B)

    out_wide = pl.pallas_call(
        kernel,
        out_shape=jax.ShapeDtypeStruct((R, G * D), jnp.float32),
        grid=(1,),
        in_specs=[
            pl.BlockSpec((BN, C), lambda i: (0, 0)),             # tokens
            pl.BlockSpec((C, D), lambda i: (0, 0)),              # patch embed W
            pl.BlockSpec((BN, D), lambda i: (0, 0)),             # pos emb (tiled)
            pl.BlockSpec(p["wts"].shape, lambda i: (0, 0, 0)),   # stacked matrices
            pl.BlockSpec(p["vecs"].shape, lambda i: (0, 0)),     # stacked vectors
        ],
        out_specs=pl.BlockSpec((R, G * D), lambda i: (0, 0)),
        compiler_params=pltpu.CompilerParams(dimension_semantics=("arbitrary",)),
    )(tok_flat, p["patch_w"], pos_tiled, p["wts"], p["vecs"])

    # un-pack the lane-dense (R, G*D) slab back to token order (B, N, D)
    enc = out_wide.reshape(R, G, D).transpose(1, 0, 2).reshape(BN, D)
    return enc.reshape(B, N, D)


# --------------------------- synthetic backbone ------------------------------
def synthetic_backbone(x_nchw, bb_params):
    # TODO(synk): the pretrained timm EfficientNet-B3 backbone cannot be
    # reproduced in-script; this is a deterministic strided-conv stand-in
    # producing feature maps at the same strides (4, 8, 16, 32).
    x = jnp.transpose(x_nchw, (0, 2, 3, 1))  # NHWC for convs
    feats_nhwc = []
    strides = (4, 2, 2, 2)
    for (w, b), s in zip(bb_params, strides):
        x = lax.conv_general_dilated(
            x, w, window_strides=(s, s), padding="SAME",
            dimension_numbers=("NHWC", "HWIO", "NHWC"))
        x = jax.nn.relu(x + b)
        feats_nhwc.append(x)
    feats_nchw = [jnp.transpose(f, (0, 3, 1, 2)) for f in feats_nhwc]
    return feats_nhwc, feats_nchw


# ------------------------------ parameter init --------------------------------
def init_params(key):
    keys = iter(jax.random.split(key, 32))
    D, M, L = HIDDEN_SIZE, MLP_DIM, NUM_LAYERS
    last_ch = BACKBONE_CHANNELS[-1]
    feat_size = IMG_SIZE // 32
    num_patches = feat_size * feat_size

    def rnd(shape, scale=0.02):
        return jax.random.normal(next(keys), shape, jnp.float32) * scale

    # backbone (synthetic)
    bb = []
    in_ch = 3
    ksizes = (4, 3, 3, 3)
    for ch, k in zip(BACKBONE_CHANNELS, ksizes):
        bb.append((rnd((k, k, in_ch, ch), 0.1), rnd((ch,), 0.01)))
        in_ch = ch

    # embeddings
    patch_w = rnd((last_ch, D))                 # Conv2d(last_ch, D, 1, bias=False)
    pos_emb = rnd((num_patches, D), 0.01)       # nn.Parameter (1, N, D), squeezed

    # raw per-layer weights (y = x @ W + b convention, == torch x @ W.T + b)
    wqkv = rnd((L, D, 3 * D))                   # [Wq | Wk | Wv] along out axis
    wo = rnd((L, D, D))
    w1 = rnd((L, D, M))
    w2 = rnd((L, M, D))
    bqkv = rnd((L, 3 * D), 0.01)
    bo = rnd((L, D), 0.01)
    b1 = rnd((L, M), 1e-6)
    b2 = rnd((L, D), 1e-6)

    # ---- consolidated matrix operand: (L, 3D + M, 3D) ----
    wts = jnp.zeros((L, 3 * D + M, 3 * D), jnp.float32)
    wts = wts.at[:, 0:D, 0:3 * D].set(wqkv)
    wts = wts.at[:, D:2 * D, 0:D].set(wo)
    wts = wts.at[:, 2 * D:3 * D, 0:M].set(w1)
    wts = wts.at[:, 3 * D:3 * D + M, 0:D].set(w2)

    # ---- consolidated vector operand: (8L+2, 3D) ----
    # rows per layer l (base=8l): 0 ln1_g, 1 ln1_b, 2 bqkv, 3 bo,
    #                             4 ln2_g, 5 ln2_b, 6 b1,   7 b2
    # rows 8L, 8L+1: final LN gamma / beta
    vecs = jnp.zeros((8 * L + 2, 3 * D), jnp.float32)
    for l in range(L):
        b = 8 * l
        vecs = vecs.at[b + 0, 0:D].set(1.0)          # ln1 gamma (beta stays 0)
        vecs = vecs.at[b + 2, 0:3 * D].set(bqkv[l])
        vecs = vecs.at[b + 3, 0:D].set(bo[l])
        vecs = vecs.at[b + 4, 0:D].set(1.0)          # ln2 gamma
        vecs = vecs.at[b + 6, 0:M].set(b1[l])
        vecs = vecs.at[b + 7, 0:D].set(b2[l])
    vecs = vecs.at[8 * L, 0:D].set(1.0)              # final LN gamma

    return dict(backbone=bb, patch_w=patch_w, pos_emb=pos_emb, wts=wts, vecs=vecs)


# ------------------------------ full forward ----------------------------------
def transformer_forward(params, x_nchw):
    # Embeddings: backbone feature maps
    feats_nhwc, feats_nchw = synthetic_backbone(x_nchw, params["backbone"])
    last = feats_nhwc[-1]                                   # (B, Hf, Wf, C_last)
    B, Hf, Wf, C = last.shape
    # same token order as x.flatten(2).transpose(1, 2) in NCHW PyTorch
    tokens_in = last.reshape(B, Hf * Wf, C)

    # Fused: patch-embed + pos-emb + all encoder blocks + final LayerNorm
    encoded = fused_transformer(tokens_in, params)
    return encoded, feats_nchw


# --------------------------- pure-JAX reference -------------------------------
def transformer_reference(params, tokens):
    """Straightforward per-head math; validates the masked wide-attention trick."""
    D, M, L, H = HIDDEN_SIZE, MLP_DIM, NUM_LAYERS, NUM_HEADS
    hd = D // H
    wts, vecs = params["wts"], params["vecs"]

    def ln(z, g, b):
        mu = jnp.mean(z, axis=-1, keepdims=True)
        var = jnp.mean((z - mu) ** 2, axis=-1, keepdims=True)
        return (z - mu) * lax.rsqrt(var + LN_EPS) * g + b

    x = jnp.einsum("bnc,cd->bnd", tokens, params["patch_w"]) + params["pos_emb"][None]
    B, N, _ = x.shape
    for l in range(L):
        base = 8 * l
        wqkv = wts[l, 0:D, 0:3 * D]
        wo = wts[l, D:2 * D, 0:D]
        w1 = wts[l, 2 * D:3 * D, 0:M]
        w2 = wts[l, 3 * D:3 * D + M, 0:D]
        g1, be1 = vecs[base + 0, 0:D], vecs[base + 1, 0:D]
        bqkv, bo = vecs[base + 2, 0:3 * D], vecs[base + 3, 0:D]
        g2, be2 = vecs[base + 4, 0:D], vecs[base + 5, 0:D]
        bm1, bm2 = vecs[base + 6, 0:M], vecs[base + 7, 0:D]

        h_res = x
        xn = ln(x, g1, be1)
        qkv = jnp.einsum("bnd,de->bne", xn, wqkv) + bqkv
        q, k, v = qkv[..., 0:D], qkv[..., D:2 * D], qkv[..., 2 * D:3 * D]
        q = q.reshape(B, N, H, hd).transpose(0, 2, 1, 3)
        k = k.reshape(B, N, H, hd).transpose(0, 2, 1, 3)
        v = v.reshape(B, N, H, hd).transpose(0, 2, 1, 3)
        s = jnp.einsum("bhnd,bhmd->bhnm", q, k) / math.sqrt(hd)
        p = jax.nn.softmax(s, axis=-1)
        ctx = jnp.einsum("bhnm,bhmd->bhnd", p, v).transpose(0, 2, 1, 3).reshape(B, N, D)
        x = jnp.einsum("bnd,de->bne", ctx, wo) + bo + h_res

        h_res2 = x
        xn2 = ln(x, g2, be2)
        y = jnp.einsum("bnd,dm->bnm", xn2, w1) + bm1
        y = 0.5 * y * (1.0 + lax.erf(y / math.sqrt(2.0)))
        y = jnp.einsum("bnm,md->bnd", y, w2) + bm2
        x = y + h_res2
    return ln(x, vecs[8 * L, 0:D], vecs[8 * L + 1, 0:D])


# ---------------------------------- main ---------------------------------------
if __name__ == "__main__":
    key = jax.random.PRNGKey(0)
    pkey, xkey = jax.random.split(key)
    params = init_params(pkey)

    B = 2
    x = jax.random.normal(xkey, (B, 3, IMG_SIZE, IMG_SIZE), jnp.float32)  # NCHW

    encoded, features = jax.jit(transformer_forward)(params, x)
    encoded = jax.block_until_ready(encoded)
    for f in features:
        jax.block_until_ready(f)

    feat_size = IMG_SIZE // 32
    N = feat_size * feat_size
    assert encoded.shape == (B, N, HIDDEN_SIZE), encoded.shape
    assert bool(jnp.all(jnp.isfinite(encoded)))

    # correctness vs. a plain-JAX reference of the same token pipeline
    feats_nhwc, _ = synthetic_backbone(x, params["backbone"])
    tokens = feats_nhwc[-1].reshape(B, N, BACKBONE_CHANNELS[-1])
    ref = transformer_reference(params, tokens)
    assert bool(jnp.allclose(encoded, ref, atol=1e-3, rtol=1e-3)), \
        float(jnp.max(jnp.abs(encoded - ref)))

    print("KERNEL_OK")
</pallas_src>

<mosaic_0001>
module attributes {stable_mosaic.version = 11 : i64} {
  func.func @fused_transformer_kernel(%arg0: i32, %arg1: memref<32x24xf32, #tpu.memory_space<vmem>>, %arg2: memref<24x32xf32, #tpu.memory_space<vmem>>, %arg3: memref<32x32xf32, #tpu.memory_space<vmem>>, %arg4: memref<2x160x96xf32, #tpu.memory_space<vmem>>, %arg5: memref<18x96xf32, #tpu.memory_space<vmem>>, %arg6: memref<8x128xf32, #tpu.memory_space<vmem>>) attributes {dimension_semantics = [#tpu.dimension_semantics<arbitrary>], iteration_bounds = array<i64: 1>, scalar_prefetch = 0 : i64, scratch_operands = 0 : i64, tpu.core_type = #tpu.core_type<tc>, window_params = [{pipeline_mode = #tpu.pipeline_mode<synchronous>, transform_indices = @transform_0, window_bounds = array<i64: 32, 24>}, {pipeline_mode = #tpu.pipeline_mode<synchronous>, transform_indices = @transform_1, window_bounds = array<i64: 24, 32>}, {pipeline_mode = #tpu.pipeline_mode<synchronous>, transform_indices = @transform_2, window_bounds = array<i64: 32, 32>}, {pipeline_mode = #tpu.pipeline_mode<synchronous>, transform_indices = @transform_3, window_bounds = array<i64: 2, 160, 96>}, {pipeline_mode = #tpu.pipeline_mode<synchronous>, transform_indices = @transform_4, window_bounds = array<i64: 18, 96>}, {pipeline_mode = #tpu.pipeline_mode<synchronous>, transform_indices = @transform_5, window_bounds = array<i64: 8, 128>}]} {
    %c0 = arith.constant 0 : index
    %c0_0 = arith.constant 0 : index
    %0 = vector.load %arg1[%c0, %c0_0] : memref<32x24xf32, #tpu.memory_space<vmem>>, vector<32x24xf32>
    %c0_1 = arith.constant 0 : index
    %c0_2 = arith.constant 0 : index
    %1 = vector.load %arg2[%c0_1, %c0_2] : memref<24x32xf32, #tpu.memory_space<vmem>>, vector<24x32xf32>
    %cst = arith.constant dense<0.000000e+00> : vector<32x32xf32>
    %2 = tpu.matmul %0, %1, %cst {dimension_numbers = #tpu.dot_dimension_numbers<[1], [0], [0], [1], [0, 0, 1, 1], [], []>} : vector<32x24xf32>, vector<24x32xf32>, vector<32x32xf32> -> vector<32x32xf32>
    %c0_3 = arith.constant 0 : index
    %c0_4 = arith.constant 0 : index
    %3 = vector.load %arg3[%c0_3, %c0_4] : memref<32x32xf32, #tpu.memory_space<vmem>>, vector<32x32xf32>
    %4 = arith.addf %2, %3 : vector<32x32xf32>
    %5 = tpu.iota {dimensions = array<i32: 0>} : vector<128x32xi32>
    %6 = tpu.iota {dimensions = array<i32: 1>} : vector<128x32xi32>
    %c3_i32 = arith.constant 3 : i32
    %7 = vector.broadcast %c3_i32 : i32 to vector<128x32xi32>
    %8 = arith.shrsi %6, %7 : vector<128x32xi32>
    %c5_i32 = arith.constant 5 : i32
    %9 = vector.broadcast %c5_i32 : i32 to vector<128x32xi32>
    %10 = arith.shrsi %5, %9 : vector<128x32xi32>
    %11 = arith.cmpi eq, %8, %10 : vector<128x32xi32>
    %cst_5 = arith.constant 1.000000e+00 : f32
    %cst_6 = arith.constant 0.000000e+00 : f32
    %12 = vector.broadcast %cst_5 : f32 to vector<128x32xf32>
    %13 = vector.broadcast %cst_6 : f32 to vector<128x32xf32>
    %14 = arith.select %11, %12, %13 : vector<128x32xi1>, vector<128x32xf32>
    %15 = tpu.iota {dimensions = array<i32: 0>} : vector<32x128xi32>
    %16 = tpu.iota {dimensions = array<i32: 1>} : vector<32x128xi32>
    %c4_i32 = arith.constant 4 : i32
    %17 = vector.broadcast %c4_i32 : i32 to vector<32x128xi32>
    %18 = arith.shrsi %15, %17 : vector<32x128xi32>
    %c31_i32 = arith.constant 31 : i32
    %19 = vector.broadcast %c31_i32 : i32 to vector<32x128xi32>
    %20 = arith.andi %16, %19 : vector<32x128xi32>
    %c4_i32_7 = arith.constant 4 : i32
    %21 = vector.broadcast %c4_i32_7 : i32 to vector<32x128xi32>
    %22 = arith.shrsi %20, %21 : vector<32x128xi32>
    %23 = arith.cmpi eq, %18, %22 : vector<32x128xi32>
    %cst_8 = arith.constant 0.000000e+00 : f32
    %cst_9 = arith.constant -1.000000e+30 : f32
    %24 = vector.broadcast %cst_8 : f32 to vector<32x128xf32>
    %25 = vector.broadcast %cst_9 : f32 to vector<32x128xf32>
    %26 = arith.select %23, %24, %25 : vector<32x128xi1>, vector<32x128xf32>
    %c0_10 = arith.constant 0 : index
    %c0_11 = arith.constant 0 : index
    %c0_12 = arith.constant 0 : index
    %27 = vector.load %arg4[%c0_10, %c0_11, %c0_12] : memref<2x160x96xf32, #tpu.memory_space<vmem>>, vector<1x32x96xf32>
    %28 = vector.shape_cast %27 : vector<1x32x96xf32> to vector<32x96xf32>
    %c0_13 = arith.constant 0 : index
    %c32 = arith.constant 32 : index
    %c0_14 = arith.constant 0 : index
    %29 = vector.load %arg4[%c0_13, %c32, %c0_14] : memref<2x160x96xf32, #tpu.memory_space<vmem>>, vector<1x32x32xf32>
    %30 = vector.shape_cast %29 : vector<1x32x32xf32> to vector<32x32xf32>
    %c0_15 = arith.constant 0 : index
    %c64 = arith.constant 64 : index
    %c0_16 = arith.constant 0 : index
    %31 = vector.load %arg4[%c0_15, %c64, %c0_16] : memref<2x160x96xf32, #tpu.memory_space<vmem>>, vector<1x32x64xf32>
    %32 = vector.shape_cast %31 : vector<1x32x64xf32> to vector<32x64xf32>
    %c0_17 = arith.constant 0 : index
    %c96 = arith.constant 96 : index
    %c0_18 = arith.constant 0 : index
    %33 = vector.load %arg4[%c0_17, %c96, %c0_18] : memref<2x160x96xf32, #tpu.memory_space<vmem>>, vector<1x64x32xf32>
    %34 = vector.shape_cast %33 : vector<1x64x32xf32> to vector<64x32xf32>
    %c0_19 = arith.constant 0 : index
    %c0_20 = arith.constant 0 : index
    %35 = vector.load %arg5[%c0_19, %c0_20] : memref<18x96xf32, #tpu.memory_space<vmem>>, vector<1x32xf32>
    %c1 = arith.constant 1 : index
    %c0_21 = arith.constant 0 : index
    %36 = vector.load %arg5[%c1, %c0_21] : memref<18x96xf32, #tpu.memory_space<vmem>>, vector<1x32xf32>
    %c2 = arith.constant 2 : index
    %c0_22 = arith.constant 0 : index
    %37 = vector.load %arg5[%c2, %c0_22] : memref<18x96xf32, #tpu.memory_space<vmem>>, vector<1x96xf32>
    %c3 = arith.constant 3 : index
    %c0_23 = arith.constant 0 : index
    %38 = vector.load %arg5[%c3, %c0_23] : memref<18x96xf32, #tpu.memory_space<vmem>>, vector<1x32xf32>
    %c4 = arith.constant 4 : index
    %c0_24 = arith.constant 0 : index
    %39 = vector.load %arg5[%c4, %c0_24] : memref<18x96xf32, #tpu.memory_space<vmem>>, vector<1x32xf32>
    %c5 = arith.constant 5 : index
    %c0_25 = arith.constant 0 : index
    %40 = vector.load %arg5[%c5, %c0_25] : memref<18x96xf32, #tpu.memory_space<vmem>>, vector<1x32xf32>
    %c6 = arith.constant 6 : index
    %c0_26 = arith.constant 0 : index
    %41 = vector.load %arg5[%c6, %c0_26] : memref<18x96xf32, #tpu.memory_space<vmem>>, vector<1x64xf32>
    %c7 = arith.constant 7 : index
    %c0_27 = arith.constant 0 : index
    %42 = vector.load %arg5[%c7, %c0_27] : memref<18x96xf32, #tpu.memory_space<vmem>>, vector<1x32xf32>
    %cst_28 = arith.constant dense<0.000000e+00> : vector<32xf32>
    %43 = vector.multi_reduction <add>, %4, %cst_28 [1] : vector<32x32xf32> to vector<32xf32>
    %44 = vector.shape_cast %43 : vector<32xf32> to vector<32x1xf32>
    %cst_29 = arith.constant 3.200000e+01 : f32
    %45 = vector.broadcast %cst_29 : f32 to vector<32x1xf32>
    %46 = arith.divf %44, %45 : vector<32x1xf32>
    %47 = vector.broadcast %46 : vector<32x1xf32> to vector<32x32xf32>
    %48 = arith.subf %4, %47 : vector<32x32xf32>
    %49 = arith.mulf %48, %48 : vector<32x32xf32>
    %cst_30 = arith.constant dense<0.000000e+00> : vector<32xf32>
    %50 = vector.multi_reduction <add>, %49, %cst_30 [1] : vector<32x32xf32> to vector<32xf32>
    %51 = vector.shape_cast %50 : vector<32xf32> to vector<32x1xf32>
    %cst_31 = arith.constant 3.200000e+01 : f32
    %52 = vector.broadcast %cst_31 : f32 to vector<32x1xf32>
    %53 = arith.divf %51, %52 : vector<32x1xf32>
    %54 = vector.broadcast %46 : vector<32x1xf32> to vector<32x32xf32>
    %55 = arith.subf %4, %54 : vector<32x32xf32>
    %cst_32 = arith.constant 9.99999997E-7 : f32
    %56 = vector.broadcast %cst_32 : f32 to vector<32x1xf32>
    %57 = arith.addf %53, %56 : vector<32x1xf32>
    %58 = math.rsqrt %57 : vector<32x1xf32>
    %59 = vector.broadcast %58 : vector<32x1xf32> to vector<32x32xf32>
    %60 = arith.mulf %55, %59 : vector<32x32xf32>
    %61 = vector.broadcast %35 : vector<1x32xf32> to vector<32x32xf32>
    %62 = arith.mulf %60, %61 : vector<32x32xf32>
    %63 = vector.broadcast %36 : vector<1x32xf32> to vector<32x32xf32>
    %64 = arith.addf %62, %63 : vector<32x32xf32>
    %cst_33 = arith.constant dense<0.000000e+00> : vector<32x96xf32>
    %65 = tpu.matmul %64, %28, %cst_33 {dimension_numbers = #tpu.dot_dimension_numbers<[1], [0], [0], [1], [0, 0, 1, 1], [], []>} : vector<32x32xf32>, vector<32x96xf32>, vector<32x96xf32> -> vector<32x96xf32>
    %66 = vector.broadcast %37 : vector<1x96xf32> to vector<32x96xf32>
    %67 = arith.addf %65, %66 : vector<32x96xf32>
    %68 = vector.extract_strided_slice %67 {offsets = [0, 0], sizes = [32, 32], strides = [1, 1]} : vector<32x96xf32> to vector<32x32xf32>
    %cst_34 = arith.constant 0.353553385 : f32
    %69 = vector.broadcast %cst_34 : f32 to vector<32x32xf32>
    %70 = arith.mulf %68, %69 : vector<32x32xf32>
    %71 = vector.extract_strided_slice %67 {offsets = [0, 32], sizes = [32, 32], strides = [1, 1]} : vector<32x96xf32> to vector<32x32xf32>
    %72 = vector.extract_strided_slice %67 {offsets = [0, 64], sizes = [32, 32], strides = [1, 1]} : vector<32x96xf32> to vector<32x32xf32>
    %73 = tpu.concatenate %71, %71, %71, %71 in 0 : vector<32x32xf32>, vector<32x32xf32>, vector<32x32xf32>, vector<32x32xf32> -> vector<128x32xf32>
    %74 = arith.mulf %73, %14 : vector<128x32xf32>
    %75 = tpu.concatenate %72, %72, %72, %72 in 0 : vector<32x32xf32>, vector<32x32xf32>, vector<32x32xf32>, vector<32x32xf32> -> vector<128x32xf32>
    %76 = arith.mulf %75, %14 : vector<128x32xf32>
    %cst_35 = arith.constant dense<0.000000e+00> : vector<32x128xf32>
    %77 = tpu.matmul %70, %74, %cst_35 {dimension_numbers = #tpu.dot_dimension_numbers<[1], [1], [0], [0], [0, 0, 1, 0], [], []>} : vector<32x32xf32>, vector<128x32xf32>, vector<32x128xf32> -> vector<32x128xf32>
    %78 = arith.addf %77, %26 : vector<32x128xf32>
    %79 = vector.extract_strided_slice %78 {offsets = [0, 0], sizes = [32, 32], strides = [1, 1]} : vector<32x128xf32> to vector<32x32xf32>
    %cst_36 = arith.constant dense<0xFF800000> : vector<32xf32>
    %80 = vector.multi_reduction <maximumf>, %79, %cst_36 [1] : vector<32x32xf32> to vector<32xf32>
    %81 = vector.shape_cast %80 : vector<32xf32> to vector<32x1xf32>
    %82 = vector.broadcast %81 : vector<32x1xf32> to vector<32x32xf32>
    %83 = arith.subf %79, %82 : vector<32x32xf32>
    %84 = math.exp %83 : vector<32x32xf32>
    %cst_37 = arith.constant dense<0.000000e+00> : vector<32xf32>
    %85 = vector.multi_reduction <add>, %84, %cst_37 [1] : vector<32x32xf32> to vector<32xf32>
    %86 = vector.shape_cast %85 : vector<32xf32> to vector<32x1xf32>
    %87 = vector.broadcast %86 : vector<32x1xf32> to vector<32x32xf32>
    %88 = arith.divf %84, %87 : vector<32x32xf32>
    %89 = vector.extract_strided_slice %78 {offsets = [0, 32], sizes = [32, 32], strides = [1, 1]} : vector<32x128xf32> to vector<32x32xf32>
    %cst_38 = arith.constant dense<0xFF800000> : vector<32xf32>
    %90 = vector.multi_reduction <maximumf>, %89, %cst_38 [1] : vector<32x32xf32> to vector<32xf32>
    %91 = vector.shape_cast %90 : vector<32xf32> to vector<32x1xf32>
    %92 = vector.broadcast %91 : vector<32x1xf32> to vector<32x32xf32>
    %93 = arith.subf %89, %92 : vector<32x32xf32>
    %94 = math.exp %93 : vector<32x32xf32>
    %cst_39 = arith.constant dense<0.000000e+00> : vector<32xf32>
    %95 = vector.multi_reduction <add>, %94, %cst_39 [1] : vector<32x32xf32> to vector<32xf32>
    %96 = vector.shape_cast %95 : vector<32xf32> to vector<32x1xf32>
    %97 = vector.broadcast %96 : vector<32x1xf32> to vector<32x32xf32>
    %98 = arith.divf %94, %97 : vector<32x32xf32>
    %99 = vector.extract_strided_slice %78 {offsets = [0, 64], sizes = [32, 32], strides = [1, 1]} : vector<32x128xf32> to vector<32x32xf32>
    %cst_40 = arith.constant dense<0xFF800000> : vector<32xf32>
    %100 = vector.multi_reduction <maximumf>, %99, %cst_40 [1] : vector<32x32xf32> to vector<32xf32>
    %101 = vector.shape_cast %100 : vector<32xf32> to vector<32x1xf32>
    %102 = vector.broadcast %101 : vector<32x1xf32> to vector<32x32xf32>
    %103 = arith.subf %99, %102 : vector<32x32xf32>
    %104 = math.exp %103 : vector<32x32xf32>
    %cst_41 = arith.constant dense<0.000000e+00> : vector<32xf32>
    %105 = vector.multi_reduction <add>, %104, %cst_41 [1] : vector<32x32xf32> to vector<32xf32>
    %106 = vector.shape_cast %105 : vector<32xf32> to vector<32x1xf32>
    %107 = vector.broadcast %106 : vector<32x1xf32> to vector<32x32xf32>
    %108 = arith.divf %104, %107 : vector<32x32xf32>
    %109 = vector.extract_strided_slice %78 {offsets = [0, 96], sizes = [32, 32], strides = [1, 1]} : vector<32x128xf32> to vector<32x32xf32>
    %cst_42 = arith.constant dense<0xFF800000> : vector<32xf32>
    %110 = vector.multi_reduction <maximumf>, %109, %cst_42 [1] : vector<32x32xf32> to vector<32xf32>
    %111 = vector.shape_cast %110 : vector<32xf32> to vector<32x1xf32>
    %112 = vector.broadcast %111 : vector<32x1xf32> to vector<32x32xf32>
    %113 = arith.subf %109, %112 : vector<32x32xf32>
    %114 = math.exp %113 : vector<32x32xf32>
    %cst_43 = arith.constant dense<0.000000e+00> : vector<32xf32>
    %115 = vector.multi_reduction <add>, %114, %cst_43 [1] : vector<32x32xf32> to vector<32xf32>
    %116 = vector.shape_cast %115 : vector<32xf32> to vector<32x1xf32>
    %117 = vector.broadcast %116 : vector<32x1xf32> to vector<32x32xf32>
    %118 = arith.divf %114, %117 : vector<32x32xf32>
    %119 = tpu.concatenate %88, %98, %108, %118 in 1 : vector<32x32xf32>, vector<32x32xf32>, vector<32x32xf32>, vector<32x32xf32> -> vector<32x128xf32>
    %cst_44 = arith.constant dense<0.000000e+00> : vector<32x32xf32>
    %120 = tpu.matmul %119, %76, %cst_44 {dimension_numbers = #tpu.dot_dimension_numbers<[1], [0], [0], [1], [0, 0, 1, 1], [], []>} : vector<32x128xf32>, vector<128x32xf32>, vector<32x32xf32> -> vector<32x32xf32>
    %cst_45 = arith.constant dense<0.000000e+00> : vector<32x32xf32>
    %121 = tpu.matmul %120, %30, %cst_45 {dimension_numbers = #tpu.dot_dimension_numbers<[1], [0], [0], [1], [0, 0, 1, 1], [], []>} : vector<32x32xf32>, vector<32x32xf32>, vector<32x32xf32> -> vector<32x32xf32>
    %122 = vector.broadcast %38 : vector<1x32xf32> to vector<32x32xf32>
    %123 = arith.addf %121, %122 : vector<32x32xf32>
    %124 = arith.addf %123, %4 : vector<32x32xf32>
    %cst_46 = arith.constant dense<0.000000e+00> : vector<32xf32>
    %125 = vector.multi_reduction <add>, %124, %cst_46 [1] : vector<32x32xf32> to vector<32xf32>
    %126 = vector.shape_cast %125 : vector<32xf32> to vector<32x1xf32>
    %cst_47 = arith.constant 3.200000e+01 : f32
    %127 = vector.broadcast %cst_47 : f32 to vector<32x1xf32>
    %128 = arith.divf %126, %127 : vector<32x1xf32>
    %129 = vector.broadcast %128 : vector<32x1xf32> to vector<32x32xf32>
    %130 = arith.subf %124, %129 : vector<32x32xf32>
    %131 = arith.mulf %130, %130 : vector<32x32xf32>
    %cst_48 = arith.constant dense<0.000000e+00> : vector<32xf32>
    %132 = vector.multi_reduction <add>, %131, %cst_48 [1] : vector<32x32xf32> to vector<32xf32>
    %133 = vector.shape_cast %132 : vector<32xf32> to vector<32x1xf32>
    %cst_49 = arith.constant 3.200000e+01 : f32
    %134 = vector.broadcast %cst_49 : f32 to vector<32x1xf32>
    %135 = arith.divf %133, %134 : vector<32x1xf32>
    %136 = vector.broadcast %128 : vector<32x1xf32> to vector<32x32xf32>
    %137 = arith.subf %124, %136 : vector<32x32xf32>
    %cst_50 = arith.constant 9.99999997E-7 : f32
    %138 = vector.broadcast %cst_50 : f32 to vector<32x1xf32>
    %139 = arith.addf %135, %138 : vector<32x1xf32>
    %140 = math.rsqrt %139 : vector<32x1xf32>
    %141 = vector.broadcast %140 : vector<32x1xf32> to vector<32x32xf32>
    %142 = arith.mulf %137, %141 : vector<32x32xf32>
    %143 = vector.broadcast %39 : vector<1x32xf32> to vector<32x32xf32>
    %144 = arith.mulf %142, %143 : vector<32x32xf32>
    %145 = vector.broadcast %40 : vector<1x32xf32> to vector<32x32xf32>
    %146 = arith.addf %144, %145 : vector<32x32xf32>
    %cst_51 = arith.constant dense<0.000000e+00> : vector<32x64xf32>
    %147 = tpu.matmul %146, %32, %cst_51 {dimension_numbers = #tpu.dot_dimension_numbers<[1], [0], [0], [1], [0, 0, 1, 1], [], []>} : vector<32x32xf32>, vector<32x64xf32>, vector<32x64xf32> -> vector<32x64xf32>
    %148 = vector.broadcast %41 : vector<1x64xf32> to vector<32x64xf32>
    %149 = arith.addf %147, %148 : vector<32x64xf32>
    %cst_52 = arith.constant 5.000000e-01 : f32
    %150 = vector.broadcast %cst_52 : f32 to vector<32x64xf32>
    %151 = arith.mulf %150, %149 : vector<32x64xf32>
    %cst_53 = arith.constant 0.707106769 : f32
    %152 = vector.broadcast %cst_53 : f32 to vector<32x64xf32>
    %153 = arith.mulf %149, %152 : vector<32x64xf32>
    %154 = math.erf %153 : vector<32x64xf32>
    %cst_54 = arith.constant 1.000000e+00 : f32
    %155 = vector.broadcast %cst_54 : f32 to vector<32x64xf32>
    %156 = arith.addf %155, %154 : vector<32x64xf32>
    %157 = arith.mulf %151, %156 : vector<32x64xf32>
    %cst_55 = arith.constant dense<0.000000e+00> : vector<32x32xf32>
    %158 = tpu.matmul %157, %34, %cst_55 {dimension_numbers = #tpu.dot_dimension_numbers<[1], [0], [0], [1], [0, 0, 1, 1], [], []>} : vector<32x64xf32>, vector<64x32xf32>, vector<32x32xf32> -> vector<32x32xf32>
    %159 = vector.broadcast %42 : vector<1x32xf32> to vector<32x32xf32>
    %160 = arith.addf %158, %159 : vector<32x32xf32>
    %161 = arith.addf %160, %124 : vector<32x32xf32>
    %c1_56 = arith.constant 1 : index
    %c0_57 = arith.constant 0 : index
    %c0_58 = arith.constant 0 : index
    %162 = vector.load %arg4[%c1_56, %c0_57, %c0_58] : memref<2x160x96xf32, #tpu.memory_space<vmem>>, vector<1x32x96xf32>
    %163 = vector.shape_cast %162 : vector<1x32x96xf32> to vector<32x96xf32>
    %c1_59 = arith.constant 1 : index
    %c32_60 = arith.constant 32 : index
    %c0_61 = arith.constant 0 : index
    %164 = vector.load %arg4[%c1_59, %c32_60, %c0_61] : memref<2x160x96xf32, #tpu.memory_space<vmem>>, vector<1x32x32xf32>
    %165 = vector.shape_cast %164 : vector<1x32x32xf32> to vector<32x32xf32>
    %c1_62 = arith.constant 1 : index
    %c64_63 = arith.constant 64 : index
    %c0_64 = arith.constant 0 : index
    %166 = vector.load %arg4[%c1_62, %c64_63, %c0_64] : memref<2x160x96xf32, #tpu.memory_space<vmem>>, vector<1x32x64xf32>
    %167 = vector.shape_cast %166 : vector<1x32x64xf32> to vector<32x64xf32>
    %c1_65 = arith.constant 1 : index
    %c96_66 = arith.constant 96 : index
    %c0_67 = arith.constant 0 : index
    %168 = vector.load %arg4[%c1_65, %c96_66, %c0_67] : memref<2x160x96xf32, #tpu.memory_space<vmem>>, vector<1x64x32xf32>
    %169 = vector.shape_cast %168 : vector<1x64x32xf32> to vector<64x32xf32>
    %c8 = arith.constant 8 : index
    %c0_68 = arith.constant 0 : index
    %170 = vector.load %arg5[%c8, %c0_68] : memref<18x96xf32, #tpu.memory_space<vmem>>, vector<1x32xf32>
    %c9 = arith.constant 9 : index
    %c0_69 = arith.constant 0 : index
    %171 = vector.load %arg5[%c9, %c0_69] : memref<18x96xf32, #tpu.memory_space<vmem>>, vector<1x32xf32>
    %c10 = arith.constant 10 : index
    %c0_70 = arith.constant 0 : index
    %172 = vector.load %arg5[%c10, %c0_70] : memref<18x96xf32, #tpu.memory_space<vmem>>, vector<1x96xf32>
    %c11 = arith.constant 11 : index
    %c0_71 = arith.constant 0 : index
    %173 = vector.load %arg5[%c11, %c0_71] : memref<18x96xf32, #tpu.memory_space<vmem>>, vector<1x32xf32>
    %c12 = arith.constant 12 : index
    %c0_72 = arith.constant 0 : index
    %174 = vector.load %arg5[%c12, %c0_72] : memref<18x96xf32, #tpu.memory_space<vmem>>, vector<1x32xf32>
    %c13 = arith.constant 13 : index
    %c0_73 = arith.constant 0 : index
    %175 = vector.load %arg5[%c13, %c0_73] : memref<18x96xf32, #tpu.memory_space<vmem>>, vector<1x32xf32>
    %c14 = arith.constant 14 : index
    %c0_74 = arith.constant 0 : index
    %176 = vector.load %arg5[%c14, %c0_74] : memref<18x96xf32, #tpu.memory_space<vmem>>, vector<1x64xf32>
    %c15 = arith.constant 15 : index
    %c0_75 = arith.constant 0 : index
    %177 = vector.load %arg5[%c15, %c0_75] : memref<18x96xf32, #tpu.memory_space<vmem>>, vector<1x32xf32>
    %cst_76 = arith.constant dense<0.000000e+00> : vector<32xf32>
    %178 = vector.multi_reduction <add>, %161, %cst_76 [1] : vector<32x32xf32> to vector<32xf32>
    %179 = vector.shape_cast %178 : vector<32xf32> to vector<32x1xf32>
    %cst_77 = arith.constant 3.200000e+01 : f32
    %180 = vector.broadcast %cst_77 : f32 to vector<32x1xf32>
    %181 = arith.divf %179, %180 : vector<32x1xf32>
    %182 = vector.broadcast %181 : vector<32x1xf32> to vector<32x32xf32>
    %183 = arith.subf %161, %182 : vector<32x32xf32>
    %184 = arith.mulf %183, %183 : vector<32x32xf32>
    %cst_78 = arith.constant dense<0.000000e+00> : vector<32xf32>
    %185 = vector.multi_reduction <add>, %184, %cst_78 [1] : vector<32x32xf32> to vector<32xf32>
    %186 = vector.shape_cast %185 : vector<32xf32> to vector<32x1xf32>
    %cst_79 = arith.constant 3.200000e+01 : f32
    %187 = vector.broadcast %cst_79 : f32 to vector<32x1xf32>
    %188 = arith.divf %186, %187 : vector<32x1xf32>
    %189 = vector.broadcast %181 : vector<32x1xf32> to vector<32x32xf32>
    %190 = arith.subf %161, %189 : vector<32x32xf32>
    %cst_80 = arith.constant 9.99999997E-7 : f32
    %191 = vector.broadcast %cst_80 : f32 to vector<32x1xf32>
    %192 = arith.addf %188, %191 : vector<32x1xf32>
    %193 = math.rsqrt %192 : vector<32x1xf32>
    %194 = vector.broadcast %193 : vector<32x1xf32> to vector<32x32xf32>
    %195 = arith.mulf %190, %194 : vector<32x32xf32>
    %196 = vector.broadcast %170 : vector<1x32xf32> to vector<32x32xf32>
    %197 = arith.mulf %195, %196 : vector<32x32xf32>
    %198 = vector.broadcast %171 : vector<1x32xf32> to vector<32x32xf32>
    %199 = arith.addf %197, %198 : vector<32x32xf32>
    %cst_81 = arith.constant dense<0.000000e+00> : vector<32x96xf32>
    %200 = tpu.matmul %199, %163, %cst_81 {dimension_numbers = #tpu.dot_dimension_numbers<[1], [0], [0], [1], [0, 0, 1, 1], [], []>} : vector<32x32xf32>, vector<32x96xf32>, vector<32x96xf32> -> vector<32x96xf32>
    %201 = vector.broadcast %172 : vector<1x96xf32> to vector<32x96xf32>
    %202 = arith.addf %200, %201 : vector<32x96xf32>
    %203 = vector.extract_strided_slice %202 {offsets = [0, 0], sizes = [32, 32], strides = [1, 1]} : vector<32x96xf32> to vector<32x32xf32>
    %cst_82 = arith.constant 0.353553385 : f32
    %204 = vector.broadcast %cst_82 : f32 to vector<32x32xf32>
    %205 = arith.mulf %203, %204 : vector<32x32xf32>
    %206 = vector.extract_strided_slice %202 {offsets = [0, 32], sizes = [32, 32], strides = [1, 1]} : vector<32x96xf32> to vector<32x32xf32>
    %207 = vector.extract_strided_slice %202 {offsets = [0, 64], sizes = [32, 32], strides = [1, 1]} : vector<32x96xf32> to vector<32x32xf32>
    %208 = tpu.concatenate %206, %206, %206, %206 in 0 : vector<32x32xf32>, vector<32x32xf32>, vector<32x32xf32>, vector<32x32xf32> -> vector<128x32xf32>
    %209 = arith.mulf %208, %14 : vector<128x32xf32>
    %210 = tpu.concatenate %207, %207, %207, %207 in 0 : vector<32x32xf32>, vector<32x32xf32>, vector<32x32xf32>, vector<32x32xf32> -> vector<128x32xf32>
    %211 = arith.mulf %210, %14 : vector<128x32xf32>
    %cst_83 = arith.constant dense<0.000000e+00> : vector<32x128xf32>
    %212 = tpu.matmul %205, %209, %cst_83 {dimension_numbers = #tpu.dot_dimension_numbers<[1], [1], [0], [0], [0, 0, 1, 0], [], []>} : vector<32x32xf32>, vector<128x32xf32>, vector<32x128xf32> -> vector<32x128xf32>
    %213 = arith.addf %212, %26 : vector<32x128xf32>
    %214 = vector.extract_strided_slice %213 {offsets = [0, 0], sizes = [32, 32], strides = [1, 1]} : vector<32x128xf32> to vector<32x32xf32>
    %cst_84 = arith.constant dense<0xFF800000> : vector<32xf32>
    %215 = vector.multi_reduction <maximumf>, %214, %cst_84 [1] : vector<32x32xf32> to vector<32xf32>
    %216 = vector.shape_cast %215 : vector<32xf32> to vector<32x1xf32>
    %217 = vector.broadcast %216 : vector<32x1xf32> to vector<32x32xf32>
    %218 = arith.subf %214, %217 : vector<32x32xf32>
    %219 = math.exp %218 : vector<32x32xf32>
    %cst_85 = arith.constant dense<0.000000e+00> : vector<32xf32>
    %220 = vector.multi_reduction <add>, %219, %cst_85 [1] : vector<32x32xf32> to vector<32xf32>
    %221 = vector.shape_cast %220 : vector<32xf32> to vector<32x1xf32>
    %222 = vector.broadcast %221 : vector<32x1xf32> to vector<32x32xf32>
    %223 = arith.divf %219, %222 : vector<32x32xf32>
    %224 = vector.extract_strided_slice %213 {offsets = [0, 32], sizes = [32, 32], strides = [1, 1]} : vector<32x128xf32> to vector<32x32xf32>
    %cst_86 = arith.constant dense<0xFF800000> : vector<32xf32>
    %225 = vector.multi_reduction <maximumf>, %224, %cst_86 [1] : vector<32x32xf32> to vector<32xf32>
    %226 = vector.shape_cast %225 : vector<32xf32> to vector<32x1xf32>
    %227 = vector.broadcast %226 : vector<32x1xf32> to vector<32x32xf32>
    %228 = arith.subf %224, %227 : vector<32x32xf32>
    %229 = math.exp %228 : vector<32x32xf32>
    %cst_87 = arith.constant dense<0.000000e+00> : vector<32xf32>
    %230 = vector.multi_reduction <add>, %229, %cst_87 [1] : vector<32x32xf32> to vector<32xf32>
    %231 = vector.shape_cast %230 : vector<32xf32> to vector<32x1xf32>
    %232 = vector.broadcast %231 : vector<32x1xf32> to vector<32x32xf32>
    %233 = arith.divf %229, %232 : vector<32x32xf32>
    %234 = vector.extract_strided_slice %213 {offsets = [0, 64], sizes = [32, 32], strides = [1, 1]} : vector<32x128xf32> to vector<32x32xf32>
    %cst_88 = arith.constant dense<0xFF800000> : vector<32xf32>
    %235 = vector.multi_reduction <maximumf>, %234, %cst_88 [1] : vector<32x32xf32> to vector<32xf32>
    %236 = vector.shape_cast %235 : vector<32xf32> to vector<32x1xf32>
    %237 = vector.broadcast %236 : vector<32x1xf32> to vector<32x32xf32>
    %238 = arith.subf %234, %237 : vector<32x32xf32>
    %239 = math.exp %238 : vector<32x32xf32>
    %cst_89 = arith.constant dense<0.000000e+00> : vector<32xf32>
    %240 = vector.multi_reduction <add>, %239, %cst_89 [1] : vector<32x32xf32> to vector<32xf32>
    %241 = vector.shape_cast %240 : vector<32xf32> to vector<32x1xf32>
    %242 = vector.broadcast %241 : vector<32x1xf32> to vector<32x32xf32>
    %243 = arith.divf %239, %242 : vector<32x32xf32>
    %244 = vector.extract_strided_slice %213 {offsets = [0, 96], sizes = [32, 32], strides = [1, 1]} : vector<32x128xf32> to vector<32x32xf32>
    %cst_90 = arith.constant dense<0xFF800000> : vector<32xf32>
    %245 = vector.multi_reduction <maximumf>, %244, %cst_90 [1] : vector<32x32xf32> to vector<32xf32>
    %246 = vector.shape_cast %245 : vector<32xf32> to vector<32x1xf32>
    %247 = vector.broadcast %246 : vector<32x1xf32> to vector<32x32xf32>
    %248 = arith.subf %244, %247 : vector<32x32xf32>
    %249 = math.exp %248 : vector<32x32xf32>
    %cst_91 = arith.constant dense<0.000000e+00> : vector<32xf32>
    %250 = vector.multi_reduction <add>, %249, %cst_91 [1] : vector<32x32xf32> to vector<32xf32>
    %251 = vector.shape_cast %250 : vector<32xf32> to vector<32x1xf32>
    %252 = vector.broadcast %251 : vector<32x1xf32> to vector<32x32xf32>
    %253 = arith.divf %249, %252 : vector<32x32xf32>
    %254 = tpu.concatenate %223, %233, %243, %253 in 1 : vector<32x32xf32>, vector<32x32xf32>, vector<32x32xf32>, vector<32x32xf32> -> vector<32x128xf32>
    %cst_92 = arith.constant dense<0.000000e+00> : vector<32x32xf32>
    %255 = tpu.matmul %254, %211, %cst_92 {dimension_numbers = #tpu.dot_dimension_numbers<[1], [0], [0], [1], [0, 0, 1, 1], [], []>} : vector<32x128xf32>, vector<128x32xf32>, vector<32x32xf32> -> vector<32x32xf32>
    %cst_93 = arith.constant dense<0.000000e+00> : vector<32x32xf32>
    %256 = tpu.matmul %255, %165, %cst_93 {dimension_numbers = #tpu.dot_dimension_numbers<[1], [0], [0], [1], [0, 0, 1, 1], [], []>} : vector<32x32xf32>, vector<32x32xf32>, vector<32x32xf32> -> vector<32x32xf32>
    %257 = vector.broadcast %173 : vector<1x32xf32> to vector<32x32xf32>
    %258 = arith.addf %256, %257 : vector<32x32xf32>
    %259 = arith.addf %258, %161 : vector<32x32xf32>
    %cst_94 = arith.constant dense<0.000000e+00> : vector<32xf32>
    %260 = vector.multi_reduction <add>, %259, %cst_94 [1] : vector<32x32xf32> to vector<32xf32>
    %261 = vector.shape_cast %260 : vector<32xf32> to vector<32x1xf32>
    %cst_95 = arith.constant 3.200000e+01 : f32
    %262 = vector.broadcast %cst_95 : f32 to vector<32x1xf32>
    %263 = arith.divf %261, %262 : vector<32x1xf32>
    %264 = vector.broadcast %263 : vector<32x1xf32> to vector<32x32xf32>
    %265 = arith.subf %259, %264 : vector<32x32xf32>
    %266 = arith.mulf %265, %265 : vector<32x32xf32>
    %cst_96 = arith.constant dense<0.000000e+00> : vector<32xf32>
    %267 = vector.multi_reduction <add>, %266, %cst_96 [1] : vector<32x32xf32> to vector<32xf32>
    %268 = vector.shape_cast %267 : vector<32xf32> to vector<32x1xf32>
    %cst_97 = arith.constant 3.200000e+01 : f32
    %269 = vector.broadcast %cst_97 : f32 to vector<32x1xf32>
    %270 = arith.divf %268, %269 : vector<32x1xf32>
    %271 = vector.broadcast %263 : vector<32x1xf32> to vector<32x32xf32>
    %272 = arith.subf %259, %271 : vector<32x32xf32>
    %cst_98 = arith.constant 9.99999997E-7 : f32
    %273 = vector.broadcast %cst_98 : f32 to vector<32x1xf32>
    %274 = arith.addf %270, %273 : vector<32x1xf32>
    %275 = math.rsqrt %274 : vector<32x1xf32>
    %276 = vector.broadcast %275 : vector<32x1xf32> to vector<32x32xf32>
    %277 = arith.mulf %272, %276 : vector<32x32xf32>
    %278 = vector.broadcast %174 : vector<1x32xf32> to vector<32x32xf32>
    %279 = arith.mulf %277, %278 : vector<32x32xf32>
    %280 = vector.broadcast %175 : vector<1x32xf32> to vector<32x32xf32>
    %281 = arith.addf %279, %280 : vector<32x32xf32>
    %cst_99 = arith.constant dense<0.000000e+00> : vector<32x64xf32>
    %282 = tpu.matmul %281, %167, %cst_99 {dimension_numbers = #tpu.dot_dimension_numbers<[1], [0], [0], [1], [0, 0, 1, 1], [], []>} : vector<32x32xf32>, vector<32x64xf32>, vector<32x64xf32> -> vector<32x64xf32>
    %283 = vector.broadcast %176 : vector<1x64xf32> to vector<32x64xf32>
    %284 = arith.addf %282, %283 : vector<32x64xf32>
    %cst_100 = arith.constant 5.000000e-01 : f32
    %285 = vector.broadcast %cst_100 : f32 to vector<32x64xf32>
    %286 = arith.mulf %285, %284 : vector<32x64xf32>
    %cst_101 = arith.constant 0.707106769 : f32
    %287 = vector.broadcast %cst_101 : f32 to vector<32x64xf32>
    %288 = arith.mulf %284, %287 : vector<32x64xf32>
    %289 = math.erf %288 : vector<32x64xf32>
    %cst_102 = arith.constant 1.000000e+00 : f32
    %290 = vector.broadcast %cst_102 : f32 to vector<32x64xf32>
    %291 = arith.addf %290, %289 : vector<32x64xf32>
    %292 = arith.mulf %286, %291 : vector<32x64xf32>
    %cst_103 = arith.constant dense<0.000000e+00> : vector<32x32xf32>
    %293 = tpu.matmul %292, %169, %cst_103 {dimension_numbers = #tpu.dot_dimension_numbers<[1], [0], [0], [1], [0, 0, 1, 1], [], []>} : vector<32x64xf32>, vector<64x32xf32>, vector<32x32xf32> -> vector<32x32xf32>
    %294 = vector.broadcast %177 : vector<1x32xf32> to vector<32x32xf32>
    %295 = arith.addf %293, %294 : vector<32x32xf32>
    %296 = arith.addf %295, %259 : vector<32x32xf32>
    %c16 = arith.constant 16 : index
    %c0_104 = arith.constant 0 : index
    %297 = vector.load %arg5[%c16, %c0_104] : memref<18x96xf32, #tpu.memory_space<vmem>>, vector<1x32xf32>
    %c17 = arith.constant 17 : index
    %c0_105 = arith.constant 0 : index
    %298 = vector.load %arg5[%c17, %c0_105] : memref<18x96xf32, #tpu.memory_space<vmem>>, vector<1x32xf32>
    %cst_106 = arith.constant dense<0.000000e+00> : vector<32xf32>
    %299 = vector.multi_reduction <add>, %296, %cst_106 [1] : vector<32x32xf32> to vector<32xf32>
    %300 = vector.shape_cast %299 : vector<32xf32> to vector<32x1xf32>
    %cst_107 = arith.constant 3.200000e+01 : f32
    %301 = vector.broadcast %cst_107 : f32 to vector<32x1xf32>
    %302 = arith.divf %300, %301 : vector<32x1xf32>
    %303 = vector.broadcast %302 : vector<32x1xf32> to vector<32x32xf32>
    %304 = arith.subf %296, %303 : vector<32x32xf32>
    %305 = arith.mulf %304, %304 : vector<32x32xf32>
    %cst_108 = arith.constant dense<0.000000e+00> : vector<32xf32>
    %306 = vector.multi_reduction <add>, %305, %cst_108 [1] : vector<32x32xf32> to vector<32xf32>
    %307 = vector.shape_cast %306 : vector<32xf32> to vector<32x1xf32>
    %cst_109 = arith.constant 3.200000e+01 : f32
    %308 = vector.broadcast %cst_109 : f32 to vector<32x1xf32>
    %309 = arith.divf %307, %308 : vector<32x1xf32>
    %310 = vector.broadcast %302 : vector<32x1xf32> to vector<32x32xf32>
    %311 = arith.subf %296, %310 : vector<32x32xf32>
    %cst_110 = arith.constant 9.99999997E-7 : f32
    %312 = vector.broadcast %cst_110 : f32 to vector<32x1xf32>
    %313 = arith.addf %309, %312 : vector<32x1xf32>
    %314 = math.rsqrt %313 : vector<32x1xf32>
    %315 = vector.broadcast %314 : vector<32x1xf32> to vector<32x32xf32>
    %316 = arith.mulf %311, %315 : vector<32x32xf32>
    %317 = vector.broadcast %297 : vector<1x32xf32> to vector<32x32xf32>
    %318 = arith.mulf %316, %317 : vector<32x32xf32>
    %319 = vector.broadcast %298 : vector<1x32xf32> to vector<32x32xf32>
    %320 = arith.addf %318, %319 : vector<32x32xf32>
    %321 = vector.extract_strided_slice %320 {offsets = [0, 0], sizes = [8, 32], strides = [1, 1]} : vector<32x32xf32> to vector<8x32xf32>
    %322 = vector.extract_strided_slice %320 {offsets = [8, 0], sizes = [8, 32], strides = [1, 1]} : vector<32x32xf32> to vector<8x32xf32>
    %323 = vector.extract_strided_slice %320 {offsets = [16, 0], sizes = [8, 32], strides = [1, 1]} : vector<32x32xf32> to vector<8x32xf32>
    %324 = vector.extract_strided_slice %320 {offsets = [24, 0], sizes = [8, 32], strides = [1, 1]} : vector<32x32xf32> to vector<8x32xf32>
    %325 = tpu.concatenate %321, %322, %323, %324 in 1 : vector<8x32xf32>, vector<8x32xf32>, vector<8x32xf32>, vector<8x32xf32> -> vector<8x128xf32>
    %c0_111 = arith.constant 0 : index
    %c0_112 = arith.constant 0 : index
    %326 = vector.load %arg6[%c0_111, %c0_112] : memref<8x128xf32, #tpu.memory_space<vmem>>, vector<8x128xf32>
    tpu.vector_store %arg6[%c0_111, %c0_112], %325 {strides = array<i32>} : memref<8x128xf32, #tpu.memory_space<vmem>>, vector<8x128xf32>,
    return
  }
  func.func @transform_0(%arg0: i32) -> (i32, i32) {
    %c0_i32 = arith.constant 0 : i32
    %c0_i32_0 = arith.constant 0 : i32
    %c0_i32_1 = arith.constant 0 : i32
    return %c0_i32, %c0_i32_0 : i32, i32
  }
  func.func @transform_1(%arg0: i32) -> (i32, i32) {
    %c0_i32 = arith.constant 0 : i32
    %c0_i32_0 = arith.constant 0 : i32
    %c0_i32_1 = arith.constant 0 : i32
    return %c0_i32, %c0_i32_0 : i32, i32
  }
  func.func @transform_2(%arg0: i32) -> (i32, i32) {
    %c0_i32 = arith.constant 0 : i32
    %c0_i32_0 = arith.constant 0 : i32
    %c0_i32_1 = arith.constant 0 : i32
    return %c0_i32, %c0_i32_0 : i32, i32
  }
  func.func @transform_3(%arg0: i32) -> (i32, i32, i32) {
    %c0_i32 = arith.constant 0 : i32
    %c0_i32_0 = arith.constant 0 : i32
    %c0_i32_1 = arith.constant 0 : i32
    %c0_i32_2 = arith.constant 0 : i32
    return %c0_i32, %c0_i32_0, %c0_i32_1 : i32, i32, i32
  }
  func.func @transform_4(%arg0: i32) -> (i32, i32) {
    %c0_i32 = arith.constant 0 : i32
    %c0_i32_0 = arith.constant 0 : i32
    %c0_i32_1 = arith.constant 0 : i32
    return %c0_i32, %c0_i32_0 : i32, i32
  }
  func.func @transform_5(%arg0: i32) -> (i32, i32) {
    %c0_i32 = arith.constant 0 : i32
    %c0_i32_0 = arith.constant 0 : i32
    %c0_i32_1 = arith.constant 0 : i32
    return %c0_i32, %c0_i32_0 : i32, i32
  }
}

</mosaic_0001>

<bundles_post_ra>
// kernel: transformer_forward.1
= control target key start
LH: loop header
LB: loop body
LE: loop exit
PB: predicated region body
PF: predicated region fallthrough
CT: control target
= control target key end

     0   :  { %vm31_vm0 = vcmask 195584   ;;  %vm239_vm1 = vcmask 261120   ;;  %v129_v50 = vlaneseq  ;;  %s4048_s20 = smov 32   ;;  %s4049_s27 = smov 96   ;;  %s5343_s1 = inlined_call_operand.vmem [shape: f32[24,32], index: 1, kind: input, shape index: {}]   ;;  %s5344_s0 = inlined_call_operand.vmem [shape: f32[32,24], index: 0, kind: input, shape index: {}]   ;;  %s5345_s2 = inlined_call_operand.vmem [shape: f32[32,32], index: 2, kind: input, shape index: {}]   ;;  %s5346_s3 = inlined_call_operand.vmem [shape: f32[2,160,96], index: 3, kind: input, shape index: {}]   ;;  %s5347_s4 = inlined_call_operand.vmem [shape: f32[18,96], index: 4, kind: input, shape index: {}]   ;;  %s5348_s5 = inlined_call_operand.vmem [shape: f32[8,128], index: 5, kind: output, shape index: {}]  }
   0x1   :  { %v24_v0 = vld [vmem:[%s5343_s1] sm:$0xff]  ;;  %v25_v1 = vld [vmem:[%s5343_s1 + $0x8] sm:$0xff]  ;;  %v26_v4 = vld [vmem:[%s5343_s1 + $0x10] sm:$0xff]  ;;  %s4050_s28 = smov 64  }
   0x2   :  { %v3374_v2 = vpack.c.bf16 %v25_v1, %v24_v0  ;;  %v20_v3 = vld [vmem:[%s5344_s0] sm:$0xff]  ;;  %v21_v5 = vld [vmem:[%s5344_s0 + $0x8] sm:$0xff]  ;;  %v22_v6 = vld [vmem:[%s5344_s0 + $0x10] sm:$0xff]  ;;  %v4171_v51 = vshrl.u32 %v129_v50, 7  ;;  %v4173_v52 = vand.u32 127, %v129_v50 }
   0x3   :  { %3088 = vmatprep.mubr.msk.f32.mxu0 %vm31_vm0, %v20_v3  ;;  %v23_v7 = vld [vmem:[%s5344_s0 + $0x18] sm:$0xff]  ;;  %v27_v8 = vld [vmem:[%s5345_s2] sm:$0xff]  ;;  %v28_v10 = vld [vmem:[%s5345_s2 + $0x8] sm:$0xff] }
   0x4   :  { %3375 = vmatprep.subr.bf16.mxu0 %v3374_v2  ;;  %v30_v13 = vld [vmem:[%s5345_s2 + $0x18] sm:$0xff]  ;;  %v29_v14 = vld [vmem:[%s5345_s2 + $0x10] sm:$0xff]  ;;  %v211_v44 = vld [vmem:[%s5346_s3] sm:$0xff]  ;;  %v4176_v53 = vadd.s32 16, %v4171_v51  ;;  %v4179_v54 = vadd.s32 24, %v4171_v51  ;;  %v4182_v55 = vshra.s32 %v4173_v52, 3 }
   0x5   :  { %3377 = vmatpush3.bf16.msra.mxu0 %v3374_v2  ;;  %v212_v45 = vld [vmem:[%s5346_s3 + $0x8] sm:$0xff]  ;;  %v213_v46 = vld [vmem:[%s5346_s3 + $0x10] sm:$0xff]  ;;  %v214_v48 = vld [vmem:[%s5346_s3 + $0x18] sm:$0xff]  ;;  %v4185_v56 = vadd.s32 8, %v4171_v51  ;;  %v149_v57 = vshra.s32 %v4171_v51, 5  ;;  %v134_v58 = vadd.s32 32, %v4171_v51 }
   0x6   :  { %3086 = vmatprep.subr.mxu0 %v26_v4  ;;  %v3378_v47 = vpack.c.bf16 %v212_v45, %v211_v44  ;;  %v3382_v49 = vpack.c.bf16 %v214_v48, %v213_v46  ;;  %v135_v59 = vadd.s32 40, %v4171_v51  ;;  %v138_v60 = vadd.s32 64, %v4171_v51 }
   0x7   :  { %v151_v61 = vshra.s32 %v4176_v53, 5  ;;  %v152_v62 = vshra.s32 %v4179_v54, 5  ;;  %v150_v63 = vshra.s32 %v4185_v56, 5  ;;  %v139_v0 = vadd.s32 72, %v4171_v51 }
   0x8   :  { %3379 = vmatprep.subr.bf16.mxu1 %v3378_v47  ;;  %vm165_vm2 = vcmp.eq.s32.totalorder %v4182_v55, %v149_v57  ;;  %v153_v1 = vshra.s32 %v134_v58, 5  ;;  %v154_v2 = vshra.s32 %v135_v59, 5  ;;  %v157_v3 = vshra.s32 %v138_v60, 5 }
   0x9   :  { %3087 = vmatpush3.msra.mxu0 %v26_v4  ;;  %3381 = vmatpush3.bf16.msra.mxu1 %v3378_v47  ;;  %vm167_vm3 = vcmp.eq.s32.totalorder %v4182_v55, %v151_v61  ;;  %vm168_vm4 = vcmp.eq.s32.totalorder %v4182_v55, %v152_v62  ;;  %vm166_vm5 = vcmp.eq.s32.totalorder %v4182_v55, %v150_v63  ;;  %v4047_v4 = vmov 0.0  }
   0xa   :  { %3089 = vmatmul.mubr.msk.f32.vlgmr.msra.gmra.mrb[0].mxu0 %vm31_vm0, %v21_v5  ;;  %3383 = vmatprep.subr.bf16.mxu1 %v3382_v49  ;;  %v181_v5 = vsel %vm165_vm2, 1.0, %v4047_v4  ;;  %vm169_vm6 = vcmp.eq.s32.totalorder %v4182_v55, %v153_v1  ;;  %vm170_vm7 = vcmp.eq.s32.totalorder %v4182_v55, %v154_v2  ;;  %vm173_vm8 = vcmp.eq.s32.totalorder %v4182_v55, %v157_v3 }
   0xb   :  { %3091 = vmatprep.mubr.msk.f32.mxu0 %vm31_vm0, %v22_v6  ;;  %v183_v6 = vsel %vm167_vm3, 1.0, %v4047_v4  ;;  %v144_v46 = vadd.s32 112, %v4171_v51  ;;  %v145_v47 = vadd.s32 120, %v4171_v51  ;;  %vm4384_vm3 = vmpackc.low %vm239_vm1, %vm239_vm1 }
   0xd   :  { %3385 = vmatpush3.bf16.msra.mxu1 %v3382_v49  ;;  %v163_v49 = vshra.s32 %v144_v46, 5  ;;  %v164_v50 = vshra.s32 %v145_v47, 5 }
   0xe   :  { %3092 = vmatmul.mubr.msk.f32.gmra.mrb[2].mxu0 %vm31_vm0, %v23_v7  ;;  %v184_v7 = vsel %vm168_vm4, 1.0, %v4047_v4 }
   0xf   :  { %vm179_vm0 = vcmp.eq.s32.totalorder %v4182_v55, %v163_v49  ;;  %vm180_vm2 = vcmp.eq.s32.totalorder %v4182_v55, %v164_v50 }
  0x10   :  { %v195_v57 = vsel %vm179_vm0, 1.0, %v4047_v4  ;;  %v196_v58 = vsel %vm180_vm2, 1.0, %v4047_v4 }
  0x11   :  { %v4247_v59 = vpack.i.bf16 %v196_v58, %v195_v57 }
  0xdd   :  { %v3090_v9 = vpop.f32.mrb[0].mxu0 }
  0xde   :  { %v110_v11 = vpop.f32.mrb[1].mxu0  ;;  %v4121_v15 = vadd.f32 %v3090_v9, %v28_v10  ;;  %v4200_v9 = vpack.i.bf16 %v184_v7, %v183_v6 }
  0xdf   :  { %v4113_v12 = vadd.f32 %v110_v11, %v27_v8  ;;  %v182_v8 = vsel %vm166_vm5, 1.0, %v4047_v4  ;;  %v185_v11 = vsel %vm169_vm6, 1.0, %v4047_v4  ;;  %vm840_vm6 = vcmask 785920  }
  0xe0   :  { %v243_v22 = vsel %vm239_vm1, %v4121_v15, 0.0  ;;  %v4202_v10 = vpack.i.bf16 %v182_v8, %v181_v5  ;;  %v2813_v8 = vld [vmem:[%s5347_s4] ss:$0 sm:$0xff] }
  0xe1   :  { %v3093_v16 = vpop.f32.mrb[2].mxu0  ;;  %v240_v17 = vsel %vm239_vm1, %v4113_v12, 0.0 }
  0xe2   :  { %v120_v18 = vpop.f32.mrb[3].mxu0  ;;  %241 = vadd.xlane.f32.xlu0 %v240_v17  ;;  %v4125_v19 = vadd.f32 %v3093_v16, %v30_v13  ;;  %v186_v13 = vsel %vm170_vm7, 1.0, %v4047_v4  ;;  %v136_v16 = vadd.s32 48, %v4171_v51  ;;  %vm779_vm7 = vcmask 523520  }
  0xe3   :  { %v4127_v20 = vadd.f32 %v120_v18, %v29_v14  ;;  %v158_v14 = vshra.s32 %v139_v0, 5  ;;  %v4211_v17 = vpack.i.bf16 %v186_v13, %v185_v11  ;;  %v189_v18 = vsel %vm173_vm8, 1.0, %v4047_v4  ;;  %v2814_v13 = vld [vmem:[%s5347_s4 + $0x1] ss:$0 sm:$0xff] }
  0xe4   :  { %v249_v23 = vsel %vm239_vm1, %v4125_v19, 0.0  ;;  %vm901_vm8 = vcmask 1048320  }
  0xe5   :  { %v246_v21 = vsel %vm239_vm1, %v4127_v20, 0.0  ;;  %vm174_vm9 = vcmp.eq.s32.totalorder %v4182_v55, %v158_v14 }
  0xe6   :  { %247 = vadd.xlane.f32.xlu1 %v246_v21  ;;  %244 = vadd.xlane.f32.xlu0 %v243_v22  ;;  %v137_v21 = vadd.s32 56, %v4171_v51  ;;  %v142_v22 = vadd.s32 96, %v4171_v51 }
  0xea   :  { %250 = vadd.xlane.f32.xlu1 %v249_v23  ;;  %v155_v23 = vshra.s32 %v136_v16, 5 }
  0xec   :  { %vm171_vm10 = vcmp.eq.s32.totalorder %v4182_v55, %v155_v23 }
 0x16f   :  { %v242_v24 = vpop.xlane.xlu0 %241 }
 0x170   :  { %v253_v25 = vmul.f32 0.03125, %v242_v24  ;;  %v143_v24 = vadd.s32 104, %v4171_v51 }
 0x172   :  { %v4136_v26 = vsub.f32 %v4113_v12, %v253_v25  ;;  %v140_v25 = vadd.s32 80, %v4171_v51 }
 0x173   :  { %v248_v27 = vpop.xlane.xlu1 %247  ;;  %v245_v28 = vpop.xlane.xlu0 %244 }
 0x174   :  { %v255_v29 = vmul.f32 0.03125, %v248_v27  ;;  %v254_v30 = vmul.f32 0.03125, %v245_v28  ;;  %v261_v31 = vmul.f32 %v4136_v26, %v4136_v26  ;;  %v190_v27 = vsel %vm174_vm9, 1.0, %v4047_v4 }
 0x175   :  { %v156_v28 = vshra.s32 %v137_v21, 5 }
 0x176   :  { %v4141_v32 = vsub.f32 %v4127_v20, %v255_v29  ;;  %v4144_v33 = vsub.f32 %v4121_v15, %v254_v30  ;;  %v265_v34 = vsel %vm239_vm1, %v261_v31, 0.0  ;;  %v161_v29 = vshra.s32 %v142_v22, 5 }
 0x177   :  { %v251_v35 = vpop.xlane.xlu1 %250  ;;  %266 = vadd.xlane.f32.xlu0 %v265_v34  ;;  %v141_v30 = vadd.s32 88, %v4171_v51  ;;  %v4219_v31 = vpack.i.bf16 %v190_v27, %v189_v18  ;;  %v162_v34 = vshra.s32 %v143_v24, 5  ;;  %vm172_vm11 = vcmp.eq.s32.totalorder %v4182_v55, %v156_v28 }
 0x178   :  { %v256_v36 = vmul.f32 0.03125, %v251_v35  ;;  %v263_v37 = vmul.f32 %v4141_v32, %v4141_v32  ;;  %v262_v38 = vmul.f32 %v4144_v33, %v4144_v33  ;;  %v159_v35 = vshra.s32 %v140_v25, 5 }
 0x179   :  { %vm177_vm12 = vcmp.eq.s32.totalorder %v4182_v55, %v161_v29  ;;  %vm178_vm13 = vcmp.eq.s32.totalorder %v4182_v55, %v162_v34 }
 0x17a   :  { %v4152_v39 = vsub.f32 %v4125_v19, %v256_v36  ;;  %v271_v40 = vsel %vm239_vm1, %v263_v37, 0.0  ;;  %v268_v41 = vsel %vm239_vm1, %v262_v38, 0.0  ;;  %v187_v36 = vsel %vm171_vm10, 1.0, %v4047_v4 }
 0x17b   :  { %272 = vadd.xlane.f32.xlu0 %v271_v40  ;;  %269 = vadd.xlane.f32.xlu1 %v268_v41  ;;  %v160_v37 = vshra.s32 %v141_v30, 5  ;;  %v188_v38 = vsel %vm172_vm11, 1.0, %v4047_v4  ;;  %v193_v40 = vsel %vm177_vm12, 1.0, %v4047_v4  ;;  %vm175_vm14 = vcmp.eq.s32.totalorder %v4182_v55, %v159_v35 }
 0x17c   :  { %v264_v42 = vmul.f32 %v4152_v39, %v4152_v39  ;;  %v4230_v41 = vpack.i.bf16 %v188_v38, %v187_v36  ;;  %vm966_vm11 = vcmask 523264   ;;  %vm971_vm12 = vcmask 785408  }
 0x17d   :  { %vm176_vm15 = vcmp.eq.s32.totalorder %v4182_v55, %v160_v37 }
 0x17e   :  { %v274_v43 = vsel %vm239_vm1, %v264_v42, 0.0  ;;  %v194_v42 = vsel %vm178_vm13, 1.0, %v4047_v4  ;;  %v192_v45 = vsel %vm176_vm15, 1.0, %v4047_v4 }
 0x17f   :  { %275 = vadd.xlane.f32.xlu1 %v274_v43  ;;  %v191_v43 = vsel %vm175_vm14, 1.0, %v4047_v4  ;;  %v4233_v44 = vpack.i.bf16 %v194_v42, %v193_v40 }
 0x180   :  { %v4239_v48 = vpack.i.bf16 %v192_v45, %v191_v43 }
 0x190   :  { %3629 = vrot.lane.b32.xlu1 %v4200_v9, %s4048_s20 }
 0x191   :  { %3624 = vrot.lane.b32.xlu0 %v4202_v10, %s4048_s20 }
 0x194   :  { %3634 = vrot.lane.b32.xlu1 %v4211_v17, %s4048_s20 }
 0x195   :  { %3644 = vrot.lane.b32.xlu0 %v4219_v31, %s4048_s20 }
 0x198   :  { %3639 = vrot.lane.b32.xlu1 %v4230_v41, %s4048_s20 }
 0x199   :  { %3654 = vrot.lane.b32.xlu0 %v4233_v44, %s4048_s20 }
 0x19c   :  { %3649 = vrot.lane.b32.xlu1 %v4239_v48, %s4048_s20 }
 0x1a0   :  { %3659 = vrot.lane.b32.xlu1 %v4247_v59, %s4048_s20 }
 0x204   :  { %v267_v60 = vpop.xlane.xlu0 %266 }
 0x205   :  { %v277_v61 = vmul.f32 0.03125, %v267_v60 }
 0x207   :  { %v281_v62 = vadd.f32 1e-06, %v277_v61 }
 0x208   :  { %v270_v63 = vpop.xlane.xlu1 %269  ;;  %v273_v0 = vpop.xlane.xlu0 %272 }
 0x209   :  { %3863 = vrsqrt.f32 %v281_v62  ;;  %v278_v1 = vmul.f32 0.03125, %v270_v63  ;;  %v279_v2 = vmul.f32 0.03125, %v273_v0 }
 0x20b   :  { %v282_v3 = vadd.f32 1e-06, %v278_v1  ;;  %v283_v55 = vadd.f32 1e-06, %v279_v2 }
 0x20c   :  { %v276_v5 = vpop.xlane.xlu1 %275  ;;  %v4269_v35 = vpop.permute.xlu0 %3624 }
 0x20d   :  { %3865 = vrsqrt.f32 %v282_v3  ;;  %v280_v6 = vmul.f32 0.03125, %v276_v5  ;;  %v3627_v37 = vunpack.i.h.bf16 %v4269_v35  ;;  %v5376_v38 = vunpack.i.l.bf16 %v4269_v35 }
 0x20e   :  { %3867 = vrsqrt.f32 %v283_v55 }
 0x20f   :  { %v284_v4 = vadd.f32 1e-06, %v280_v6 }
 0x210   :  { %v4278_v40 = vpop.permute.xlu0 %3644 }
 0x211   :  { %3869 = vrsqrt.f32 %v284_v4  ;;  %v3647_v60 = vunpack.i.h.bf16 %v4278_v40  ;;  %v5371_v3 = vunpack.i.l.bf16 %v4278_v40 }
 0x213   :  { %v3864_v7 = vpop.eup %3863 }
 0x214   :  { %v289_v11 = vmul.f32 %v3864_v7, %v4136_v26  ;;  %v4303_v6 = vpop.permute.xlu0 %3654 }
 0x216   :  { %v297_v14 = vmul.f32 %v2813_v8, %v289_v11 }
 0x217   :  { %v3866_v16 = vpop.eup %3865 }
 0x218   :  { %v3868_v18 = vpop.eup %3867  ;;  %v305_v21 = vadd.f32 %v2814_v13, %v297_v14  ;;  %v290_v22 = vmul.f32 %v3866_v16, %v4144_v33  ;;  %v4265_v33 = vpop.permute.xlu1 %3629 }
 0x219   :  { %v291_v23 = vmul.f32 %v3868_v18, %v4141_v32  ;;  %v5362_v50 = vunpack.i.h.bf16 %v4265_v33  ;;  %v5356_v58 = vunpack.i.l.bf16 %v4265_v33 }
 0x21a   :  { %3102 = vmatprep.mubr.msk.f32.mxu1 %vm239_vm1, %v305_v21  ;;  %v298_v24 = vmul.f32 %v2813_v8, %v290_v22  ;;  %v3657_v21 = vunpack.i.h.bf16 %v4303_v6  ;;  %v5370_v22 = vunpack.i.l.bf16 %v4303_v6 }
 0x21b   :  { %v3870_v25 = vpop.eup %3869  ;;  %v299_v27 = vmul.f32 %v2813_v8, %v291_v23 }
 0x21c   :  { %v306_v28 = vadd.f32 %v2814_v13, %v298_v24  ;;  %v292_v26 = vmul.f32 %v3870_v25, %v4152_v39  ;;  %v4267_v32 = vpop.permute.xlu1 %3634  ;;  %v2815_v39 = vld [vmem:[%s5347_s4 + $0x2] ss:$0 sm:$0xff] }
 0x21d   :  { %v307_v29 = vadd.f32 %v2814_v13, %v299_v27  ;;  %v5377_v46 = vunpack.i.h.bf16 %v4267_v32  ;;  %v5369_v47 = vunpack.i.l.bf16 %v4267_v32 }
 0x21e   :  { %3103 = vmatmul.mubr.msk.f32.vlgmr.msra.gmra.mrb[0].mxu1 %vm239_vm1, %v306_v28  ;;  %v300_v30 = vmul.f32 %v2813_v8, %v292_v26 }
 0x21f   :  { %3105 = vmatprep.mubr.msk.f32.mxu1 %vm239_vm1, %v307_v29 }
 0x220   :  { %v308_v34 = vadd.f32 %v2814_v13, %v300_v30  ;;  %v4271_v36 = vpop.permute.xlu1 %3639 }
 0x221   :  { %v5361_v1 = vunpack.i.h.bf16 %v4271_v36  ;;  %v5353_v2 = vunpack.i.l.bf16 %v4271_v36 }
 0x222   :  { %3106 = vmatmul.mubr.msk.f32.gmra.mrb[2].mxu1 %vm239_vm1, %v308_v34 }
 0x224   :  { %v4292_v61 = vpop.permute.xlu1 %3649 }
 0x225   :  { %v5359_v14 = vunpack.i.h.bf16 %v4292_v61  ;;  %v5351_v16 = vunpack.i.l.bf16 %v4292_v61 }
 0x228   :  { %v4331_v25 = vpop.permute.xlu1 %3659 }
 0x229   :  { %v5349_v34 = vunpack.i.h.bf16 %v4331_v25 }
 0x2f1   :  { %v3104_v42 = vpop.f32.mrb[0].mxu1 }
 0x2f2   :  { %v4280_v43 = vadd.f32 %v3104_v42, %v2815_v39  ;;  %v391_v45 = vpop.f32.mrb[1].mxu1 }
 0x2f3   :  { %v4284_v49 = vadd.f32 %v2815_v39, %v391_v45 }
 0x2f4   :  { %v479_v57 = vmul.f32 %v3627_v37, %v4280_v43  ;;  %v483_v11 = vmul.f32 %v5377_v46, %v4280_v43  ;;  %v487_v24 = vmul.f32 %v3647_v60, %v4280_v43  ;;  %v491_v30 = vmul.f32 %v3657_v21, %v4280_v43 }
 0x2f5   :  { %v3107_v62 = vpop.f32.mrb[2].mxu1  ;;  %v410_v63 = vmul.f32 0.35355338, %v4284_v49  ;;  %v478_v0 = vmul.f32 %v5376_v38, %v4284_v49  ;;  %v482_v8 = vmul.f32 %v5369_v47, %v4284_v49  ;;  %v486_v23 = vmul.f32 %v5371_v3, %v4284_v49 }
 0x2f6   :  { %v4301_v55 = vadd.f32 %v3107_v62, %v2815_v39  ;;  %v401_v5 = vpop.f32.mrb[3].mxu1  ;;  %v490_v42 = vmul.f32 %v5370_v22, %v4284_v49 }
 0x2f7   :  { %v4305_v4 = vadd.f32 %v2815_v39, %v401_v5  ;;  %3140 = vmatprep.mubr.msk.f32.mxu0 %vm239_vm1, %v410_v63  ;;  %v3663_v7 = vpack.i.bf16 %v479_v57, %v478_v0  ;;  %v3673_v28 = vpack.i.bf16 %v483_v11, %v482_v8  ;;  %v5350_v39 = vunpack.i.l.bf16 %v4331_v25 }
 0x2f8   :  { %v481_v13 = vmul.f32 %v5362_v50, %v4301_v55  ;;  %v485_v29 = vmul.f32 %v5361_v1, %v4301_v55  ;;  %v3683_v57 = vpack.i.bf16 %v487_v24, %v486_v23  ;;  %v489_v63 = vmul.f32 %v5359_v14, %v4301_v55 }
 0x2f9   :  { %3664 = vrot.lane.b32.xlu0 %v3663_v7, %s4049_s27  ;;  %v480_v18 = vmul.f32 %v5356_v58, %v4305_v4  ;;  %v484_v26 = vmul.f32 %v5353_v2, %v4305_v4  ;;  %v488_v62 = vmul.f32 %v5351_v16, %v4305_v4  ;;  %v3693_v5 = vpack.i.bf16 %v491_v30, %v490_v42 }
 0x2fa   :  { %v492_v7 = vmul.f32 %v5350_v39, %v4305_v4  ;;  %v493_v8 = vmul.f32 %v5349_v34, %v4301_v55 }
 0x2fb   :  { %v3668_v27 = vpack.i.bf16 %v481_v13, %v480_v18  ;;  %v3678_v45 = vpack.i.bf16 %v485_v29, %v484_v26  ;;  %v3688_v0 = vpack.i.bf16 %v489_v63, %v488_v62 }
 0x2fc   :  { %v3698_v11 = vpack.i.bf16 %v493_v8, %v492_v7 }
 0x2fd   :  { %3669 = vrot.lane.b32.xlu1 %v3668_v27, %s4049_s27  ;;  %3674 = vrot.lane.b32.xlu0 %v3673_v28, %s4049_s27 }
 0x301   :  { %3679 = vrot.lane.b32.xlu1 %v3678_v45, %s4049_s27  ;;  %3684 = vrot.lane.b32.xlu0 %v3683_v57, %s4049_s27 }
 0x305   :  { %3689 = vrot.lane.b32.xlu1 %v3688_v0, %s4049_s27  ;;  %3694 = vrot.lane.b32.xlu0 %v3693_v5, %s4049_s27 }
 0x309   :  { %3699 = vrot.lane.b32.xlu1 %v3698_v11, %s4049_s27  ;;  %3704 = vrot.lane.b32.xlu0 %v4202_v10, %s4050_s28 }
 0x30d   :  { %3709 = vrot.lane.b32.xlu1 %v4200_v9, %s4050_s28  ;;  %3714 = vrot.lane.b32.xlu0 %v4211_v17, %s4050_s28 }
 0x311   :  { %3719 = vrot.lane.b32.xlu1 %v4230_v41, %s4050_s28  ;;  %3724 = vrot.lane.b32.xlu0 %v4219_v31, %s4050_s28 }
 0x315   :  { %3729 = vrot.lane.b32.xlu1 %v4239_v48, %s4050_s28  ;;  %3734 = vrot.lane.b32.xlu0 %v4233_v44, %s4050_s28 }
 0x319   :  { %3739 = vrot.lane.b32.xlu1 %v4247_v59, %s4050_s28 }
 0x36b   :  { %v3665_v10 = vpop.permute.xlu0 %3664 }
 0x36c   :  { %v3667_v9 = vunpack.i.h.bf16 %v3665_v10  ;;  %v3666_v13 = vunpack.i.l.bf16 %v3665_v10 }
 0x36e   :  { %v3386_v41 = vpack.c.bf16 %v3667_v9, %v3666_v13 }
 0x36f   :  { %v3670_v31 = vpop.permute.xlu1 %3669  ;;  %v3675_v18 = vpop.permute.xlu0 %3674 }
 0x370   :  { %v3672_v23 = vunpack.i.h.bf16 %v3670_v31  ;;  %v3671_v48 = vunpack.i.l.bf16 %v3670_v31  ;;  %3388 = vmatprep.subr.msk.bf16.mxu0 %vm4384_vm3, %v3386_v41  ;;  %v3677_v27 = vunpack.i.h.bf16 %v3675_v18  ;;  %v3676_v28 = vunpack.i.l.bf16 %v3675_v18 }
 0x371   :  { %3391 = vmatpush3.bf16.xpose.msk.msra.mxu0 %vm4384_vm3, %v3386_v41 }
 0x372   :  { %v3392_v44 = vpack.c.bf16 %v3672_v23, %v3671_v48  ;;  %v3398_v30 = vpack.c.bf16 %v3677_v27, %v3676_v28 }
 0x373   :  { %v3680_v59 = vpop.permute.xlu1 %3679  ;;  %v3685_v24 = vpop.permute.xlu0 %3684 }
 0x374   :  { %3394 = vmatprep.subr.msk.bf16.mxu0 %vm4384_vm3, %v3392_v44  ;;  %v3682_v42 = vunpack.i.h.bf16 %v3680_v59  ;;  %v3681_v45 = vunpack.i.l.bf16 %v3680_v59  ;;  %v3687_v27 = vunpack.i.h.bf16 %v3685_v24  ;;  %v3686_v28 = vunpack.i.l.bf16 %v3685_v24 }
 0x376   :  { %v3404_v8 = vpack.c.bf16 %v3682_v42, %v3681_v45 }
 0x377   :  { %v3690_v26 = vpop.permute.xlu1 %3689  ;;  %v4394_v29 = vpop.permute.xlu0 %3694 }
 0x379   :  { %3397 = vmatpush3.bf16.xpose.msk.msra.mxu0 %vm4384_vm3, %v3392_v44 }
 0x37a   :  { %3400 = vmatprep.subr.msk.bf16.mxu0 %vm4384_vm3, %v3398_v30 }
 0x37b   :  { %v4400_v57 = vpop.permute.xlu1 %3699  ;;  %v4402_v62 = vpop.permute.xlu0 %3704 }
 0x37c   :  { %v5367_v63 = vunpack.i.h.bf16 %v4402_v62  ;;  %v5368_v0 = vunpack.i.l.bf16 %v4402_v62 }
 0x37e   :  { %v543_v5 = vmul.f32 %v5367_v63, %v4280_v43  ;;  %v542_v7 = vmul.f32 %v5368_v0, %v4284_v49 }
 0x37f   :  { %v4412_v11 = vpop.permute.xlu1 %3709  ;;  %v4414_v10 = vpop.permute.xlu0 %3714 }
 0x380   :  { %v5360_v9 = vunpack.i.h.bf16 %v4412_v11  ;;  %v5352_v13 = vunpack.i.l.bf16 %v4412_v11  ;;  %v5365_v41 = vunpack.i.h.bf16 %v4414_v10  ;;  %v5366_v31 = vunpack.i.l.bf16 %v4414_v10 }
 0x381   :  { %3403 = vmatpush3.bf16.xpose.msk.msra.mxu0 %vm4384_vm3, %v3398_v30  ;;  %v3743_v18 = vpack.i.bf16 %v543_v5, %v542_v7 }
 0x382   :  { %v545_v23 = vmul.f32 %v5360_v9, %v4301_v55  ;;  %v544_v48 = vmul.f32 %v5352_v13, %v4305_v4  ;;  %v547_v44 = vmul.f32 %v5365_v41, %v4280_v43  ;;  %v546_v59 = vmul.f32 %v5366_v31, %v4284_v49  ;;  %3406 = vmatprep.subr.msk.bf16.mxu0 %vm4384_vm3, %v3404_v8 }
 0x383   :  { %3744 = vrot.lane.b32.xlu0 %v3743_v18, %s4050_s28  ;;  %v4437_v30 = vpop.permute.xlu1 %3719  ;;  %v4439_v42 = vpop.permute.xlu0 %3724 }
 0x384   :  { %v5354_v45 = vunpack.i.h.bf16 %v4437_v30  ;;  %v5355_v5 = vunpack.i.l.bf16 %v4437_v30  ;;  %v5363_v7 = vunpack.i.h.bf16 %v4439_v42  ;;  %v5364_v34 = vunpack.i.l.bf16 %v4439_v42 }
 0x385   :  { %v3748_v39 = vpack.i.bf16 %v547_v44, %v546_v59  ;;  %v3758_v16 = vpack.i.bf16 %v545_v23, %v544_v48  ;;  %v3410_v48 = vpack.c.bf16 %v3687_v27, %v3686_v28  ;;  %v3691_v27 = vunpack.i.l.bf16 %v3690_v26 }
 0x386   :  { %v549_v24 = vmul.f32 %v5354_v45, %v4301_v55  ;;  %v548_v18 = vmul.f32 %v5355_v5, %v4305_v4  ;;  %v551_v13 = vmul.f32 %v5363_v7, %v4280_v43  ;;  %v550_v2 = vmul.f32 %v5364_v34, %v4284_v49 }
 0x387   :  { %3749 = vrot.lane.b32.xlu1 %v3748_v39, %s4050_s28  ;;  %3759 = vrot.lane.b32.xlu0 %v3758_v16, %s4050_s28  ;;  %v4459_v23 = vpop.permute.xlu1 %3729  ;;  %v3692_v39 = vunpack.i.h.bf16 %v3690_v26  ;;  %v3696_v28 = vunpack.i.l.bf16 %v4394_v29  ;;  %v3701_v26 = vunpack.i.l.bf16 %v4400_v57 }
 0x388   :  { %v5357_v44 = vunpack.i.h.bf16 %v4459_v23  ;;  %v5358_v59 = vunpack.i.l.bf16 %v4459_v23  ;;  %v3753_v45 = vpack.i.bf16 %v551_v13, %v550_v2  ;;  %v3763_v5 = vpack.i.bf16 %v549_v24, %v548_v18  ;;  %v4500_v18 = vpop.permute.xlu0 %3734 }
 0x389   :  { %3409 = vmatpush3.bf16.xpose.msk.msra.mxu0 %vm4384_vm3, %v3404_v8  ;;  %v3416_v2 = vpack.c.bf16 %v3692_v39, %v3691_v27  ;;  %v3697_v13 = vunpack.i.h.bf16 %v4394_v29  ;;  %v411_v29 = vmul.f32 0.35355338, %v4280_v43 }
 0x38a   :  { %v553_v58 = vmul.f32 %v5357_v44, %v4301_v55  ;;  %v552_v16 = vmul.f32 %v5358_v59, %v4305_v4  ;;  %3412 = vmatprep.subr.msk.bf16.mxu0 %vm4384_vm3, %v3410_v48 }
 0x38b   :  { %3754 = vrot.lane.b32.xlu1 %v3753_v45, %s4050_s28  ;;  %3764 = vrot.lane.b32.xlu0 %v3763_v5, %s4050_s28  ;;  %v3422_v24 = vpack.c.bf16 %v3697_v13, %v3696_v28  ;;  %v412_v5 = vmul.f32 0.35355338, %v4305_v4 }
 0x38c   :  { %v3768_v8 = vpack.i.bf16 %v553_v58, %v552_v16  ;;  %v3702_v58 = vunpack.i.h.bf16 %v4400_v57  ;;  %v413_v57 = vmul.f32 0.35355338, %v4301_v55 }
 0x38e   :  { %v3428_v45 = vpack.c.bf16 %v3702_v58, %v3701_v26 }
 0x38f   :  { %3769 = vrot.lane.b32.xlu0 %v3768_v8, %s4050_s28 }
 0x391   :  { %3415 = vmatpush3.bf16.xpose.msk.msra.mxu0 %vm4384_vm3, %v3410_v48  ;;  %v4502_v48 = vpop.permute.xlu1 %3739 }
 0x392   :  { %3418 = vmatprep.subr.msk.bf16.mxu0 %vm4384_vm3, %v3416_v2 }
 0x399   :  { %3421 = vmatpush3.bf16.xpose.msk.msra.mxu0 %vm4384_vm3, %v3416_v2 }
 0x39a   :  { %3424 = vmatprep.subr.msk.bf16.mxu0 %vm4384_vm3, %v3422_v24 }
 0x3a1   :  { %3427 = vmatpush3.bf16.xpose.msk.msra.mxu0 %vm4384_vm3, %v3422_v24 }
 0x3a2   :  { %3430 = vmatprep.subr.msk.bf16.mxu0 %vm4384_vm3, %v3428_v45 }
 0x3a9   :  { %3433 = vmatpush3.bf16.xpose.msk.msra.mxu0 %vm4384_vm3, %v3428_v45 }
 0x3b0   :  { %3141 = vmatmul.mubr.msk.f32.vlgmr.msra.gmra.mrb[4].mxu0 %vm239_vm1, %v411_v29 }
 0x3b1   :  { %3143 = vmatprep.mubr.msk.f32.mxu0 %vm239_vm1, %v412_v5 }
 0x3b4   :  { %3144 = vmatmul.mubr.msk.f32.gmra.mrb[6].mxu0 %vm239_vm1, %v413_v57 }
 0x3f5   :  { %v3745_v16 = vpop.permute.xlu0 %3744 }
 0x3f6   :  { %v3747_v39 = vunpack.i.h.bf16 %v3745_v16  ;;  %v3746_v27 = vunpack.i.l.bf16 %v3745_v16 }
 0x3f8   :  { %v3434_v8 = vpack.c.bf16 %v3747_v39, %v3746_v27 }
 0x3f9   :  { %v3750_v2 = vpop.permute.xlu1 %3749  ;;  %v3760_v13 = vpop.permute.xlu0 %3759 }
 0x3fa   :  { %v3752_v28 = vunpack.i.h.bf16 %v3750_v2  ;;  %v3751_v24 = vunpack.i.l.bf16 %v3750_v2  ;;  %v3762_v58 = vunpack.i.h.bf16 %v3760_v13  ;;  %v3761_v26 = vunpack.i.l.bf16 %v3760_v13  ;;  %3435 = vmatprep.subr.bf16.mxu1 %v3434_v8 }
 0x3fb   :  { %3437 = vmatpush3.bf16.msra.mxu1 %v3434_v8 }
 0x3fc   :  { %v3438_v45 = vpack.c.bf16 %v3762_v58, %v3761_v26  ;;  %v3442_v44 = vpack.c.bf16 %v3752_v28, %v3751_v24  ;;  %v201_v28 = vand.u32 31, %v4173_v52  ;;  %v198_v24 = vshra.s32 %v4185_v56, 4 }
 0x3fd   :  { %v3765_v29 = vpop.permute.xlu0 %3764  ;;  %v3755_v59 = vpop.permute.xlu1 %3754  ;;  %v200_v52 = vshra.s32 %v4179_v54, 4 }
 0x3fe   :  { %v3767_v5 = vunpack.i.h.bf16 %v3765_v29  ;;  %v3766_v57 = vunpack.i.l.bf16 %v3765_v29  ;;  %3439 = vmatprep.subr.bf16.mxu1 %v3438_v45  ;;  %v3757_v14 = vunpack.i.h.bf16 %v3755_v59  ;;  %v3756_v16 = vunpack.i.l.bf16 %v3755_v59 }
 0x3ff   :  { %3441 = vmatpush3.bf16.msra.mxu1 %v3438_v45  ;;  %v202_v58 = vshra.s32 %v201_v28, 4  ;;  %v197_v59 = vshra.s32 %v4171_v51, 4 }
 0x400   :  { %3443 = vmatprep.subr.bf16.mxu1 %v3442_v44  ;;  %v3446_v39 = vpack.c.bf16 %v3767_v5, %v3766_v57  ;;  %v3450_v13 = vpack.c.bf16 %v3757_v14, %v3756_v16 }
 0x401   :  { %v3770_v27 = vpop.permute.xlu0 %3769  ;;  %vm204_vm4 = vcmp.eq.s32.totalorder %v198_v24, %v202_v58  ;;  %vm203_vm5 = vcmp.eq.s32.totalorder %v197_v59, %v202_v58  ;;  %vm206_vm9 = vcmp.eq.s32.totalorder %v200_v52, %v202_v58 }
 0x402   :  { %v3772_v2 = vunpack.i.h.bf16 %v3770_v27  ;;  %v3771_v9 = vunpack.i.l.bf16 %v3770_v27 }
 0x403   :  { %3445 = vmatpush3.bf16.msra.mxu1 %v3442_v44  ;;  %v4051_v44 = vmov -1e+30  }
 0x404   :  { %3447 = vmatprep.subr.bf16.mxu1 %v3446_v39  ;;  %v3454_v8 = vpack.c.bf16 %v3772_v2, %v3771_v9  ;;  %v4507_v26 = vsel %vm204_vm4, 0.0, %v4051_v44  ;;  %v4509_v14 = vsel %vm203_vm5, 0.0, %v4051_v44  ;;  %v4526_v27 = vsel %vm206_vm9, 0.0, %v4051_v44 }
 0x405   :  { %v199_v2 = vshra.s32 %v4176_v53, 4 }
 0x407   :  { %3449 = vmatpush3.bf16.msra.mxu1 %v3446_v39  ;;  %vm205_vm10 = vcmp.eq.s32.totalorder %v199_v2, %v202_v58 }
 0x408   :  { %3451 = vmatprep.subr.bf16.mxu1 %v3450_v13 }
 0x40b   :  { %3453 = vmatpush3.bf16.msra.mxu1 %v3450_v13 }
 0x40c   :  { %3455 = vmatprep.subr.bf16.mxu1 %v3454_v8 }
 0x40f   :  { %3457 = vmatpush3.bf16.msra.mxu1 %v3454_v8 }
 0x483   :  { %v3142_v45 = vpop.f32.mrb[4].mxu0 }
 0x484   :  { %v4512_v9 = vadd.f32 %v3142_v45, %v4507_v26  ;;  %v716_v29 = vpop.f32.mrb[5].mxu0  ;;  %v4540_v45 = vsel %vm205_vm10, 0.0, %v4051_v44 }
 0x485   :  { %v4516_v56 = vadd.f32 %v716_v29, %v4509_v14 }
 0x486   :  { %v844_v51 = vsel %vm840_vm6, %v4512_v9, -inf  ;;  %v783_v5 = vsel %vm779_vm7, %v4512_v9, -inf  ;;  %v905_v39 = vsel %vm901_vm8, %v4512_v9, -inf  ;;  %v738_v8 = vsel %vm239_vm1, %v4512_v9, -inf }
 0x487   :  { %845 = vmax.xlane.f32.xlu0 %v844_v51  ;;  %784 = vmax.xlane.f32.xlu1 %v783_v5  ;;  %v3145_v57 = vpop.f32.mrb[6].mxu0  ;;  %v780_v54 = vsel %vm779_vm7, %v4516_v56, -inf  ;;  %v841_v28 = vsel %vm840_vm6, %v4516_v56, -inf  ;;  %v902_v59 = vsel %vm901_vm8, %v4516_v56, -inf  ;;  %v735_v52 = vsel %vm239_vm1, %v4516_v56, -inf }
 0x488   :  { %v726_v16 = vpop.f32.mrb[7].mxu0  ;;  %v4530_v13 = vadd.f32 %v3145_v57, %v4526_v27 }
 0x489   :  { %v4543_v53 = vadd.f32 %v726_v16, %v4540_v45 }
 0x48a   :  { %v789_v24 = vsel %vm779_vm7, %v4530_v13, -inf  ;;  %v850_v29 = vsel %vm840_vm6, %v4530_v13, -inf  ;;  %v911_v58 = vsel %vm901_vm8, %v4530_v13, -inf  ;;  %v744_v51 = vsel %vm239_vm1, %v4530_v13, -inf }
 0x48b   :  { %906 = vmax.xlane.f32.xlu1 %v905_v39  ;;  %781 = vmax.xlane.f32.xlu0 %v780_v54  ;;  %v786_v44 = vsel %vm779_vm7, %v4543_v53, -inf  ;;  %v847_v5 = vsel %vm840_vm6, %v4543_v53, -inf  ;;  %v908_v57 = vsel %vm901_vm8, %v4543_v53, -inf  ;;  %v741_v16 = vsel %vm239_vm1, %v4543_v53, -inf }
 0x48f   :  { %739 = vmax.xlane.f32.xlu1 %v738_v8  ;;  %842 = vmax.xlane.f32.xlu0 %v841_v28 }
 0x493   :  { %790 = vmax.xlane.f32.xlu1 %v789_v24  ;;  %903 = vmax.xlane.f32.xlu0 %v902_v59 }
 0x497   :  { %851 = vmax.xlane.f32.xlu1 %v850_v29  ;;  %736 = vmax.xlane.f32.xlu0 %v735_v52 }
 0x49b   :  { %912 = vmax.xlane.f32.xlu1 %v911_v58  ;;  %787 = vmax.xlane.f32.xlu0 %v786_v44 }
 0x49f   :  { %745 = vmax.xlane.f32.xlu1 %v744_v51  ;;  %848 = vmax.xlane.f32.xlu0 %v847_v5 }
 0x4a3   :  { %909 = vmax.xlane.f32.xlu0 %v908_v57 }
 0x4a7   :  { %742 = vmax.xlane.f32.xlu0 %v741_v16 }
 0x514   :  { %v846_v39 = vpop.xlane.xlu0 %845  ;;  %v785_v54 = vpop.xlane.xlu1 %784 }
 0x515   :  { %v793_v2 = vsub.f32 %v4512_v9, %v785_v54  ;;  %v854_v8 = vsub.f32 %v4512_v9, %v846_v39 }
 0x517   :  { %v798_v28 = vmul.f32 1.442695, %v793_v2  ;;  %v859_v52 = vmul.f32 1.442695, %v854_v8 }
 0x518   :  { %v907_v24 = vpop.xlane.xlu1 %906  ;;  %v782_v59 = vpop.xlane.xlu0 %781 }
 0x519   :  { %v915_v29 = vsub.f32 %v4512_v9, %v907_v24  ;;  %3871 = vpow2.f32 %v798_v28  ;;  %v792_v51 = vsub.f32 %v4516_v56, %v782_v59 }
 0x51a   :  { %3873 = vpow2.f32 %v859_v52 }
 0x51b   :  { %v920_v44 = vmul.f32 1.442695, %v915_v29  ;;  %v796_v54 = vmul.f32 1.442695, %v792_v51 }
 0x51c   :  { %v843_v58 = vpop.xlane.xlu0 %842  ;;  %v740_v52 = vpop.xlane.xlu1 %739 }
 0x51d   :  { %v853_v5 = vsub.f32 %v4516_v56, %v843_v58  ;;  %3875 = vpow2.f32 %v920_v44  ;;  %v748_v58 = vsub.f32 %v4512_v9, %v740_v52 }
 0x51f   :  { %v857_v57 = vmul.f32 1.442695, %v853_v5  ;;  %v753_v51 = vmul.f32 1.442695, %v748_v58 }
 0x520   :  { %v904_v16 = vpop.xlane.xlu0 %903 }
 0x521   :  { %v914_v39 = vsub.f32 %v4516_v56, %v904_v16  ;;  %3877 = vpow2.f32 %v857_v57  ;;  %v791_v16 = vpop.xlane.xlu1 %790 }
 0x522   :  { %3879 = vpow2.f32 %v796_v54  ;;  %v795_v9 = vsub.f32 %v4530_v13, %v791_v16 }
 0x523   :  { %v918_v2 = vmul.f32 1.442695, %v914_v39  ;;  %v4567_v1 = vpop.eup %3871 }
 0x524   :  { %810 = vrot.lane.b32.xlu1 %v4567_v1, %s4049_s27  ;;  %v4571_v8 = vpop.eup %3873  ;;  %v737_v44 = vpop.xlane.xlu0 %736 }
 0x525   :  { %3881 = vpow2.f32 %v918_v2  ;;  %v747_v5 = vsub.f32 %v4516_v56, %v737_v44  ;;  %v852_v7 = vpop.xlane.xlu1 %851  ;;  %v802_v44 = vmul.f32 1.442695, %v795_v9 }
 0x526   :  { %3883 = vpow2.f32 %v753_v51  ;;  %v856_v51 = vsub.f32 %v4530_v13, %v852_v7 }
 0x527   :  { %v4575_v28 = vpop.eup %3875  ;;  %v751_v57 = vmul.f32 1.442695, %v747_v5 }
 0x528   :  { %871 = vrot.lane.b32.xlu1 %v4571_v8, %s4050_s28  ;;  %v788_v39 = vpop.xlane.xlu0 %787  ;;  %v863_v41 = vmul.f32 1.442695, %v856_v51 }
 0x529   :  { %3885 = vpow2.f32 %v751_v57  ;;  %v794_v58 = vsub.f32 %v4543_v53, %v788_v39  ;;  %v913_v5 = vpop.xlane.xlu1 %912 }
 0x52a   :  { %3887 = vpow2.f32 %v802_v44  ;;  %v917_v31 = vsub.f32 %v4530_v13, %v913_v5 }
 0x52b   :  { %v4577_v24 = vpop.eup %3877  ;;  %v800_v57 = vmul.f32 1.442695, %v794_v58 }
 0x52c   :  { %932 = vrot.lane.b32.xlu1 %v4575_v28, %s4048_s20  ;;  %869 = vrot.lane.b32.xlu0 %v4577_v24, %s4050_s28  ;;  %v4583_v59 = vpop.eup %3879  ;;  %v849_v52 = vpop.xlane.xlu0 %848  ;;  %v924_v63 = vmul.f32 1.442695, %v917_v31 }
 0x52d   :  { %v855_v34 = vsub.f32 %v4543_v53, %v849_v52  ;;  %3889 = vpow2.f32 %v800_v57  ;;  %v746_v31 = vpop.xlane.xlu1 %745 }
 0x52e   :  { %3891 = vpow2.f32 %v863_v41  ;;  %v750_v58 = vsub.f32 %v4530_v13, %v746_v31 }
 0x52f   :  { %v4585_v29 = vpop.eup %3881  ;;  %v861_v16 = vmul.f32 1.442695, %v855_v34 }
 0x530   :  { %808 = vrot.lane.b32.xlu1 %v4583_v59, %s4049_s27  ;;  %930 = vrot.lane.b32.xlu0 %v4585_v29, %s4048_s20  ;;  %v4593_v54 = vpop.eup %3883  ;;  %v757_v51 = vmul.f32 1.442695, %v750_v58 }
 0x531   :  { %v762_v2 = vsel %vm239_vm1, %v4593_v54, 0.0  ;;  %3893 = vpow2.f32 %v861_v16 }
 0x532   :  { %3895 = vpow2.f32 %v924_v63 }
 0x533   :  { %v4597_v50 = vpop.eup %3885 }
 0x534   :  { %v759_v56 = vsel %vm239_vm1, %v4597_v50, 0.0  ;;  %v4607_v7 = vpop.eup %3887 }
 0x537   :  { %v4609_v9 = vpop.eup %3889 }
 0x538   :  { %v4615_v52 = vpop.eup %3891 }
 0x53b   :  { %v4617_v34 = vpop.eup %3893 }
 0x53c   :  { %v4623_v63 = vpop.eup %3895 }
 0x54f   :  { %763 = vadd.xlane.f32.xlu0 %v762_v2  ;;  %v910_v2 = vpop.xlane.xlu0 %909 }
 0x550   :  { %v916_v39 = vsub.f32 %v4543_v53, %v910_v2 }
 0x553   :  { %v743_v44 = vpop.xlane.xlu0 %742 }
 0x554   :  { %760 = vadd.xlane.f32.xlu1 %v759_v56  ;;  %v922_v56 = vmul.f32 1.442695, %v916_v39  ;;  %v749_v5 = vsub.f32 %v4543_v53, %v743_v44 }
 0x556   :  { %3897 = vpow2.f32 %v922_v56  ;;  %v755_v57 = vmul.f32 1.442695, %v749_v5 }
 0x557   :  { %3899 = vpow2.f32 %v757_v51 }
 0x558   :  { %3901 = vpow2.f32 %v755_v57 }
 0x560   :  { %v4625_v41 = vpop.eup %3897 }
 0x561   :  { %v4633_v2 = vpop.eup %3899 }
 0x562   :  { %v768_v16 = vsel %vm239_vm1, %v4633_v2, 0.0  ;;  %v4637_v39 = vpop.eup %3901 }
 0x563   :  { %v765_v56 = vsel %vm239_vm1, %v4637_v39, 0.0 }
 0x565   :  { %814 = vrot.lane.b32.xlu1 %v4607_v7, %s4049_s27  ;;  %812 = vrot.lane.b32.xlu0 %v4609_v9, %s4049_s27 }
 0x569   :  { %875 = vrot.lane.b32.xlu1 %v4615_v52, %s4050_s28  ;;  %873 = vrot.lane.b32.xlu0 %v4617_v34, %s4050_s28 }
 0x56d   :  { %936 = vrot.lane.b32.xlu1 %v4623_v63, %s4048_s20  ;;  %934 = vrot.lane.b32.xlu0 %v4625_v41, %s4048_s20 }
 0x58c   :  { %769 = vadd.xlane.f32.xlu0 %v768_v16 }
 0x590   :  { %766 = vadd.xlane.f32.xlu0 %v765_v56 }
 0x596   :  { %v811_v13 = vpop.permute.xlu1 %810 }
 0x597   :  { %v823_v31 = vsel %vm239_vm1, %v811_v13, 0.0 }
 0x598   :  { %824 = vadd.xlane.f32.xlu0 %v823_v31 }
 0x59a   :  { %v872_v53 = vpop.permute.xlu1 %871 }
 0x59b   :  { %v884_v58 = vsel %vm239_vm1, %v872_v53, 0.0 }
 0x59c   :  { %885 = vadd.xlane.f32.xlu1 %v884_v58 }
 0x59e   :  { %v933_v44 = vpop.permute.xlu1 %932  ;;  %v870_v51 = vpop.permute.xlu0 %869 }
 0x59f   :  { %v945_v5 = vsel %vm239_vm1, %v933_v44, 0.0  ;;  %v881_v0 = vsel %vm239_vm1, %v870_v51, 0.0 }
 0x5a0   :  { %946 = vadd.xlane.f32.xlu1 %v945_v5 }
 0x5a2   :  { %v809_v57 = vpop.permute.xlu1 %808  ;;  %v931_v47 = vpop.permute.xlu0 %930 }
 0x5a3   :  { %v820_v16 = vsel %vm239_vm1, %v809_v57, 0.0  ;;  %v942_v56 = vsel %vm239_vm1, %v931_v47, 0.0 }
 0x5a4   :  { %821 = vadd.xlane.f32.xlu0 %v820_v16  ;;  %882 = vadd.xlane.f32.xlu1 %v881_v0 }
 0x5a8   :  { %943 = vadd.xlane.f32.xlu1 %v942_v56 }
 0x5dc   :  { %v764_v13 = vpop.xlane.xlu0 %763 }
 0x5e0   :  { %v813_v31 = vpop.permute.xlu0 %812 }
 0x5e1   :  { %v761_v53 = vpop.xlane.xlu1 %760  ;;  %v826_v47 = vsel %vm239_vm1, %v813_v31, 0.0  ;;  %v5375_v31 = vunpack.i.l.bf16 %v4502_v48 }
 0x5e2   :  { %3903 = vrcp.f32 %v761_v53 }
 0x5e4   :  { %v874_v3 = vpop.permute.xlu0 %873 }
 0x5e5   :  { %v815_v58 = vpop.permute.xlu1 %814  ;;  %v887_v57 = vsel %vm239_vm1, %v874_v3, 0.0 }
 0x5e6   :  { %v829_v22 = vsel %vm239_vm1, %v815_v58, 0.0  ;;  %v5372_v58 = vunpack.i.h.bf16 %v4500_v18 }
 0x5e7   :  { %830 = vadd.xlane.f32.xlu0 %v829_v22  ;;  %v5374_v22 = vunpack.i.l.bf16 %v4500_v18 }
 0x5e8   :  { %v935_v16 = vpop.permute.xlu0 %934  ;;  %v555_v3 = vmul.f32 %v5372_v58, %v4280_v43 }
 0x5e9   :  { %v876_v44 = vpop.permute.xlu1 %875  ;;  %v948_v56 = vsel %vm239_vm1, %v935_v16, 0.0 }
 0x5ea   :  { %v890_v5 = vsel %vm239_vm1, %v876_v44, 0.0  ;;  %v554_v44 = vmul.f32 %v5374_v22, %v4284_v49 }
 0x5eb   :  { %891 = vadd.xlane.f32.xlu1 %v890_v5  ;;  %888 = vadd.xlane.f32.xlu0 %v887_v57  ;;  %v5373_v5 = vunpack.i.h.bf16 %v4502_v48 }
 0x5ec   :  { %v3773_v57 = vpack.i.bf16 %v555_v3, %v554_v44 }
 0x5ed   :  { %v937_v51 = vpop.permute.xlu1 %936 }
 0x5ee   :  { %v951_v0 = vsel %vm239_vm1, %v937_v51, 0.0  ;;  %v557_v51 = vmul.f32 %v5373_v5, %v4301_v55  ;;  %v3904_v55 = vpop.eup %3903 }
 0x5ef   :  { %952 = vadd.xlane.f32.xlu1 %v951_v0  ;;  %v556_v0 = vmul.f32 %v5375_v31, %v4305_v4  ;;  %v772_v4 = vmul.f32 %v3904_v55, %v4597_v50 }
 0x5f1   :  { %v3778_v43 = vpack.i.bf16 %v557_v51, %v556_v0 }
 0x5f3   :  { %827 = vadd.xlane.f32.xlu1 %v826_v47 }
 0x5f7   :  { %949 = vadd.xlane.f32.xlu1 %v948_v56 }
 0x601   :  { %3774 = vrot.lane.b32.xlu0 %v3773_v57, %s4050_s28 }
 0x608   :  { %3779 = vrot.lane.b32.xlu1 %v3778_v43, %s4050_s28 }
 0x619   :  { %v770_v47 = vpop.xlane.xlu0 %769 }
 0x61d   :  { %v767_v49 = vpop.xlane.xlu0 %766 }
 0x625   :  { %v825_v56 = vpop.xlane.xlu0 %824 }
 0x629   :  { %v886_v16 = vpop.xlane.xlu1 %885 }
 0x62d   :  { %v947_v58 = vpop.xlane.xlu1 %946 }
 0x631   :  { %v883_v3 = vpop.xlane.xlu1 %882  ;;  %v822_v44 = vpop.xlane.xlu0 %821 }
 0x632   :  { %3905 = vrcp.f32 %v883_v3 }
 0x633   :  { %3907 = vrcp.f32 %v822_v44 }
 0x635   :  { %v944_v57 = vpop.xlane.xlu1 %943 }
 0x636   :  { %3909 = vrcp.f32 %v944_v57 }
 0x637   :  { %3911 = vrcp.f32 %v764_v13 }
 0x638   :  { %3913 = vrcp.f32 %v770_v47 }
 0x639   :  { %3915 = vrcp.f32 %v767_v49 }
 0x63a   :  { %3917 = vrcp.f32 %v825_v56 }
 0x63b   :  { %3919 = vrcp.f32 %v886_v16 }
 0x63c   :  { %v3906_v5 = vpop.eup %3905  ;;  %3921 = vrcp.f32 %v947_v58  ;;  %v215_v58 = vld [vmem:[%s5346_s3 + $0x20] sm:$0xff] }
 0x63d   :  { %v3908_v22 = vpop.eup %3907  ;;  %v894_v0 = vmul.f32 %v3906_v5, %v4577_v24 }
 0x63e   :  { %v833_v51 = vmul.f32 %v3908_v22, %v4583_v59 }
 0x640   :  { %v3910_v43 = vpop.eup %3909  ;;  %v962_v31 = vsel %vm239_vm1, %v772_v4, %v833_v51 }
 0x641   :  { %v955_v53 = vmul.f32 %v3910_v43, %v4585_v29  ;;  %v967_v3 = vsel %vm966_vm11, %v962_v31, %v894_v0  ;;  %v3912_v31 = vpop.eup %3911 }
 0x642   :  { %v3914_v13 = vpop.eup %3913 }
 0x643   :  { %v972_v44 = vsel %vm971_vm12, %v967_v3, %v955_v53  ;;  %v3916_v49 = vpop.eup %3915 }
 0x644   :  { %3178 = vmatprep.mubr.f32.mxu1 %v972_v44  ;;  %v3918_v56 = vpop.eup %3917 }
 0x645   :  { %v3920_v55 = vpop.eup %3919  ;;  %v835_v53 = vmul.f32 %v3918_v56, %v4567_v1  ;;  %v218_v1 = vld [vmem:[%s5346_s3 + $0x38] sm:$0xff] }
 0x646   :  { %v3922_v16 = vpop.eup %3921 }
 0x674   :  { %v831_v57 = vpop.xlane.xlu0 %830 }
 0x675   :  { %3923 = vrcp.f32 %v831_v57  ;;  %v896_v57 = vmul.f32 %v3920_v55, %v4571_v8 }
 0x678   :  { %v892_v38 = vpop.xlane.xlu1 %891  ;;  %v889_v46 = vpop.xlane.xlu0 %888 }
 0x679   :  { %3925 = vrcp.f32 %v892_v38  ;;  %v216_v38 = vld [vmem:[%s5346_s3 + $0x28] sm:$0xff] }
 0x67c   :  { %v953_v50 = vpop.xlane.xlu1 %952  ;;  %v3775_v24 = vpop.permute.xlu0 %3774 }
 0x67d   :  { %v3777_v59 = vunpack.i.h.bf16 %v3775_v24  ;;  %v3776_v22 = vunpack.i.l.bf16 %v3775_v24 }
 0x67f   :  { %v3458_v29 = vpack.c.bf16 %v3777_v59, %v3776_v22  ;;  %v774_v59 = vmul.f32 %v3912_v31, %v4593_v54  ;;  %v957_v22 = vmul.f32 %v3922_v16, %v4575_v28 }
 0x680   :  { %v828_v5 = vpop.xlane.xlu1 %827 }
 0x681   :  { %3927 = vrcp.f32 %v828_v5  ;;  %3459 = vmatprep.subr.bf16.mxu1 %v3458_v29  ;;  %v963_v8 = vsel %vm239_vm1, %v774_v59, %v835_v53 }
 0x682   :  { %3929 = vrcp.f32 %v889_v46  ;;  %3461 = vmatpush3.bf16.msra.mxu1 %v3458_v29  ;;  %v3924_v46 = vpop.eup %3923  ;;  %v776_v29 = vmul.f32 %v3916_v49, %v4637_v39 }
 0x683   :  { %3931 = vrcp.f32 %v953_v50  ;;  %v3926_v43 = vpop.eup %3925  ;;  %v3466_v50 = vpack.c.bf16 %v216_v38, %v215_v58  ;;  %v839_v28 = vmul.f32 %v3924_v46, %v4607_v7  ;;  %v778_v58 = vmul.f32 %v3914_v13, %v4633_v2 }
 0x684   :  { %v950_v47 = vpop.xlane.xlu1 %949  ;;  %v900_v49 = vmul.f32 %v3926_v43, %v4615_v52 }
 0x685   :  { %3933 = vrcp.f32 %v950_v47  ;;  %v217_v47 = vld [vmem:[%s5346_s3 + $0x30] sm:$0xff] }
 0x686   :  { %v3470_v55 = vpack.c.bf16 %v218_v1, %v217_v47 }
 0x688   :  { %v3780_v4 = vpop.permute.xlu1 %3779 }
 0x689   :  { %v3782_v51 = vunpack.i.h.bf16 %v3780_v4  ;;  %v3781_v0 = vunpack.i.l.bf16 %v3780_v4 }
 0x68b   :  { %v3928_v3 = vpop.eup %3927  ;;  %v3462_v44 = vpack.c.bf16 %v3782_v51, %v3781_v0  ;;  %v965_v51 = vsel %vm239_vm1, %v778_v58, %v839_v28  ;;  %v2840_v0 = vld [vmem:[%s5347_s4 + $0x3] ss:$0 sm:$0xff] }
 0x68c   :  { %v3930_v24 = vpop.eup %3929  ;;  %v837_v5 = vmul.f32 %v3928_v3, %v4609_v9  ;;  %v968_v9 = vsel %vm966_vm11, %v963_v8, %v896_v57  ;;  %v970_v52 = vsel %vm966_vm11, %v965_v51, %v900_v49 }
 0x68d   :  { %v3932_v56 = vpop.eup %3931  ;;  %3463 = vmatprep.subr.bf16.mxu1 %v3462_v44  ;;  %v898_v31 = vmul.f32 %v3930_v24, %v4617_v34  ;;  %v973_v16 = vsel %vm971_vm12, %v968_v9, %v957_v22 }
 0x68e   :  { %3465 = vmatpush3.bf16.msra.mxu1 %v3462_v44  ;;  %v964_v54 = vsel %vm239_vm1, %v776_v29, %v837_v5  ;;  %v961_v38 = vmul.f32 %v3932_v56, %v4623_v63 }
 0x68f   :  { %v3934_v39 = vpop.eup %3933  ;;  %3467 = vmatprep.subr.bf16.mxu1 %v3466_v50  ;;  %v969_v7 = vsel %vm966_vm11, %v964_v54, %v898_v31 }
 0x690   :  { %v959_v4 = vmul.f32 %v3934_v39, %v4625_v41  ;;  %v975_v34 = vsel %vm971_vm12, %v970_v52, %v961_v38 }
 0x691   :  { %3179 = vmatmul.mubr.f32.vlgmr.msra.gmra.mrb[4].mxu1 %v973_v16 }
 0x692   :  { %v974_v46 = vsel %vm971_vm12, %v969_v7, %v959_v4  ;;  %3469 = vmatpush3.bf16.msra.mxu1 %v3466_v50 }
 0x693   :  { %3181 = vmatprep.mubr.f32.mxu1 %v974_v46  ;;  %3471 = vmatprep.subr.bf16.mxu1 %v3470_v55 }
 0x695   :  { %3182 = vmatmul.mubr.f32.gmra.mrb[6].mxu1 %v975_v34 }
 0x696   :  { %3473 = vmatpush3.bf16.msra.mxu1 %v3470_v55 }
 0x764   :  { %v3180_v41 = vpop.f32.mrb[4].mxu1 }
 0x765   :  { %v1106_v2 = vpop.f32.mrb[5].mxu1 }
 0x766   :  { %3192 = vmatprep.mubr.msk.f32.mxu1 %vm239_vm1, %v1106_v2  ;;  %v219_v2 = vld [vmem:[%s5346_s3 + $0x40] sm:$0xff] }
 0x767   :  { %3193 = vmatmul.mubr.msk.f32.vlgmr.msra.gmra.mrb[8].mxu1 %vm239_vm1, %v3180_v41 }
 0x768   :  { %v3183_v63 = vpop.f32.mrb[6].mxu1 }
 0x769   :  { %v1116_v13 = vpop.f32.mrb[7].mxu1 }
 0x76a   :  { %3195 = vmatprep.mubr.msk.f32.mxu1 %vm239_vm1, %v1116_v13 }
 0x76b   :  { %3196 = vmatmul.mubr.msk.f32.gmra.mrb[10].mxu1 %vm239_vm1, %v3183_v63  ;;  %v220_v63 = vld [vmem:[%s5346_s3 + $0x48] sm:$0xff] }
 0x76c   :  { %v3474_v13 = vpack.c.bf16 %v220_v63, %v219_v2 }
 0x76e   :  { %3475 = vmatprep.subr.bf16.mxu1 %v3474_v13 }
 0x76f   :  { %3477 = vmatpush3.bf16.msra.mxu1 %v3474_v13  ;;  %v223_v13 = vld [vmem:[%s5346_s3 + $0x60] sm:$0xff] }
 0x83a   :  { %v3194_v43 = vpop.f32.mrb[8].mxu1 }
 0x83b   :  { %v1213_v53 = vadd.f32 %v3194_v43, %v2840_v0  ;;  %v1207_v3 = vpop.f32.mrb[9].mxu1  ;;  %v222_v43 = vld [vmem:[%s5346_s3 + $0x58] sm:$0xff] }
 0x83c   :  { %v1208_v44 = vadd.f32 %v2840_v0, %v1207_v3 }
 0x83d   :  { %v4719_v57 = vadd.f32 %v1213_v53, %v4121_v15 }
 0x83e   :  { %v4722_v50 = vadd.f32 %v1208_v44, %v4113_v12  ;;  %v3197_v24 = vpop.f32.mrb[10].mxu1 }
 0x83f   :  { %v1217_v59 = vpop.f32.mrb[11].mxu1  ;;  %v1233_v22 = vsel %vm239_vm1, %v4719_v57, 0.0  ;;  %v1223_v29 = vadd.f32 %v3197_v24, %v2840_v0 }
 0x840   :  { %v1218_v5 = vadd.f32 %v2840_v0, %v1217_v59  ;;  %1234 = vadd.xlane.f32.xlu1 %v1233_v22  ;;  %v1230_v47 = vsel %vm239_vm1, %v4722_v50, 0.0  ;;  %v221_v0 = vld [vmem:[%s5346_s3 + $0x50] sm:$0xff] }
 0x841   :  { %1231 = vadd.xlane.f32.xlu0 %v1230_v47  ;;  %v4732_v15 = vadd.f32 %v1223_v29, %v4125_v19  ;;  %v3478_v53 = vpack.c.bf16 %v222_v43, %v221_v0  ;;  %v226_v43 = vld [vmem:[%s5346_s3 + $0x78] sm:$0xff] }
 0x842   :  { %v4729_v1 = vadd.f32 %v1218_v5, %v4127_v20 }
 0x843   :  { %v1239_v56 = vsel %vm239_vm1, %v4732_v15, 0.0  ;;  %3479 = vmatprep.subr.bf16.mxu1 %v3478_v53 }
 0x844   :  { %v1236_v12 = vsel %vm239_vm1, %v4729_v1, 0.0  ;;  %3481 = vmatpush3.bf16.msra.mxu1 %v3478_v53 }
 0x845   :  { %1237 = vadd.xlane.f32.xlu0 %v1236_v12 }
 0x849   :  { %1240 = vadd.xlane.f32.xlu0 %v1239_v56 }
 0x8cd   :  { %v1235_v8 = vpop.xlane.xlu1 %1234 }
 0x8ce   :  { %v1243_v54 = vmul.f32 0.03125, %v1235_v8  ;;  %v1232_v28 = vpop.xlane.xlu0 %1231 }
 0x8cf   :  { %v1242_v39 = vmul.f32 0.03125, %v1232_v28 }
 0x8d0   :  { %v1247_v9 = vsub.f32 %v4719_v57, %v1243_v54 }
 0x8d1   :  { %v1246_v20 = vsub.f32 %v4722_v50, %v1242_v39  ;;  %v2845_v39 = vld [vmem:[%s5347_s4 + $0x4] ss:$0 sm:$0xff] }
 0x8d2   :  { %v1238_v31 = vpop.xlane.xlu0 %1237  ;;  %v1251_v49 = vmul.f32 %v1247_v9, %v1247_v9 }
 0x8d3   :  { %v1244_v19 = vmul.f32 0.03125, %v1238_v31  ;;  %v1250_v55 = vmul.f32 %v1246_v20, %v1246_v20 }
 0x8d4   :  { %v1257_v16 = vsel %vm239_vm1, %v1251_v49, 0.0 }
 0x8d5   :  { %v1248_v4 = vsub.f32 %v4729_v1, %v1244_v19  ;;  %1258 = vadd.xlane.f32.xlu1 %v1257_v16  ;;  %v1254_v58 = vsel %vm239_vm1, %v1250_v55, 0.0  ;;  %v2846_v55 = vld [vmem:[%s5347_s4 + $0x5] ss:$0 sm:$0xff] }
 0x8d6   :  { %1255 = vadd.xlane.f32.xlu0 %v1254_v58  ;;  %v1241_v38 = vpop.xlane.xlu0 %1240 }
 0x8d7   :  { %v1245_v7 = vmul.f32 0.03125, %v1241_v38  ;;  %v1252_v46 = vmul.f32 %v1248_v4, %v1248_v4 }
 0x8d9   :  { %v1249_v51 = vsub.f32 %v4732_v15, %v1245_v7  ;;  %v1260_v52 = vsel %vm239_vm1, %v1252_v46, 0.0 }
 0x8da   :  { %1261 = vadd.xlane.f32.xlu0 %v1260_v52 }
 0x8db   :  { %v1253_v34 = vmul.f32 %v1249_v51, %v1249_v51 }
 0x8dd   :  { %v1263_v41 = vsel %vm239_vm1, %v1253_v34, 0.0 }
 0x8de   :  { %1264 = vadd.xlane.f32.xlu1 %v1263_v41 }
 0x962   :  { %v1259_v3 = vpop.xlane.xlu1 %1258 }
 0x963   :  { %v1267_v44 = vmul.f32 0.03125, %v1259_v3  ;;  %v1256_v24 = vpop.xlane.xlu0 %1255  ;;  %v227_v3 = vld [vmem:[%s5346_s3 + $0x80] sm:$0xff] }
 0x964   :  { %v1266_v59 = vmul.f32 0.03125, %v1256_v24 }
 0x965   :  { %v1271_v22 = vadd.f32 1e-06, %v1267_v44  ;;  %v228_v44 = vld [vmem:[%s5346_s3 + $0x88] sm:$0xff] }
 0x966   :  { %v1270_v29 = vadd.f32 1e-06, %v1266_v59  ;;  %v3490_v24 = vpack.c.bf16 %v228_v44, %v227_v3  ;;  %v229_v59 = vld [vmem:[%s5346_s3 + $0x90] sm:$0xff] }
 0x967   :  { %3935 = vrsqrt.f32 %v1271_v22  ;;  %v1262_v5 = vpop.xlane.xlu0 %1261  ;;  %v230_v22 = vld [vmem:[%s5346_s3 + $0x98] sm:$0xff] }
 0x968   :  { %3937 = vrsqrt.f32 %v1270_v29  ;;  %v1268_v47 = vmul.f32 0.03125, %v1262_v5  ;;  %v3494_v29 = vpack.c.bf16 %v230_v22, %v229_v59  ;;  %v2847_v5 = vld [vmem:[%s5347_s4 + $0x6] ss:$0 sm:$0xff] }
 0x96a   :  { %v1272_v12 = vadd.f32 1e-06, %v1268_v47 }
 0x96b   :  { %v1265_v56 = vpop.xlane.xlu1 %1264 }
 0x96c   :  { %3939 = vrsqrt.f32 %v1272_v12  ;;  %v1269_v8 = vmul.f32 0.03125, %v1265_v56 }
 0x96e   :  { %v1273_v54 = vadd.f32 1e-06, %v1269_v8 }
 0x970   :  { %3941 = vrsqrt.f32 %v1273_v54 }
 0x971   :  { %v3936_v28 = vpop.eup %3935 }
 0x972   :  { %v3938_v31 = vpop.eup %3937  ;;  %v1279_v49 = vmul.f32 %v3936_v28, %v1247_v9 }
 0x973   :  { %v1278_v19 = vmul.f32 %v3938_v31, %v1246_v20 }
 0x974   :  { %v1287_v16 = vmul.f32 %v2845_v39, %v1279_v49 }
 0x975   :  { %v1286_v58 = vmul.f32 %v2845_v39, %v1278_v19 }
 0x976   :  { %v3940_v38 = vpop.eup %3939  ;;  %v1295_v52 = vadd.f32 %v2846_v55, %v1287_v16 }
 0x977   :  { %v1294_v7 = vadd.f32 %v2846_v55, %v1286_v58  ;;  %v1280_v46 = vmul.f32 %v3940_v38, %v1248_v4  ;;  %v224_v4 = vld [vmem:[%s5346_s3 + $0x68] sm:$0xff] }
 0x978   :  { %v3482_v0 = vpack.c.bf16 %v224_v4, %v223_v13 }
 0x979   :  { %3206 = vmatprep.mubr.msk.f32.mxu1 %vm239_vm1, %v1294_v7  ;;  %v1288_v34 = vmul.f32 %v2845_v39, %v1280_v46 }
 0x97a   :  { %v3942_v41 = vpop.eup %3941  ;;  %3207 = vmatmul.mubr.msk.f32.vlgmr.msra.gmra.mrb[12].mxu1 %vm239_vm1, %v1295_v52  ;;  %3483 = vmatprep.subr.bf16.mxu1 %v3482_v0 }
 0x97b   :  { %v1296_v2 = vadd.f32 %v2846_v55, %v1288_v34  ;;  %v1281_v63 = vmul.f32 %v3942_v41, %v1249_v51  ;;  %3485 = vmatpush3.bf16.msra.mxu1 %v3482_v0  ;;  %v225_v51 = vld [vmem:[%s5346_s3 + $0x70] sm:$0xff] }
 0x97c   :  { %v3486_v53 = vpack.c.bf16 %v226_v43, %v225_v51 }
 0x97d   :  { %3209 = vmatprep.mubr.msk.f32.mxu1 %vm239_vm1, %v1296_v2  ;;  %v1289_v9 = vmul.f32 %v2845_v39, %v1281_v63 }
 0x97e   :  { %3487 = vmatprep.subr.bf16.mxu1 %v3486_v53 }
 0x97f   :  { %v1297_v20 = vadd.f32 %v2846_v55, %v1289_v9  ;;  %3489 = vmatpush3.bf16.msra.mxu1 %v3486_v53  ;;  %v2852_v53 = vld [vmem:[%s5347_s4 + $0x7] ss:$0 sm:$0xff] }
 0x980   :  { %3491 = vmatprep.subr.bf16.mxu1 %v3490_v24 }
 0x981   :  { %3210 = vmatmul.mubr.msk.f32.gmra.mrb[14].mxu1 %vm239_vm1, %v1297_v20 }
 0x983   :  { %3493 = vmatpush3.bf16.msra.mxu1 %v3490_v24 }
 0x984   :  { %3495 = vmatprep.subr.bf16.mxu1 %v3494_v29 }
 0x987   :  { %3497 = vmatpush3.bf16.msra.mxu1 %v3494_v29 }
 0xa4d   :  { %v3208_v47 = vpop.f32.mrb[12].mxu1 }
 0xa4e   :  { %v1386_v12 = vadd.f32 %v3208_v47, %v2847_v5  ;;  %v1380_v56 = vpop.f32.mrb[13].mxu1 }
 0xa4f   :  { %v1381_v8 = vadd.f32 %v2847_v5, %v1380_v56 }
 0xa50   :  { %v1404_v54 = vmul.f32 0.70710677, %v1386_v12  ;;  %v1400_v34 = vmul.f32 0.5, %v1386_v12 }
 0xa51   :  { %v1403_v28 = vmul.f32 0.70710677, %v1381_v8  ;;  %v1399_v46 = vmul.f32 0.5, %v1381_v8 }
 0xa52   :  { %3943 = verf.f32 %v1404_v54 }
 0xa53   :  { %3945 = verf.f32 %v1403_v28 }
 0xa54   :  { %v3211_v39 = vpop.f32.mrb[14].mxu1 }
 0xa55   :  { %v1396_v31 = vadd.f32 %v3211_v39, %v2847_v5  ;;  %v1390_v49 = vpop.f32.mrb[15].mxu1 }
 0xa56   :  { %v1391_v19 = vadd.f32 %v2847_v5, %v1390_v49 }
 0xa57   :  { %v1406_v55 = vmul.f32 0.70710677, %v1396_v31  ;;  %v1402_v0 = vmul.f32 0.5, %v1396_v31 }
 0xa58   :  { %v1405_v16 = vmul.f32 0.70710677, %v1391_v19  ;;  %v1401_v13 = vmul.f32 0.5, %v1391_v19 }
 0xa59   :  { %3947 = verf.f32 %v1406_v55 }
 0xa5a   :  { %3949 = verf.f32 %v1405_v16 }
 0xa5c   :  { %v3944_v58 = vpop.eup %3943 }
 0xa5d   :  { %v3946_v38 = vpop.eup %3945  ;;  %v1412_v7 = vadd.f32 1.0, %v3944_v58 }
 0xa5e   :  { %v1411_v52 = vadd.f32 1.0, %v3946_v38 }
 0xa5f   :  { %v1416_v2 = vmul.f32 %v1412_v7, %v1400_v34 }
 0xa60   :  { %v1415_v41 = vmul.f32 %v1411_v52, %v1399_v46 }
 0xa62   :  { %3228 = vmatprep.mubr.msk.f32.mxu1 %vm966_vm11, %v1415_v41 }
 0xa63   :  { %v3948_v63 = vpop.eup %3947  ;;  %3229 = vmatmul.mubr.msk.f32.vlgmr.msra.gmra.mrb[16].mxu1 %vm966_vm11, %v1416_v2 }
 0xa64   :  { %v3950_v9 = vpop.eup %3949  ;;  %v1414_v20 = vadd.f32 1.0, %v3948_v63 }
 0xa65   :  { %v1413_v4 = vadd.f32 1.0, %v3950_v9 }
 0xa66   :  { %v1418_v43 = vmul.f32 %v1414_v20, %v1402_v0  ;;  %v2857_v0 = vld [vmem:[%s5346_s3 + $0xa0] sm:$0xff] }
 0xa67   :  { %v1417_v51 = vmul.f32 %v1413_v4, %v1401_v13 }
 0xa69   :  { %3231 = vmatprep.mubr.msk.f32.mxu1 %vm966_vm11, %v1417_v51  ;;  %v2858_v51 = vld [vmem:[%s5346_s3 + $0xa8] sm:$0xff] }
 0xa6a   :  { %3232 = vmatmul.mubr.msk.f32.gmra.mrb[18].mxu1 %vm966_vm11, %v1418_v43  ;;  %v3498_v43 = vpack.c.bf16 %v2858_v51, %v2857_v0 }
 0xa6c   :  { %3499 = vmatprep.subr.bf16.mxu0 %v3498_v43 }
 0xa6d   :  { %3501 = vmatpush3.bf16.msra.mxu0 %v3498_v43  ;;  %v2879_v43 = vld [vmem:[%s5347_s4 + $0xa] ss:$0 sm:$0xff] }
 0xb36   :  { %v3230_v3 = vpop.f32.mrb[16].mxu1 }
 0xb37   :  { %v1507_v44 = vadd.f32 %v3230_v3, %v2852_v53  ;;  %v1501_v24 = vpop.f32.mrb[17].mxu1  ;;  %v2860_v3 = vld [vmem:[%s5346_s3 + $0xb8] sm:$0xff] }
 0xb38   :  { %v1502_v59 = vadd.f32 %v2852_v53, %v1501_v24 }
 0xb39   :  { %v4803_v22 = vadd.f32 %v1507_v44, %v4719_v57 }
 0xb3a   :  { %v4806_v29 = vadd.f32 %v1502_v59, %v4722_v50 }
 0xb3b   :  { %v1556_v5 = vsel %vm239_vm1, %v4803_v22, 0.0 }
 0xb3c   :  { %1557 = vadd.xlane.f32.xlu1 %v1556_v5  ;;  %v1553_v47 = vsel %vm239_vm1, %v4806_v29, 0.0 }
 0xb3d   :  { %1554 = vadd.xlane.f32.xlu0 %v1553_v47  ;;  %v3233_v12 = vpop.f32.mrb[18].mxu1 }
 0xb3e   :  { %v1517_v56 = vadd.f32 %v3233_v12, %v2852_v53  ;;  %v1511_v8 = vpop.f32.mrb[19].mxu1 }
 0xb3f   :  { %v1512_v54 = vadd.f32 %v2852_v53, %v1511_v8  ;;  %v2859_v53 = vld [vmem:[%s5346_s3 + $0xb0] sm:$0xff] }
 0xb40   :  { %v4813_v28 = vadd.f32 %v1517_v56, %v4732_v15  ;;  %v3502_v44 = vpack.c.bf16 %v2860_v3, %v2859_v53 }
 0xb41   :  { %v4816_v57 = vadd.f32 %v1512_v54, %v4729_v1 }
 0xb42   :  { %v1562_v50 = vsel %vm239_vm1, %v4813_v28, 0.0  ;;  %3503 = vmatprep.subr.bf16.mxu0 %v3502_v44 }
 0xb43   :  { %1563 = vadd.xlane.f32.xlu1 %v1562_v50  ;;  %v1559_v39 = vsel %vm239_vm1, %v4816_v57, 0.0  ;;  %3505 = vmatpush3.bf16.msra.mxu0 %v3502_v44 }
 0xb44   :  { %1560 = vadd.xlane.f32.xlu0 %v1559_v39 }
 0xbc9   :  { %v1558_v31 = vpop.xlane.xlu1 %1557 }
 0xbca   :  { %v1566_v49 = vmul.f32 0.03125, %v1558_v31  ;;  %v1555_v19 = vpop.xlane.xlu0 %1554 }
 0xbcb   :  { %v1565_v55 = vmul.f32 0.03125, %v1555_v19 }
 0xbcc   :  { %v1570_v16 = vsub.f32 %v4803_v22, %v1566_v49 }
 0xbcd   :  { %v1569_v15 = vsub.f32 %v4806_v29, %v1565_v55  ;;  %v2877_v55 = vld [vmem:[%s5347_s4 + $0x8] ss:$0 sm:$0xff] }
 0xbce   :  { %v1574_v58 = vmul.f32 %v1570_v16, %v1570_v16 }
 0xbcf   :  { %v1573_v38 = vmul.f32 %v1569_v15, %v1569_v15 }
 0xbd0   :  { %v1564_v1 = vpop.xlane.xlu1 %1563  ;;  %v1580_v7 = vsel %vm239_vm1, %v1574_v58, 0.0 }
 0xbd1   :  { %v1568_v46 = vmul.f32 0.03125, %v1564_v1  ;;  %1581 = vadd.xlane.f32.xlu1 %v1580_v7  ;;  %v1561_v52 = vpop.xlane.xlu0 %1560  ;;  %v1577_v34 = vsel %vm239_vm1, %v1573_v38, 0.0  ;;  %v2878_v7 = vld [vmem:[%s5347_s4 + $0x9] ss:$0 sm:$0xff] }
 0xbd2   :  { %v1567_v41 = vmul.f32 0.03125, %v1561_v52  ;;  %1578 = vadd.xlane.f32.xlu0 %v1577_v34 }
 0xbd3   :  { %v1572_v2 = vsub.f32 %v4813_v28, %v1568_v46 }
 0xbd4   :  { %v1571_v63 = vsub.f32 %v4816_v57, %v1567_v41 }
 0xbd5   :  { %v1576_v9 = vmul.f32 %v1572_v2, %v1572_v2 }
 0xbd6   :  { %v1575_v20 = vmul.f32 %v1571_v63, %v1571_v63 }
 0xbd7   :  { %v1586_v13 = vsel %vm239_vm1, %v1576_v9, 0.0 }
 0xbd8   :  { %1587 = vadd.xlane.f32.xlu1 %v1586_v13  ;;  %v1583_v4 = vsel %vm239_vm1, %v1575_v20, 0.0 }
 0xbd9   :  { %1584 = vadd.xlane.f32.xlu0 %v1583_v4 }
 0xc5e   :  { %v1582_v24 = vpop.xlane.xlu1 %1581 }
 0xc5f   :  { %v1590_v59 = vmul.f32 0.03125, %v1582_v24  ;;  %v1579_v5 = vpop.xlane.xlu0 %1578 }
 0xc60   :  { %v1589_v47 = vmul.f32 0.03125, %v1579_v5  ;;  %v5380_v5 = vunpack.i.h.bf16 %v4267_v32 }
 0xc61   :  { %v1594_v12 = vadd.f32 1e-06, %v1590_v59 }
 0xc62   :  { %v1593_v56 = vadd.f32 1e-06, %v1589_v47 }
 0xc63   :  { %3951 = vrsqrt.f32 %v1594_v12 }
 0xc64   :  { %3953 = vrsqrt.f32 %v1593_v56  ;;  %v5381_v56 = vunpack.i.l.bf16 %v4269_v35 }
 0xc65   :  { %v1588_v8 = vpop.xlane.xlu1 %1587 }
 0xc66   :  { %v1592_v54 = vmul.f32 0.03125, %v1588_v8  ;;  %v1585_v50 = vpop.xlane.xlu0 %1584 }
 0xc67   :  { %v1591_v39 = vmul.f32 0.03125, %v1585_v50 }
 0xc68   :  { %v1596_v31 = vadd.f32 1e-06, %v1592_v54  ;;  %v5382_v54 = vunpack.i.l.bf16 %v4278_v40 }
 0xc69   :  { %v1595_v49 = vadd.f32 1e-06, %v1591_v39 }
 0xc6a   :  { %3955 = vrsqrt.f32 %v1596_v31 }
 0xc6b   :  { %3957 = vrsqrt.f32 %v1595_v49  ;;  %v5385_v49 = vunpack.i.l.bf16 %v4402_v62 }
 0xc6d   :  { %v3952_v19 = vpop.eup %3951 }
 0xc6e   :  { %v3954_v58 = vpop.eup %3953  ;;  %v1602_v38 = vmul.f32 %v3952_v19, %v1570_v16  ;;  %v5386_v19 = vunpack.i.h.bf16 %v4402_v62 }
 0xc6f   :  { %v1601_v1 = vmul.f32 %v3954_v58, %v1569_v15  ;;  %v5387_v58 = vunpack.i.l.bf16 %v4414_v10 }
 0xc70   :  { %v1610_v46 = vmul.f32 %v2877_v55, %v1602_v38 }
 0xc71   :  { %v1609_v52 = vmul.f32 %v2877_v55, %v1601_v1 }
 0xc72   :  { %v1618_v9 = vadd.f32 %v2878_v7, %v1610_v46 }
 0xc73   :  { %v1617_v34 = vadd.f32 %v2878_v7, %v1609_v52 }
 0xc74   :  { %v3956_v41 = vpop.eup %3955 }
 0xc75   :  { %v3958_v20 = vpop.eup %3957  ;;  %3242 = vmatprep.mubr.msk.f32.mxu0 %vm239_vm1, %v1617_v34  ;;  %v1604_v13 = vmul.f32 %v3956_v41, %v1572_v2 }
 0xc76   :  { %3243 = vmatmul.mubr.msk.f32.vlgmr.msra.gmra.mrb[8].mxu0 %vm239_vm1, %v1618_v9  ;;  %v1603_v4 = vmul.f32 %v3958_v20, %v1571_v63  ;;  %v5389_v9 = vunpack.i.l.bf16 %v4439_v42 }
 0xc77   :  { %v1612_v0 = vmul.f32 %v2877_v55, %v1604_v13 }
 0xc78   :  { %v1611_v51 = vmul.f32 %v2877_v55, %v1603_v4  ;;  %v5390_v4 = vunpack.i.h.bf16 %v4439_v42  ;;  %v5395_v42 = vunpack.i.h.bf16 %v4412_v11 }
 0xc79   :  { %v1620_v15 = vadd.f32 %v2878_v7, %v1612_v0  ;;  %v5391_v0 = vunpack.i.l.bf16 %v4500_v18 }
 0xc7a   :  { %v1619_v16 = vadd.f32 %v2878_v7, %v1611_v51 }
 0xc7c   :  { %3245 = vmatprep.mubr.msk.f32.mxu0 %vm239_vm1, %v1619_v16  ;;  %v5392_v16 = vunpack.i.h.bf16 %v4500_v18  ;;  %v5397_v18 = vunpack.i.l.bf16 %v4265_v33 }
 0xc7d   :  { %3246 = vmatmul.mubr.msk.f32.gmra.mrb[10].mxu0 %vm239_vm1, %v1620_v15 }
 0xd49   :  { %v3244_v53 = vpop.f32.mrb[8].mxu0 }
 0xd4a   :  { %v4855_v3 = vadd.f32 %v3244_v53, %v2879_v43  ;;  %v1703_v44 = vpop.f32.mrb[9].mxu0  ;;  %v5393_v53 = vunpack.i.h.bf16 %v4265_v33  ;;  %v5402_v33 = vunpack.i.h.bf16 %v4437_v30 }
 0xd4b   :  { %v1704_v2 = vadd.f32 %v2879_v43, %v1703_v44 }
 0xd4c   :  { %v1727_v63 = vmul.f32 %v3627_v37, %v4855_v3  ;;  %v1735_v24 = vmul.f32 %v3647_v60, %v4855_v3  ;;  %v1739_v59 = vmul.f32 %v3657_v21, %v4855_v3  ;;  %v1731_v47 = vmul.f32 %v5380_v5, %v4855_v3 }
 0xd4d   :  { %v1722_v12 = vmul.f32 0.35355338, %v1704_v2  ;;  %v1726_v8 = vmul.f32 %v5381_v56, %v1704_v2  ;;  %v1734_v50 = vmul.f32 %v5382_v54, %v1704_v2  ;;  %v5383_v37 = vunpack.i.l.bf16 %v4303_v6 }
 0xd4e   :  { %v5384_v60 = vunpack.i.l.bf16 %v4267_v32  ;;  %v1742_v21 = vmul.f32 %v5385_v49, %v1704_v2  ;;  %v1743_v55 = vmul.f32 %v5386_v19, %v4855_v3  ;;  %v1746_v35 = vmul.f32 %v5387_v58, %v1704_v2 }
 0xd4f   :  { %v1738_v39 = vmul.f32 %v5383_v37, %v1704_v2  ;;  %3280 = vmatprep.mubr.msk.f32.mxu1 %vm239_vm1, %v1722_v12  ;;  %v3783_v40 = vpack.i.bf16 %v1727_v63, %v1726_v8  ;;  %v3803_v38 = vpack.i.bf16 %v1735_v24, %v1734_v50  ;;  %v5388_v6 = vunpack.i.h.bf16 %v4414_v10 }
 0xd50   :  { %v1730_v31 = vmul.f32 %v5384_v60, %v1704_v2  ;;  %v3247_v7 = vpop.f32.mrb[10].mxu0  ;;  %v3823_v52 = vpack.i.bf16 %v1743_v55, %v1742_v21  ;;  %v4893_v20 = vmul.f32 %v5389_v9, %v1704_v2  ;;  %v4900_v10 = vmul.f32 %v5390_v4, %v4855_v3 }
 0xd51   :  { %v3813_v1 = vpack.i.bf16 %v1739_v59, %v1738_v39  ;;  %v1747_v32 = vmul.f32 %v5388_v6, %v4855_v3  ;;  %v4888_v34 = vadd.f32 %v3247_v7, %v2879_v43  ;;  %3784 = vrot.lane.b32.xlu0 %v3783_v40, %s4049_s27  ;;  %v1713_v62 = vpop.f32.mrb[11].mxu0  ;;  %v4904_v51 = vmul.f32 %v5391_v0, %v1704_v2 }
 0xd52   :  { %v3793_v46 = vpack.i.bf16 %v1731_v47, %v1730_v31  ;;  %v4895_v13 = vadd.f32 %v2879_v43, %v1713_v62  ;;  %v4909_v15 = vmul.f32 %v5392_v16, %v4855_v3  ;;  %v5394_v43 = vunpack.i.h.bf16 %v4271_v36 }
 0xd53   :  { %v3828_v41 = vpack.i.bf16 %v1747_v32, %v1746_v35  ;;  %v1729_v44 = vmul.f32 %v5393_v53, %v4888_v34  ;;  %v1745_v24 = vmul.f32 %v5395_v42, %v4888_v34  ;;  %v5396_v2 = vunpack.i.h.bf16 %v4292_v61 }
 0xd54   :  { %v1733_v63 = vmul.f32 %v5394_v43, %v4888_v34  ;;  %v1728_v5 = vmul.f32 %v5397_v18, %v4895_v13  ;;  %v5398_v47 = vunpack.i.l.bf16 %v4271_v36  ;;  %v5399_v56 = vunpack.i.l.bf16 %v4412_v11 }
 0xd55   :  { %v1737_v59 = vmul.f32 %v5396_v2, %v4888_v34  ;;  %v5400_v54 = vunpack.i.l.bf16 %v4292_v61  ;;  %3804 = vrot.lane.b32.xlu0 %v3803_v38, %s4049_s27  ;;  %v5401_v37 = vunpack.i.l.bf16 %v4437_v30  ;;  %v1749_v60 = vmul.f32 %v5402_v33, %v4888_v34 }
 0xd56   :  { %v1732_v12 = vmul.f32 %v5398_v47, %v4895_v13  ;;  %v1744_v8 = vmul.f32 %v5399_v56, %v4895_v13  ;;  %v5403_v36 = vunpack.i.l.bf16 %v4331_v25  ;;  %v5404_v11 = vunpack.i.h.bf16 %v4331_v25 }
 0xd57   :  { %v1736_v50 = vmul.f32 %v5400_v54, %v4895_v13  ;;  %v1748_v39 = vmul.f32 %v5401_v37, %v4895_v13  ;;  %v3788_v61 = vpack.i.bf16 %v1729_v44, %v1728_v5  ;;  %v3843_v30 = vpack.i.bf16 %v4900_v10, %v4893_v20 }
 0xd58   :  { %v1740_v31 = vmul.f32 %v5403_v36, %v4895_v13  ;;  %v1741_v49 = vmul.f32 %v5404_v11, %v4888_v34  ;;  %v3798_v21 = vpack.i.bf16 %v1733_v63, %v1732_v12  ;;  %v3833_v19 = vpack.i.bf16 %v1745_v24, %v1744_v8 }
 0xd59   :  { %v3808_v55 = vpack.i.bf16 %v1737_v59, %v1736_v50  ;;  %v3838_v58 = vpack.i.bf16 %v1749_v60, %v1748_v39  ;;  %3789 = vrot.lane.b32.xlu1 %v3788_v61, %s4049_s27  ;;  %v5405_v40 = vunpack.i.l.bf16 %v4459_v23  ;;  %v5406_v25 = vunpack.i.h.bf16 %v4459_v23  ;;  %3814 = vrot.lane.b32.xlu0 %v3813_v1, %s4049_s27 }
 0xd5a   :  { %v3818_v35 = vpack.i.bf16 %v1741_v49, %v1740_v31  ;;  %v3853_v32 = vpack.i.bf16 %v4909_v15, %v4904_v51  ;;  %v5407_v7 = vunpack.i.l.bf16 %v4502_v48  ;;  %v5408_v9 = vunpack.i.h.bf16 %v4502_v48 }
 0xd5b   :  { %v4954_v38 = vmul.f32 %v5405_v40, %v4895_v13  ;;  %v4959_v6 = vmul.f32 %v5406_v25, %v4888_v34 }
 0xd5c   :  { %v4967_v62 = vmul.f32 %v5407_v7, %v4895_v13  ;;  %v4972_v4 = vmul.f32 %v5408_v9, %v4888_v34 }
 0xd5d   :  { %v3848_v23 = vpack.i.bf16 %v4959_v6, %v4954_v38  ;;  %3794 = vrot.lane.b32.xlu1 %v3793_v46, %s4049_s27  ;;  %3824 = vrot.lane.b32.xlu0 %v3823_v52, %s4050_s28 }
 0xd5e   :  { %v3858_v0 = vpack.i.bf16 %v4972_v4, %v4967_v62 }
 0xd61   :  { %3799 = vrot.lane.b32.xlu1 %v3798_v21, %s4049_s27  ;;  %3834 = vrot.lane.b32.xlu0 %v3833_v19, %s4050_s28 }
 0xd65   :  { %3809 = vrot.lane.b32.xlu1 %v3808_v55, %s4049_s27  ;;  %3839 = vrot.lane.b32.xlu0 %v3838_v58, %s4050_s28 }
 0xd69   :  { %3819 = vrot.lane.b32.xlu1 %v3818_v35, %s4049_s27 }
 0xd6d   :  { %3829 = vrot.lane.b32.xlu1 %v3828_v41, %s4050_s28 }
 0xdc3   :  { %v3785_v48 = vpop.permute.xlu0 %3784 }
 0xdc4   :  { %v3787_v1 = vunpack.i.h.bf16 %v3785_v48  ;;  %v3786_v16 = vunpack.i.l.bf16 %v3785_v48 }
 0xdc6   :  { %v3506_v53 = vpack.c.bf16 %v3787_v1, %v3786_v16 }
 0xdc7   :  { %v3805_v44 = vpop.permute.xlu0 %3804 }
 0xdc8   :  { %3508 = vmatprep.subr.msk.bf16.mxu1 %vm4384_vm3, %v3506_v53  ;;  %v3807_v11 = vunpack.i.h.bf16 %v3805_v44  ;;  %v3806_v49 = vunpack.i.l.bf16 %v3805_v44 }
 0xdc9   :  { %3511 = vmatpush3.bf16.xpose.msk.msra.mxu1 %vm4384_vm3, %v3506_v53 }
 0xdca   :  { %v3530_v40 = vpack.c.bf16 %v3807_v11, %v3806_v49 }
 0xdcb   :  { %v3790_v46 = vpop.permute.xlu1 %3789  ;;  %v3815_v63 = vpop.permute.xlu0 %3814 }
 0xdcc   :  { %v3792_v52 = vunpack.i.h.bf16 %v3790_v46  ;;  %v3791_v43 = vunpack.i.l.bf16 %v3790_v46  ;;  %v3817_v16 = vunpack.i.h.bf16 %v3815_v63  ;;  %v3816_v53 = vunpack.i.l.bf16 %v3815_v63 }
 0xdcd   :  { %v1723_v63 = vmul.f32 0.35355338, %v4855_v3 }
 0xdce   :  { %v3512_v42 = vpack.c.bf16 %v3792_v52, %v3791_v43  ;;  %v3542_v44 = vpack.c.bf16 %v3817_v16, %v3816_v53 }
 0xdcf   :  { %v3795_v24 = vpop.permute.xlu1 %3794  ;;  %v3825_v41 = vpop.permute.xlu0 %3824 }
 0xdd0   :  { %v3797_v2 = vunpack.i.h.bf16 %v3795_v24  ;;  %v3796_v59 = vunpack.i.l.bf16 %v3795_v24  ;;  %3514 = vmatprep.subr.msk.bf16.mxu1 %vm4384_vm3, %v3512_v42  ;;  %v3827_v18 = vunpack.i.h.bf16 %v3825_v41  ;;  %v3826_v5 = vunpack.i.l.bf16 %v3825_v41 }
 0xdd1   :  { %3517 = vmatpush3.bf16.xpose.msk.msra.mxu1 %vm4384_vm3, %v3512_v42  ;;  %v1724_v42 = vmul.f32 0.35355338, %v4895_v13  ;;  %v1725_v24 = vmul.f32 0.35355338, %v4888_v34 }
 0xdd2   :  { %v3518_v47 = vpack.c.bf16 %v3797_v2, %v3796_v59  ;;  %v3554_v12 = vpack.c.bf16 %v3827_v18, %v3826_v5 }
 0xdd3   :  { %v3800_v56 = vpop.permute.xlu1 %3799  ;;  %v3835_v8 = vpop.permute.xlu0 %3834 }
 0xdd4   :  { %3520 = vmatprep.subr.msk.bf16.mxu1 %vm4384_vm3, %v3518_v47  ;;  %v3802_v54 = vunpack.i.h.bf16 %v3800_v56  ;;  %v3801_v50 = vunpack.i.l.bf16 %v3800_v56  ;;  %v3837_v37 = vunpack.i.h.bf16 %v3835_v8  ;;  %v3836_v39 = vunpack.i.l.bf16 %v3835_v8  ;;  %3555 = vmatprep.subr.bf16.mxu0 %v3554_v12 }
 0xdd5   :  { %3557 = vmatpush3.bf16.msra.mxu0 %v3554_v12 }
 0xdd6   :  { %v3558_v33 = vpack.c.bf16 %v3837_v37, %v3836_v39  ;;  %v3524_v36 = vpack.c.bf16 %v3802_v54, %v3801_v50 }
 0xdd7   :  { %v3810_v60 = vpop.permute.xlu1 %3809  ;;  %v3840_v61 = vpop.permute.xlu0 %3839 }
 0xdd8   :  { %3559 = vmatprep.subr.bf16.mxu0 %v3558_v33  ;;  %v3842_v19 = vunpack.i.h.bf16 %v3840_v61  ;;  %v3841_v55 = vunpack.i.l.bf16 %v3840_v61  ;;  %v3812_v9 = vunpack.i.h.bf16 %v3810_v60  ;;  %v3811_v48 = vunpack.i.l.bf16 %v3810_v60 }
 0xdd9   :  { %3523 = vmatpush3.bf16.xpose.msk.msra.mxu1 %vm4384_vm3, %v3518_v47  ;;  %3561 = vmatpush3.bf16.msra.mxu0 %v3558_v33 }
 0xdda   :  { %3526 = vmatprep.subr.msk.bf16.mxu1 %vm4384_vm3, %v3524_v36  ;;  %v3566_v7 = vpack.c.bf16 %v3842_v19, %v3841_v55  ;;  %v3536_v1 = vpack.c.bf16 %v3812_v9, %v3811_v48 }
 0xddb   :  { %v3820_v31 = vpop.permute.xlu1 %3819 }
 0xddc   :  { %v3822_v46 = vunpack.i.h.bf16 %v3820_v31  ;;  %v3821_v52 = vunpack.i.l.bf16 %v3820_v31 }
 0xdde   :  { %v3548_v43 = vpack.c.bf16 %v3822_v46, %v3821_v52 }
 0xddf   :  { %v3830_v21 = vpop.permute.xlu1 %3829 }
 0xde0   :  { %v3832_v58 = vunpack.i.h.bf16 %v3830_v21  ;;  %v3831_v35 = vunpack.i.l.bf16 %v3830_v21 }
 0xde1   :  { %3529 = vmatpush3.bf16.xpose.msk.msra.mxu1 %vm4384_vm3, %v3524_v36 }
 0xde2   :  { %v3562_v25 = vpack.c.bf16 %v3832_v58, %v3831_v35  ;;  %3532 = vmatprep.subr.msk.bf16.mxu1 %vm4384_vm3, %v3530_v40 }
 0xde4   :  { %3563 = vmatprep.subr.bf16.mxu0 %v3562_v25 }
 0xde5   :  { %3565 = vmatpush3.bf16.msra.mxu0 %v3562_v25 }
 0xde6   :  { %3567 = vmatprep.subr.bf16.mxu0 %v3566_v7 }
 0xde9   :  { %3569 = vmatpush3.bf16.msra.mxu0 %v3566_v7  ;;  %3535 = vmatpush3.bf16.xpose.msk.msra.mxu1 %vm4384_vm3, %v3530_v40 }
 0xdea   :  { %3538 = vmatprep.subr.msk.bf16.mxu1 %vm4384_vm3, %v3536_v1 }
 0xdf1   :  { %3541 = vmatpush3.bf16.xpose.msk.msra.mxu1 %vm4384_vm3, %v3536_v1 }
 0xdf2   :  { %3544 = vmatprep.subr.msk.bf16.mxu1 %vm4384_vm3, %v3542_v44 }
 0xdf9   :  { %3547 = vmatpush3.bf16.xpose.msk.msra.mxu1 %vm4384_vm3, %v3542_v44 }
 0xdfa   :  { %3550 = vmatprep.subr.msk.bf16.mxu1 %vm4384_vm3, %v3548_v43 }
 0xe01   :  { %3553 = vmatpush3.bf16.xpose.msk.msra.mxu1 %vm4384_vm3, %v3548_v43 }
 0xe08   :  { %3281 = vmatmul.mubr.msk.f32.vlgmr.msra.gmra.mrb[20].mxu1 %vm239_vm1, %v1723_v63 }
 0xe09   :  { %3283 = vmatprep.mubr.msk.f32.mxu1 %vm239_vm1, %v1724_v42 }
 0xe0c   :  { %3284 = vmatmul.mubr.msk.f32.gmra.mrb[22].mxu1 %vm239_vm1, %v1725_v24 }
 0xedb   :  { %v3282_v2 = vpop.f32.mrb[20].mxu1 }
 0xedc   :  { %v5025_v59 = vadd.f32 %v3282_v2, %v4507_v26  ;;  %v1916_v41 = vpop.f32.mrb[21].mxu1 }
 0xedd   :  { %v5028_v17 = vadd.f32 %v1916_v41, %v4509_v14 }
 0xede   :  { %v2042_v3 = vsel %vm840_vm6, %v5025_v59, -inf  ;;  %v1982_v13 = vsel %vm779_vm7, %v5025_v59, -inf  ;;  %v2102_v5 = vsel %vm901_vm8, %v5025_v59, -inf  ;;  %v1938_v47 = vsel %vm239_vm1, %v5025_v59, -inf }
 0xedf   :  { %2043 = vmax.xlane.f32.xlu0 %v2042_v3  ;;  %1983 = vmax.xlane.f32.xlu1 %v1982_v13  ;;  %v3285_v18 = vpop.f32.mrb[22].mxu1  ;;  %v1979_v26 = vsel %vm779_vm7, %v5028_v17, -inf  ;;  %v2039_v12 = vsel %vm840_vm6, %v5028_v17, -inf  ;;  %v2099_v8 = vsel %vm901_vm8, %v5028_v17, -inf  ;;  %v1935_v50 = vsel %vm239_vm1, %v5028_v17, -inf }
 0xee0   :  { %v1926_v34 = vpop.f32.mrb[23].mxu1  ;;  %v5039_v14 = vadd.f32 %v3285_v18, %v4526_v27 }
 0xee1   :  { %v5050_v54 = vadd.f32 %v1926_v34, %v4540_v45 }
 0xee2   :  { %v1988_v56 = vsel %vm779_vm7, %v5039_v14, -inf  ;;  %v2048_v27 = vsel %vm840_vm6, %v5039_v14, -inf  ;;  %v2108_v37 = vsel %vm901_vm8, %v5039_v14, -inf  ;;  %v1944_v45 = vsel %vm239_vm1, %v5039_v14, -inf }
 0xee3   :  { %2103 = vmax.xlane.f32.xlu1 %v2102_v5  ;;  %1980 = vmax.xlane.f32.xlu0 %v1979_v26  ;;  %v1985_v39 = vsel %vm779_vm7, %v5050_v54, -inf  ;;  %v2045_v33 = vsel %vm840_vm6, %v5050_v54, -inf  ;;  %v2105_v60 = vsel %vm901_vm8, %v5050_v54, -inf  ;;  %v1941_v36 = vsel %vm239_vm1, %v5050_v54, -inf }
 0xee7   :  { %1939 = vmax.xlane.f32.xlu1 %v1938_v47  ;;  %2040 = vmax.xlane.f32.xlu0 %v2039_v12 }
 0xeeb   :  { %1989 = vmax.xlane.f32.xlu1 %v1988_v56  ;;  %2100 = vmax.xlane.f32.xlu0 %v2099_v8 }
 0xeef   :  { %2049 = vmax.xlane.f32.xlu1 %v2048_v27  ;;  %1936 = vmax.xlane.f32.xlu0 %v1935_v50 }
 0xef3   :  { %2109 = vmax.xlane.f32.xlu1 %v2108_v37  ;;  %1986 = vmax.xlane.f32.xlu0 %v1985_v39 }
 0xef7   :  { %1945 = vmax.xlane.f32.xlu1 %v1944_v45  ;;  %2046 = vmax.xlane.f32.xlu0 %v2045_v33 }
 0xefb   :  { %2106 = vmax.xlane.f32.xlu0 %v2105_v60 }
 0xeff   :  { %1942 = vmax.xlane.f32.xlu0 %v1941_v36 }
 0xf6c   :  { %v2044_v31 = vpop.xlane.xlu0 %2043  ;;  %v1984_v11 = vpop.xlane.xlu1 %1983 }
 0xf6d   :  { %v2052_v49 = vsub.f32 %v5025_v59, %v2044_v31  ;;  %v1992_v61 = vsub.f32 %v5025_v59, %v1984_v11 }
 0xf6f   :  { %v1997_v21 = vmul.f32 1.442695, %v1992_v61  ;;  %v2057_v58 = vmul.f32 1.442695, %v2052_v49 }
 0xf70   :  { %v2104_v19 = vpop.xlane.xlu1 %2103  ;;  %v1981_v55 = vpop.xlane.xlu0 %1980 }
 0xf71   :  { %v1991_v35 = vsub.f32 %v5028_v17, %v1981_v55  ;;  %3959 = vpow2.f32 %v1997_v21  ;;  %v2112_v40 = vsub.f32 %v5025_v59, %v2104_v19 }
 0xf72   :  { %3961 = vpow2.f32 %v2057_v58 }
 0xf73   :  { %v1995_v25 = vmul.f32 1.442695, %v1991_v35  ;;  %v2117_v48 = vmul.f32 1.442695, %v2112_v40 }
 0xf74   :  { %v2041_v7 = vpop.xlane.xlu0 %2040  ;;  %v1940_v2 = vpop.xlane.xlu1 %1939 }
 0xf75   :  { %v2051_v9 = vsub.f32 %v5028_v17, %v2041_v7  ;;  %3963 = vpow2.f32 %v1995_v25  ;;  %v1948_v41 = vsub.f32 %v5025_v59, %v1940_v2 }
 0xf76   :  { %3965 = vpow2.f32 %v2117_v48 }
 0xf77   :  { %v2055_v16 = vmul.f32 1.442695, %v2051_v9  ;;  %v1953_v13 = vmul.f32 1.442695, %v1948_v41 }
 0xf78   :  { %v2101_v1 = vpop.xlane.xlu0 %2100  ;;  %v1990_v5 = vpop.xlane.xlu1 %1989 }
 0xf79   :  { %v2111_v53 = vsub.f32 %v5028_v17, %v2101_v1  ;;  %3967 = vpow2.f32 %v2055_v16  ;;  %v1994_v59 = vsub.f32 %v5039_v14, %v1990_v5 }
 0xf7b   :  { %v2115_v44 = vmul.f32 1.442695, %v2111_v53  ;;  %v5074_v46 = vpop.eup %3959  ;;  %v2001_v37 = vmul.f32 1.442695, %v1994_v59 }
 0xf7c   :  { %2009 = vrot.lane.b32.xlu1 %v5074_v46, %s4049_s27  ;;  %v5078_v52 = vpop.eup %3961  ;;  %v1937_v3 = vpop.xlane.xlu0 %1936 }
 0xf7d   :  { %3969 = vpow2.f32 %v2115_v44  ;;  %v1947_v18 = vsub.f32 %v5028_v17, %v1937_v3  ;;  %v2050_v8 = vpop.xlane.xlu1 %2049 }
 0xf7e   :  { %3971 = vpow2.f32 %v1953_v13  ;;  %v2054_v39 = vsub.f32 %v5039_v14, %v2050_v8 }
 0xf7f   :  { %v5080_v43 = vpop.eup %3963  ;;  %v1951_v34 = vmul.f32 1.442695, %v1947_v18 }
 0xf80   :  { %2069 = vrot.lane.b32.xlu1 %v5078_v52, %s4050_s28  ;;  %2007 = vrot.lane.b32.xlu0 %v5080_v43, %s4049_s27  ;;  %v5086_v63 = vpop.eup %3965  ;;  %v1987_v47 = vpop.xlane.xlu0 %1986  ;;  %v2061_v31 = vmul.f32 1.442695, %v2054_v39 }
 0xf81   :  { %3973 = vpow2.f32 %v1951_v34  ;;  %v1993_v50 = vsub.f32 %v5050_v54, %v1987_v47  ;;  %v2110_v45 = vpop.xlane.xlu1 %2109 }
 0xf82   :  { %3975 = vpow2.f32 %v2001_v37  ;;  %v2114_v11 = vsub.f32 %v5039_v14, %v2110_v45 }
 0xf83   :  { %v5090_v42 = vpop.eup %3967  ;;  %v1999_v33 = vmul.f32 1.442695, %v1993_v50 }
 0xf84   :  { %2129 = vrot.lane.b32.xlu1 %v5086_v63, %s4048_s20  ;;  %v2047_v27 = vpop.xlane.xlu0 %2046  ;;  %v2121_v21 = vmul.f32 1.442695, %v2114_v11 }
 0xf85   :  { %v2053_v60 = vsub.f32 %v5050_v54, %v2047_v27  ;;  %3977 = vpow2.f32 %v1999_v33  ;;  %v1946_v9 = vpop.xlane.xlu1 %1945 }
 0xf86   :  { %3979 = vpow2.f32 %v2061_v31  ;;  %v1950_v48 = vsub.f32 %v5039_v14, %v1946_v9 }
 0xf87   :  { %v5092_v24 = vpop.eup %3969  ;;  %v2059_v49 = vmul.f32 1.442695, %v2053_v60 }
 0xf88   :  { %2067 = vrot.lane.b32.xlu1 %v5090_v42, %s4050_s28  ;;  %2127 = vrot.lane.b32.xlu0 %v5092_v24, %s4048_s20  ;;  %v5100_v26 = vpop.eup %3971  ;;  %v2107_v36 = vpop.xlane.xlu0 %2106  ;;  %v1957_v16 = vmul.f32 1.442695, %v1950_v48 }
 0xf89   :  { %v1962_v12 = vsel %vm239_vm1, %v5100_v26, 0.0  ;;  %v2113_v61 = vsub.f32 %v5050_v54, %v2107_v36  ;;  %3981 = vpow2.f32 %v2059_v49 }
 0xf8a   :  { %3983 = vpow2.f32 %v2121_v21 }
 0xf8b   :  { %v5104_v56 = vpop.eup %3973  ;;  %v2119_v19 = vmul.f32 1.442695, %v2113_v61 }
 0xf8c   :  { %v1959_v17 = vsel %vm239_vm1, %v5104_v56, 0.0  ;;  %v5114_v55 = vpop.eup %3975  ;;  %v1943_v1 = vpop.xlane.xlu0 %1942 }
 0xf8d   :  { %3985 = vpow2.f32 %v2119_v19  ;;  %v1949_v53 = vsub.f32 %v5050_v54, %v1943_v1 }
 0xf8e   :  { %3987 = vpow2.f32 %v1957_v16 }
 0xf8f   :  { %v5116_v58 = vpop.eup %3977  ;;  %v1955_v44 = vmul.f32 1.442695, %v1949_v53 }
 0xf90   :  { %v5122_v35 = vpop.eup %3979 }
 0xf91   :  { %3989 = vpow2.f32 %v1955_v44 }
 0xf93   :  { %v5124_v40 = vpop.eup %3981 }
 0xf94   :  { %v5130_v25 = vpop.eup %3983 }
 0xf97   :  { %v5132_v7 = vpop.eup %3985 }
 0xf98   :  { %v5140_v2 = vpop.eup %3987 }
 0xf99   :  { %v1968_v41 = vsel %vm239_vm1, %v5140_v2, 0.0 }
 0xf9b   :  { %v5144_v3 = vpop.eup %3989 }
 0xf9c   :  { %v1965_v13 = vsel %vm239_vm1, %v5144_v3, 0.0 }
 0xfa7   :  { %1963 = vadd.xlane.f32.xlu0 %v1962_v12 }
 0xfac   :  { %1960 = vadd.xlane.f32.xlu1 %v1959_v17 }
 0xfbd   :  { %2013 = vrot.lane.b32.xlu1 %v5114_v55, %s4049_s27  ;;  %2011 = vrot.lane.b32.xlu0 %v5116_v58, %s4049_s27 }
 0xfc1   :  { %2073 = vrot.lane.b32.xlu1 %v5122_v35, %s4050_s28  ;;  %2071 = vrot.lane.b32.xlu0 %v5124_v40, %s4050_s28 }
 0xfc5   :  { %2133 = vrot.lane.b32.xlu1 %v5130_v25, %s4048_s20  ;;  %2131 = vrot.lane.b32.xlu0 %v5132_v7, %s4048_s20 }
 0xfe9   :  { %1969 = vadd.xlane.f32.xlu1 %v1968_v41 }
 0xfed   :  { %1966 = vadd.xlane.f32.xlu1 %v1965_v13 }
 0xfee   :  { %v2010_v14 = vpop.permute.xlu1 %2009 }
 0xfef   :  { %v2022_v18 = vsel %vm239_vm1, %v2010_v14, 0.0 }
 0xff0   :  { %2023 = vadd.xlane.f32.xlu0 %v2022_v18 }
 0xff2   :  { %v2070_v54 = vpop.permute.xlu1 %2069  ;;  %v2008_v34 = vpop.permute.xlu0 %2007 }
 0xff3   :  { %v2082_v5 = vsel %vm239_vm1, %v2070_v54, 0.0  ;;  %v2019_v47 = vsel %vm239_vm1, %v2008_v34, 0.0 }
 0xff4   :  { %2083 = vadd.xlane.f32.xlu1 %v2082_v5  ;;  %2020 = vadd.xlane.f32.xlu0 %v2019_v47 }
 0xff6   :  { %v2130_v12 = vpop.permute.xlu1 %2129 }
 0xff7   :  { %v2142_v8 = vsel %vm239_vm1, %v2130_v12, 0.0 }
 0xff8   :  { %2143 = vadd.xlane.f32.xlu1 %v2142_v8 }
 0xffa   :  { %v2068_v59 = vpop.permute.xlu1 %2067  ;;  %v2128_v50 = vpop.permute.xlu0 %2127 }
 0xffb   :  { %v2079_v27 = vsel %vm239_vm1, %v2068_v59, 0.0  ;;  %v2139_v17 = vsel %vm239_vm1, %v2128_v50, 0.0 }
 0xffc   :  { %2080 = vadd.xlane.f32.xlu1 %v2079_v27 }
0x1000   :  { %2140 = vadd.xlane.f32.xlu1 %v2139_v17 }
0x1034   :  { %v1964_v39 = vpop.xlane.xlu0 %1963 }
0x1035   :  { %3991 = vrcp.f32 %v1964_v39 }
0x1038   :  { %v2012_v60 = vpop.permute.xlu0 %2011 }
0x1039   :  { %v1961_v37 = vpop.xlane.xlu1 %1960  ;;  %v2025_v49 = vsel %vm239_vm1, %v2012_v60, 0.0 }
0x103c   :  { %v2072_v21 = vpop.permute.xlu0 %2071 }
0x103d   :  { %v2014_v45 = vpop.permute.xlu1 %2013  ;;  %v2085_v19 = vsel %vm239_vm1, %v2072_v21, 0.0 }
0x103e   :  { %v2028_v33 = vsel %vm239_vm1, %v2014_v45, 0.0 }
0x103f   :  { %2029 = vadd.xlane.f32.xlu0 %v2028_v33  ;;  %v3992_v6 = vpop.eup %3991 }
0x1040   :  { %v2132_v48 = vpop.permute.xlu0 %2131  ;;  %v1974_v51 = vmul.f32 %v3992_v6, %v5100_v26 }
0x1041   :  { %v2074_v36 = vpop.permute.xlu1 %2073  ;;  %v2145_v20 = vsel %vm239_vm1, %v2132_v48, 0.0 }
0x1042   :  { %v2088_v31 = vsel %vm239_vm1, %v2074_v36, 0.0 }
0x1043   :  { %2089 = vadd.xlane.f32.xlu1 %v2088_v31 }
0x1045   :  { %v2134_v11 = vpop.permute.xlu1 %2133 }
0x1046   :  { %v2148_v61 = vsel %vm239_vm1, %v2134_v11, 0.0 }
0x1047   :  { %2149 = vadd.xlane.f32.xlu0 %v2148_v61  ;;  %2026 = vadd.xlane.f32.xlu1 %v2025_v49 }
0x104b   :  { %2086 = vadd.xlane.f32.xlu1 %v2085_v19 }
0x105c   :  { %3844 = vrot.lane.b32.xlu1 %v3843_v30, %s4050_s28 }
0x105d   :  { %3849 = vrot.lane.b32.xlu0 %v3848_v23, %s4050_s28 }
0x1061   :  { %3854 = vrot.lane.b32.xlu0 %v3853_v32, %s4050_s28 }
0x1076   :  { %v5171_v9 = vpop.xlane.xlu1 %1969 }
0x107a   :  { %v5173_v1 = vpop.xlane.xlu1 %1966 }
0x107d   :  { %v2024_v16 = vpop.xlane.xlu0 %2023 }
0x107e   :  { %3993 = vrcp.f32 %v2024_v16  ;;  %v2861_v16 = vld [vmem:[%s5346_s3 + $0xc0] sm:$0xff] }
0x1080   :  { %2146 = vadd.xlane.f32.xlu0 %v2145_v20 }
0x1081   :  { %v2084_v10 = vpop.xlane.xlu1 %2083  ;;  %v2021_v30 = vpop.xlane.xlu0 %2020 }
0x1082   :  { %3995 = vrcp.f32 %v2084_v10 }
0x1085   :  { %v2144_v38 = vpop.xlane.xlu1 %2143 }
0x1086   :  { %3997 = vrcp.f32 %v2144_v38 }
0x1087   :  { %3999 = vrcp.f32 %v2021_v30 }
0x1088   :  { %v3994_v23 = vpop.eup %3993  ;;  %4001 = vrcp.f32 %v1961_v37 }
0x1089   :  { %v2034_v15 = vmul.f32 %v3994_v23, %v5074_v46  ;;  %v2081_v32 = vpop.xlane.xlu1 %2080 }
0x108a   :  { %4003 = vrcp.f32 %v2081_v32  ;;  %v2863_v32 = vld [vmem:[%s5346_s3 + $0xd0] sm:$0xff] }
0x108b   :  { %v2160_v53 = vsel %vm239_vm1, %v1974_v51, %v2034_v15 }
0x108c   :  { %v3996_v44 = vpop.eup %3995 }
0x108d   :  { %v2094_v41 = vmul.f32 %v3996_v44, %v5078_v52  ;;  %v2141_v13 = vpop.xlane.xlu1 %2140 }
0x108e   :  { %4005 = vrcp.f32 %v2141_v13 }
0x108f   :  { %v2164_v14 = vsel %vm966_vm11, %v2160_v53, %v2094_v41  ;;  %4007 = vrcp.f32 %v5171_v9  ;;  %v2862_v9 = vld [vmem:[%s5346_s3 + $0xc8] sm:$0xff]  ;;  %v2864_v53 = vld [vmem:[%s5346_s3 + $0xd8] sm:$0xff] }
0x1090   :  { %v3998_v18 = vpop.eup %3997  ;;  %4009 = vrcp.f32 %v5173_v1  ;;  %v3586_v23 = vpack.c.bf16 %v2862_v9, %v2861_v16 }
0x1091   :  { %v2154_v54 = vmul.f32 %v3998_v18, %v5086_v63  ;;  %v4000_v34 = vpop.eup %3999 }
0x1092   :  { %v4002_v5 = vpop.eup %4001  ;;  %v2032_v47 = vmul.f32 %v4000_v34, %v5080_v43 }
0x1093   :  { %v5183_v26 = vsel %vm971_vm12, %v2164_v14, %v2154_v54  ;;  %v1972_v12 = vmul.f32 %v4002_v5, %v5104_v56  ;;  %v3590_v54 = vpack.c.bf16 %v2864_v53, %v2863_v32 }
0x1094   :  { %v4004_v46 = vpop.eup %4003 }
0x1095   :  { %v2092_v52 = vmul.f32 %v4004_v46, %v5090_v42  ;;  %v2159_v59 = vsel %vm239_vm1, %v1972_v12, %v2032_v47  ;;  %v2904_v12 = vld [vmem:[%s5347_s4 + $0xb] ss:$0 sm:$0xff] }
0x1096   :  { %3859 = vrot.lane.b32.xlu0 %v3858_v0, %s4050_s28 }
0x1097   :  { %v2163_v27 = vsel %vm966_vm11, %v2159_v59, %v2092_v52 }
0x1098   :  { %v4006_v8 = vpop.eup %4005 }
0x1099   :  { %v2152_v63 = vmul.f32 %v4006_v8, %v5092_v24  ;;  %v4008_v21 = vpop.eup %4007 }
0x109a   :  { %v4010_v19 = vpop.eup %4009  ;;  %v1978_v46 = vmul.f32 %v4008_v21, %v5140_v2 }
0x109b   :  { %v2167_v50 = vsel %vm971_vm12, %v2163_v27, %v2152_v63  ;;  %v1976_v13 = vmul.f32 %v4010_v19, %v5144_v3 }
0x109c   :  { %3318 = vmatprep.mubr.f32.mxu0 %v2167_v50 }
0x10cc   :  { %v2030_v43 = vpop.xlane.xlu0 %2029 }
0x10d0   :  { %v2090_v17 = vpop.xlane.xlu1 %2089 }
0x10d4   :  { %v2027_v37 = vpop.xlane.xlu1 %2026  ;;  %v2150_v39 = vpop.xlane.xlu0 %2149 }
0x10d5   :  { %4011 = vrcp.f32 %v2027_v37 }
0x10d8   :  { %v2087_v62 = vpop.xlane.xlu1 %2086  ;;  %v3850_v4 = vpop.permute.xlu0 %3849 }
0x10d9   :  { %v3852_v42 = vunpack.i.h.bf16 %v3850_v4  ;;  %v3851_v45 = vunpack.i.l.bf16 %v3850_v4  ;;  %4013 = vrcp.f32 %v2087_v62 }
0x10da   :  { %4015 = vrcp.f32 %v2030_v43 }
0x10db   :  { %v3574_v36 = vpack.c.bf16 %v3852_v42, %v3851_v45  ;;  %4017 = vrcp.f32 %v2090_v17 }
0x10dc   :  { %v3845_v0 = vpop.permute.xlu1 %3844  ;;  %v3855_v60 = vpop.permute.xlu0 %3854  ;;  %4019 = vrcp.f32 %v2150_v39 }
0x10dd   :  { %v3847_v56 = vunpack.i.h.bf16 %v3845_v0  ;;  %v3846_v33 = vunpack.i.l.bf16 %v3845_v0  ;;  %v3857_v31 = vunpack.i.h.bf16 %v3855_v60  ;;  %v3856_v11 = vunpack.i.l.bf16 %v3855_v60 }
0x10df   :  { %v3570_v24 = vpack.c.bf16 %v3847_v56, %v3846_v33  ;;  %v3578_v49 = vpack.c.bf16 %v3857_v31, %v3856_v11  ;;  %v4012_v20 = vpop.eup %4011 }
0x10e0   :  { %v2036_v15 = vmul.f32 %v4012_v20, %v5116_v58 }
0x10e1   :  { %3571 = vmatprep.subr.bf16.mxu0 %v3570_v24 }
0x10e2   :  { %3573 = vmatpush3.bf16.msra.mxu0 %v3570_v24  ;;  %v2161_v5 = vsel %vm239_vm1, %v1976_v13, %v2036_v15  ;;  %v2868_v15 = vld [vmem:[%s5346_s3 + $0xf8] sm:$0xff] }
0x10e3   :  { %3575 = vmatprep.subr.bf16.mxu0 %v3574_v36  ;;  %v4014_v30 = vpop.eup %4013 }
0x10e4   :  { %v4016_v38 = vpop.eup %4015  ;;  %v2096_v41 = vmul.f32 %v4014_v30, %v5124_v40 }
0x10e5   :  { %v4018_v51 = vpop.eup %4017  ;;  %v2038_v14 = vmul.f32 %v4016_v38, %v5114_v55  ;;  %v2865_v38 = vld [vmem:[%s5346_s3 + $0xe0] sm:$0xff] }
0x10e6   :  { %3577 = vmatpush3.bf16.msra.mxu0 %v3574_v36  ;;  %v4020_v44 = vpop.eup %4019  ;;  %v2098_v58 = vmul.f32 %v4018_v51, %v5122_v35  ;;  %v2165_v40 = vsel %vm966_vm11, %v2161_v5, %v2096_v41 }
0x10e7   :  { %3579 = vmatprep.subr.bf16.mxu0 %v3578_v49  ;;  %v2158_v47 = vmul.f32 %v4020_v44, %v5130_v25  ;;  %v2162_v55 = vsel %vm239_vm1, %v1978_v46, %v2038_v14 }
0x10e8   :  { %v2166_v35 = vsel %vm966_vm11, %v2162_v55, %v2098_v58 }
0x10ea   :  { %3581 = vmatpush3.bf16.msra.mxu0 %v3578_v49 }
0x110d   :  { %v2147_v61 = vpop.xlane.xlu0 %2146 }
0x110e   :  { %4021 = vrcp.f32 %v2147_v61 }
0x1111   :  { %v3860_v48 = vpop.permute.xlu0 %3859 }
0x1112   :  { %v3862_v1 = vunpack.i.h.bf16 %v3860_v48  ;;  %v3861_v10 = vunpack.i.l.bf16 %v3860_v48 }
0x1114   :  { %v3582_v6 = vpack.c.bf16 %v3862_v1, %v3861_v10 }
0x1116   :  { %3583 = vmatprep.subr.bf16.mxu0 %v3582_v6 }
0x1117   :  { %3585 = vmatpush3.bf16.msra.mxu0 %v3582_v6  ;;  %v2866_v6 = vld [vmem:[%s5346_s3 + $0xe8] sm:$0xff] }
0x1118   :  { %v4022_v18 = vpop.eup %4021  ;;  %3587 = vmatprep.subr.bf16.mxu0 %v3586_v23  ;;  %v3594_v51 = vpack.c.bf16 %v2866_v6, %v2865_v38 }
0x1119   :  { %v2156_v34 = vmul.f32 %v4022_v18, %v5132_v7  ;;  %v2170_v7 = vsel %vm971_vm12, %v2166_v35, %v2158_v47 }
0x111a   :  { %3319 = vmatmul.mubr.f32.vlgmr.msra.gmra.mrb[12].mxu0 %v5183_v26 }
0x111b   :  { %v2169_v3 = vsel %vm971_vm12, %v2165_v40, %v2156_v34  ;;  %3589 = vmatpush3.bf16.msra.mxu0 %v3586_v23  ;;  %v2867_v23 = vld [vmem:[%s5346_s3 + $0xf0] sm:$0xff] }
0x111c   :  { %3321 = vmatprep.mubr.f32.mxu0 %v2169_v3  ;;  %3591 = vmatprep.subr.bf16.mxu0 %v3590_v54  ;;  %v3598_v32 = vpack.c.bf16 %v2868_v15, %v2867_v23  ;;  %v2909_v3 = vld [vmem:[%s5347_s4 + $0xc] ss:$0 sm:$0xff] }
0x111e   :  { %3322 = vmatmul.mubr.f32.gmra.mrb[14].mxu0 %v2170_v7 }
0x111f   :  { %3593 = vmatpush3.bf16.msra.mxu0 %v3590_v54 }
0x1120   :  { %3595 = vmatprep.subr.bf16.mxu0 %v3594_v51 }
0x11ed   :  { %v3320_v2 = vpop.f32.mrb[12].mxu0 }
0x11ee   :  { %v2301_v52 = vpop.f32.mrb[13].mxu0 }
0x11ef   :  { %3332 = vmatprep.mubr.msk.f32.mxu0 %vm239_vm1, %v2301_v52 }
0x11f0   :  { %3333 = vmatmul.mubr.msk.f32.vlgmr.msra.gmra.mrb[16].mxu0 %vm239_vm1, %v3320_v2  ;;  %v2910_v2 = vld [vmem:[%s5347_s4 + $0xd] ss:$0 sm:$0xff] }
0x11f1   :  { %v3323_v25 = vpop.f32.mrb[14].mxu0  ;;  %3597 = vmatpush3.bf16.msra.mxu0 %v3594_v51 }
0x11f2   :  { %v2311_v26 = vpop.f32.mrb[15].mxu0  ;;  %3599 = vmatprep.subr.bf16.mxu0 %v3598_v32 }
0x11f3   :  { %3335 = vmatprep.mubr.msk.f32.mxu0 %vm239_vm1, %v2311_v26 }
0x11f4   :  { %3336 = vmatmul.mubr.msk.f32.gmra.mrb[18].mxu0 %vm239_vm1, %v3323_v25 }
0x11f5   :  { %3601 = vmatpush3.bf16.msra.mxu0 %v3598_v32 }
0x12c3   :  { %v3334_v8 = vpop.f32.mrb[16].mxu0 }
0x12c4   :  { %v2408_v63 = vadd.f32 %v3334_v8, %v2904_v12  ;;  %v2402_v59 = vpop.f32.mrb[17].mxu0 }
0x12c5   :  { %v2403_v27 = vadd.f32 %v2904_v12, %v2402_v59 }
0x12c6   :  { %v5233_v50 = vadd.f32 %v2408_v63, %v4803_v22 }
0x12c7   :  { %v5236_v43 = vadd.f32 %v2403_v27, %v4806_v29  ;;  %v3337_v17 = vpop.f32.mrb[18].mxu0 }
0x12c8   :  { %v2412_v37 = vpop.f32.mrb[19].mxu0  ;;  %v2428_v39 = vsel %vm239_vm1, %v5233_v50, 0.0  ;;  %v2418_v62 = vadd.f32 %v3337_v17, %v2904_v12 }
0x12c9   :  { %v2413_v4 = vadd.f32 %v2904_v12, %v2412_v37  ;;  %2429 = vadd.xlane.f32.xlu1 %v2428_v39  ;;  %v2425_v0 = vsel %vm239_vm1, %v5236_v43, 0.0 }
0x12ca   :  { %2426 = vadd.xlane.f32.xlu0 %v2425_v0  ;;  %v5246_v22 = vadd.f32 %v2418_v62, %v4813_v28  ;;  %v2870_v0 = vld [vmem:[%s5346_s3 + $0x108] sm:$0xff] }
0x12cb   :  { %v5243_v42 = vadd.f32 %v2413_v4, %v4816_v57  ;;  %v2869_v4 = vld [vmem:[%s5346_s3 + $0x100] sm:$0xff] }
0x12cc   :  { %v2434_v45 = vsel %vm239_vm1, %v5246_v22, 0.0 }
0x12cd   :  { %v2431_v29 = vsel %vm239_vm1, %v5243_v42, 0.0 }
0x12ce   :  { %2432 = vadd.xlane.f32.xlu0 %v2431_v29  ;;  %v3602_v29 = vpack.c.bf16 %v2870_v0, %v2869_v4 }
0x12d0   :  { %3603 = vmatprep.subr.bf16.mxu0 %v3602_v29 }
0x12d2   :  { %2435 = vadd.xlane.f32.xlu0 %v2434_v45  ;;  %v2871_v45 = vld [vmem:[%s5346_s3 + $0x110] sm:$0xff] }
0x1356   :  { %v2430_v56 = vpop.xlane.xlu1 %2429 }
0x1357   :  { %v2438_v33 = vmul.f32 0.03125, %v2430_v56  ;;  %v2427_v60 = vpop.xlane.xlu0 %2426  ;;  %v2872_v56 = vld [vmem:[%s5346_s3 + $0x118] sm:$0xff] }
0x1358   :  { %v2437_v24 = vmul.f32 0.03125, %v2427_v60  ;;  %v2873_v60 = vld [vmem:[%s5346_s3 + $0x120] sm:$0xff] }
0x1359   :  { %v2442_v36 = vsub.f32 %v5233_v50, %v2438_v33  ;;  %v3606_v33 = vpack.c.bf16 %v2872_v56, %v2871_v45 }
0x135a   :  { %v2441_v57 = vsub.f32 %v5236_v43, %v2437_v24  ;;  %v2874_v24 = vld [vmem:[%s5346_s3 + $0x128] sm:$0xff] }
0x135b   :  { %v2433_v31 = vpop.xlane.xlu0 %2432  ;;  %v2446_v11 = vmul.f32 %v2442_v36, %v2442_v36 }
0x135c   :  { %v2439_v28 = vmul.f32 0.03125, %v2433_v31  ;;  %v2445_v49 = vmul.f32 %v2441_v57, %v2441_v57  ;;  %v2876_v31 = vld [vmem:[%s5346_s3 + $0x138] sm:$0xff] }
0x135d   :  { %v2452_v61 = vsel %vm239_vm1, %v2446_v11, 0.0 }
0x135e   :  { %v2443_v21 = vsub.f32 %v5243_v42, %v2439_v28  ;;  %2453 = vadd.xlane.f32.xlu1 %v2452_v61  ;;  %v2449_v19 = vsel %vm239_vm1, %v2445_v49, 0.0  ;;  %v2911_v28 = vld [vmem:[%s5347_s4 + $0xe] ss:$0 sm:$0xff] }
0x135f   :  { %2450 = vadd.xlane.f32.xlu0 %v2449_v19  ;;  %v2436_v48 = vpop.xlane.xlu0 %2435 }
0x1360   :  { %v2440_v16 = vmul.f32 0.03125, %v2436_v48  ;;  %v2447_v9 = vmul.f32 %v2443_v21, %v2443_v21 }
0x1362   :  { %v2444_v20 = vsub.f32 %v5246_v22, %v2440_v16  ;;  %v2455_v1 = vsel %vm239_vm1, %v2447_v9, 0.0 }
0x1363   :  { %2456 = vadd.xlane.f32.xlu0 %v2455_v1 }
0x1364   :  { %v2448_v10 = vmul.f32 %v2444_v20, %v2444_v20 }
0x1366   :  { %v2458_v30 = vsel %vm239_vm1, %v2448_v10, 0.0 }
0x1367   :  { %2459 = vadd.xlane.f32.xlu1 %v2458_v30 }
0x13eb   :  { %v2454_v53 = vpop.xlane.xlu1 %2453 }
0x13ec   :  { %v2462_v44 = vmul.f32 0.03125, %v2454_v53  ;;  %v2451_v41 = vpop.xlane.xlu0 %2450 }
0x13ed   :  { %v2461_v13 = vmul.f32 0.03125, %v2451_v41 }
0x13ee   :  { %v2466_v14 = vadd.f32 1e-06, %v2462_v44 }
0x13ef   :  { %v2465_v18 = vadd.f32 1e-06, %v2461_v13 }
0x13f0   :  { %4023 = vrsqrt.f32 %v2466_v14  ;;  %v2457_v58 = vpop.xlane.xlu0 %2456 }
0x13f1   :  { %4025 = vrsqrt.f32 %v2465_v18  ;;  %v2463_v54 = vmul.f32 0.03125, %v2457_v58 }
0x13f3   :  { %v2467_v34 = vadd.f32 1e-06, %v2463_v54 }
0x13f4   :  { %v2460_v5 = vpop.xlane.xlu1 %2459 }
0x13f5   :  { %4027 = vrsqrt.f32 %v2467_v34  ;;  %v2464_v46 = vmul.f32 0.03125, %v2460_v5 }
0x13f7   :  { %v2468_v47 = vadd.f32 1e-06, %v2464_v46 }
0x13f9   :  { %4029 = vrsqrt.f32 %v2468_v47  ;;  %v2916_v47 = vld [vmem:[%s5347_s4 + $0xf] ss:$0 sm:$0xff] }
0x13fa   :  { %v4024_v40 = vpop.eup %4023 }
0x13fb   :  { %v4026_v55 = vpop.eup %4025  ;;  %v2474_v35 = vmul.f32 %v4024_v40, %v2442_v36  ;;  %v3610_v36 = vpack.c.bf16 %v2874_v24, %v2873_v60 }
0x13fc   :  { %v2473_v7 = vmul.f32 %v4026_v55, %v2441_v57  ;;  %v2875_v57 = vld [vmem:[%s5346_s3 + $0x130] sm:$0xff] }
0x13fd   :  { %v2482_v52 = vmul.f32 %v2909_v3, %v2474_v35  ;;  %v3614_v11 = vpack.c.bf16 %v2876_v31, %v2875_v57 }
0x13fe   :  { %v2481_v25 = vmul.f32 %v2909_v3, %v2473_v7 }
0x13ff   :  { %v4028_v26 = vpop.eup %4027  ;;  %v2490_v63 = vadd.f32 %v2910_v2, %v2482_v52 }
0x1400   :  { %v2489_v12 = vadd.f32 %v2910_v2, %v2481_v25  ;;  %v2475_v8 = vmul.f32 %v4028_v26, %v2443_v21 }
0x1402   :  { %3346 = vmatprep.mubr.msk.f32.mxu0 %vm239_vm1, %v2489_v12  ;;  %v2483_v59 = vmul.f32 %v2909_v3, %v2475_v8 }
0x1403   :  { %v4030_v27 = vpop.eup %4029  ;;  %3347 = vmatmul.mubr.msk.f32.vlgmr.msra.gmra.mrb[20].mxu0 %vm239_vm1, %v2490_v63 }
0x1404   :  { %v2491_v17 = vadd.f32 %v2910_v2, %v2483_v59  ;;  %v2476_v37 = vmul.f32 %v4030_v27, %v2444_v20  ;;  %3605 = vmatpush3.bf16.msra.mxu0 %v3602_v29 }
0x1405   :  { %3607 = vmatprep.subr.bf16.mxu0 %v3606_v33 }
0x1406   :  { %3349 = vmatprep.mubr.msk.f32.mxu0 %vm239_vm1, %v2491_v17  ;;  %v2484_v39 = vmul.f32 %v2909_v3, %v2476_v37 }
0x1408   :  { %v2492_v62 = vadd.f32 %v2910_v2, %v2484_v39  ;;  %3609 = vmatpush3.bf16.msra.mxu0 %v3606_v33 }
0x1409   :  { %3611 = vmatprep.subr.bf16.mxu0 %v3610_v36 }
0x140a   :  { %3350 = vmatmul.mubr.msk.f32.gmra.mrb[22].mxu0 %vm239_vm1, %v2492_v62 }
0x140c   :  { %3613 = vmatpush3.bf16.msra.mxu0 %v3610_v36 }
0x140d   :  { %3615 = vmatprep.subr.bf16.mxu0 %v3614_v11 }
0x1410   :  { %3617 = vmatpush3.bf16.msra.mxu0 %v3614_v11 }
0x14d6   :  { %v3348_v49 = vpop.f32.mrb[20].mxu0 }
0x14d7   :  { %v2581_v61 = vadd.f32 %v3348_v49, %v2911_v28  ;;  %v2575_v21 = vpop.f32.mrb[21].mxu0 }
0x14d8   :  { %v2576_v19 = vadd.f32 %v2911_v28, %v2575_v21 }
0x14d9   :  { %v2599_v48 = vmul.f32 0.70710677, %v2581_v61  ;;  %v2595_v53 = vmul.f32 0.5, %v2581_v61 }
0x14da   :  { %v2598_v16 = vmul.f32 0.70710677, %v2576_v19  ;;  %v2594_v15 = vmul.f32 0.5, %v2576_v19 }
0x14db   :  { %4031 = verf.f32 %v2599_v48 }
0x14dc   :  { %4033 = verf.f32 %v2598_v16 }
0x14dd   :  { %v3351_v9 = vpop.f32.mrb[22].mxu0 }
0x14de   :  { %v2591_v20 = vadd.f32 %v3351_v9, %v2911_v28  ;;  %v2585_v1 = vpop.f32.mrb[23].mxu0 }
0x14df   :  { %v2586_v10 = vadd.f32 %v2911_v28, %v2585_v1 }
0x14e0   :  { %v2601_v30 = vmul.f32 0.70710677, %v2591_v20  ;;  %v2597_v34 = vmul.f32 0.5, %v2591_v20 }
0x14e1   :  { %v2600_v38 = vmul.f32 0.70710677, %v2586_v10  ;;  %v2596_v58 = vmul.f32 0.5, %v2586_v10 }
0x14e2   :  { %4035 = verf.f32 %v2601_v30 }
0x14e3   :  { %4037 = verf.f32 %v2600_v38 }
0x14e5   :  { %v4032_v6 = vpop.eup %4031 }
0x14e6   :  { %v4034_v23 = vpop.eup %4033  ;;  %v2607_v51 = vadd.f32 1.0, %v4032_v6 }
0x14e7   :  { %v2606_v32 = vadd.f32 1.0, %v4034_v23 }
0x14e8   :  { %v2611_v41 = vmul.f32 %v2607_v51, %v2595_v53  ;;  %v2921_v51 = vld [vmem:[%s5347_s4 + $0x10] ss:$0 sm:$0xff] }
0x14e9   :  { %v2610_v44 = vmul.f32 %v2606_v32, %v2594_v15  ;;  %v2922_v32 = vld [vmem:[%s5347_s4 + $0x11] ss:$0 sm:$0xff] }
0x14eb   :  { %3368 = vmatprep.mubr.msk.f32.mxu0 %vm966_vm11, %v2610_v44 }
0x14ec   :  { %v4036_v13 = vpop.eup %4035  ;;  %3369 = vmatmul.mubr.msk.f32.vlgmr.msra.gmra.mrb[24].mxu0 %vm966_vm11, %v2611_v41 }
0x14ed   :  { %v4038_v14 = vpop.eup %4037  ;;  %v2609_v18 = vadd.f32 1.0, %v4036_v13 }
0x14ee   :  { %v2608_v54 = vadd.f32 1.0, %v4038_v14 }
0x14ef   :  { %v2613_v46 = vmul.f32 %v2609_v18, %v2597_v34 }
0x14f0   :  { %v2612_v5 = vmul.f32 %v2608_v54, %v2596_v58 }
0x14f2   :  { %3371 = vmatprep.mubr.msk.f32.mxu0 %vm966_vm11, %v2612_v5 }
0x14f3   :  { %3372 = vmatmul.mubr.msk.f32.gmra.mrb[26].mxu0 %vm966_vm11, %v2613_v46 }
0x15bf   :  { %v3370_v40 = vpop.f32.mrb[24].mxu0 }
0x15c0   :  { %v2702_v3 = vadd.f32 %v3370_v40, %v2916_v47  ;;  %v2696_v55 = vpop.f32.mrb[25].mxu0 }
0x15c1   :  { %v2697_v26 = vadd.f32 %v2916_v47, %v2696_v55 }
0x15c2   :  { %v2716_v35 = vadd.f32 %v2702_v3, %v5233_v50 }
0x15c3   :  { %v2715_v27 = vadd.f32 %v2697_v26, %v5236_v43 }
0x15c4   :  { %v2724_v7 = vsel %vm239_vm1, %v2716_v35, 0.0 }
0x15c5   :  { %2725 = vadd.xlane.f32.xlu0 %v2724_v7  ;;  %v2721_v50 = vsel %vm239_vm1, %v2715_v27, 0.0 }
0x15c6   :  { %v3373_v2 = vpop.f32.mrb[26].mxu0 }
0x15c7   :  { %v2712_v52 = vadd.f32 %v3373_v2, %v2916_v47  ;;  %v2706_v25 = vpop.f32.mrb[27].mxu0 }
0x15c8   :  { %v2707_v12 = vadd.f32 %v2916_v47, %v2706_v25 }
0x15c9   :  { %v2718_v8 = vadd.f32 %v2712_v52, %v5246_v22 }
0x15ca   :  { %v2717_v63 = vadd.f32 %v2707_v12, %v5243_v42 }
0x15cb   :  { %v2730_v59 = vsel %vm239_vm1, %v2718_v8, 0.0 }
0x15cc   :  { %2731 = vadd.xlane.f32.xlu0 %v2730_v59  ;;  %v2727_v17 = vsel %vm239_vm1, %v2717_v63, 0.0 }
0x15cd   :  { %2728 = vadd.xlane.f32.xlu1 %v2727_v17 }
0x15d1   :  { %2722 = vadd.xlane.f32.xlu1 %v2721_v50 }
0x1652   :  { %v2726_v37 = vpop.xlane.xlu0 %2725 }
0x1653   :  { %v2734_v39 = vmul.f32 0.03125, %v2726_v37 }
0x1655   :  { %v2738_v62 = vsub.f32 %v2716_v35, %v2734_v39 }
0x1657   :  { %v2742_v4 = vmul.f32 %v2738_v62, %v2738_v62 }
0x1659   :  { %v2732_v0 = vpop.xlane.xlu0 %2731  ;;  %v2748_v22 = vsel %vm239_vm1, %v2742_v4, 0.0 }
0x165a   :  { %v2736_v29 = vmul.f32 0.03125, %v2732_v0  ;;  %2749 = vadd.xlane.f32.xlu0 %v2748_v22  ;;  %v2729_v42 = vpop.xlane.xlu1 %2728 }
0x165b   :  { %v2735_v45 = vmul.f32 0.03125, %v2729_v42 }
0x165c   :  { %v2740_v56 = vsub.f32 %v2718_v8, %v2736_v29 }
0x165d   :  { %v2739_v43 = vsub.f32 %v2717_v63, %v2735_v45 }
0x165e   :  { %v2723_v33 = vpop.xlane.xlu1 %2722  ;;  %v2744_v60 = vmul.f32 %v2740_v56, %v2740_v56 }
0x165f   :  { %v2733_v24 = vmul.f32 0.03125, %v2723_v33  ;;  %v2743_v36 = vmul.f32 %v2739_v43, %v2739_v43 }
0x1660   :  { %v2754_v57 = vsel %vm239_vm1, %v2744_v60, 0.0 }
0x1661   :  { %v2737_v31 = vsub.f32 %v2715_v27, %v2733_v24  ;;  %2755 = vadd.xlane.f32.xlu0 %v2754_v57  ;;  %v2751_v11 = vsel %vm239_vm1, %v2743_v36, 0.0 }
0x1662   :  { %2752 = vadd.xlane.f32.xlu1 %v2751_v11 }
0x1663   :  { %v2741_v28 = vmul.f32 %v2737_v31, %v2737_v31 }
0x1665   :  { %v2745_v49 = vsel %vm239_vm1, %v2741_v28, 0.0 }
0x1666   :  { %2746 = vadd.xlane.f32.xlu1 %v2745_v49 }
0x16e7   :  { %v2750_v61 = vpop.xlane.xlu0 %2749 }
0x16e8   :  { %v2758_v21 = vmul.f32 0.03125, %v2750_v61 }
0x16ea   :  { %v2762_v19 = vadd.f32 1e-06, %v2758_v21 }
0x16ec   :  { %4039 = vrsqrt.f32 %v2762_v19 }
0x16ee   :  { %v2756_v48 = vpop.xlane.xlu0 %2755 }
0x16ef   :  { %v2760_v16 = vmul.f32 0.03125, %v2756_v48  ;;  %v2753_v9 = vpop.xlane.xlu1 %2752 }
0x16f0   :  { %v2759_v20 = vmul.f32 0.03125, %v2753_v9 }
0x16f1   :  { %v2764_v1 = vadd.f32 1e-06, %v2760_v16 }
0x16f2   :  { %v2763_v10 = vadd.f32 1e-06, %v2759_v20 }
0x16f3   :  { %4041 = vrsqrt.f32 %v2764_v1  ;;  %v2747_v30 = vpop.xlane.xlu1 %2746 }
0x16f4   :  { %4043 = vrsqrt.f32 %v2763_v10  ;;  %v2757_v38 = vmul.f32 0.03125, %v2747_v30 }
0x16f6   :  { %v4040_v6 = vpop.eup %4039  ;;  %v2761_v23 = vadd.f32 1e-06, %v2757_v38 }
0x16f7   :  { %v2770_v15 = vmul.f32 %v4040_v6, %v2738_v62 }
0x16f8   :  { %4045 = vrsqrt.f32 %v2761_v23 }
0x16f9   :  { %v2778_v53 = vmul.f32 %v2921_v51, %v2770_v15 }
0x16fb   :  { %v2786_v44 = vadd.f32 %v2922_v32, %v2778_v53 }
0x16fd   :  { %v4042_v41 = vpop.eup %4041  ;;  %2790 = vrot.lane.b32.xlu0 %v2786_v44, %s4048_s20 }
0x16fe   :  { %v4044_v13 = vpop.eup %4043  ;;  %v2772_v18 = vmul.f32 %v4042_v41, %v2740_v56 }
0x16ff   :  { %v2771_v14 = vmul.f32 %v4044_v13, %v2739_v43 }
0x1700   :  { %v2780_v5 = vmul.f32 %v2921_v51, %v2772_v18 }
0x1701   :  { %v2779_v58 = vmul.f32 %v2921_v51, %v2771_v14 }
0x1702   :  { %v4046_v54 = vpop.eup %4045  ;;  %v2788_v40 = vadd.f32 %v2922_v32, %v2780_v5 }
0x1703   :  { %v2787_v34 = vadd.f32 %v2922_v32, %v2779_v58  ;;  %v2769_v46 = vmul.f32 %v4046_v54, %v2737_v31 }
0x1705   :  { %2794 = vrot.lane.b32.xlu1 %v2787_v34, %s4050_s28  ;;  %v2777_v47 = vmul.f32 %v2921_v51, %v2769_v46 }
0x1707   :  { %v2785_v3 = vadd.f32 %v2922_v32, %v2777_v47 }
0x1709   :  { %2798 = vrot.lane.b32.xlu1 %v2788_v40, %s4049_s27 }
0x176f   :  { %v2791_v55 = vpop.permute.xlu0 %2790 }
0x1770   :  { %v2801_v7 = vsel %vm239_vm1, %v2785_v3, %v2791_v55 }
0x1777   :  { %v2795_v35 = vpop.permute.xlu1 %2794 }
0x1778   :  { %v2802_v2 = vsel %vm966_vm11, %v2801_v7, %v2795_v35 }
0x177b   :  { %v2799_v52 = vpop.permute.xlu1 %2798 }
0x177c   :  { %v2803_v25 = vsel %vm971_vm12, %v2802_v2, %v2799_v52 }
0x177d   :  { %2804 = vst [vmem:[%s5348_s5] sm:$0xff] %v2803_v25 }

</bundles_post_ra>
